<compile_context>
chip_gen: v7x
topology: tpu7x:2x2x1
jax: 0.10.0
libtpu: 0.0.40
codegen_flags: <defaults>
</compile_context>

<pallas_src>
import math
import functools

import jax
import jax.numpy as jnp
from jax.experimental import pallas as pl
from jax.experimental.pallas import tpu as pltpu


def _make_kernel(num_heads: int, num_groups: int, seq: int, channels: int,
                 kv_chunk: int):
    H, S, C, G = num_heads, seq, channels, num_groups
    d_head = C // H
    gsize = C // G
    elems_per_group = S * gsize
    eps = 1e-5
    TK = kv_chunk
    n_kv = S // TK
    assert n_kv * TK == S

    def kernel(x_ref, gng_ref, gnb_ref, wc_ref, bc_ref, lng_ref, lnb_ref,
               wqkv_ref, wo_ref, bo_ref, o_ref):
        x = x_ref[0]                                               # (C, S) f32

        # ---- GroupNorm(G, C): two-pass stats via VPU/XLU mask reductions ----
        chan = jax.lax.broadcasted_iota(jnp.int32, (C, G), 0)
        grp = jax.lax.broadcasted_iota(jnp.int32, (C, G), 1)
        mask = jnp.logical_and(chan >= grp * gsize,
                               chan < (grp + 1) * gsize).astype(jnp.float32)  # (C, G)
        csum = jnp.sum(x, axis=1, keepdims=True)                   # (C, 1)
        gmean = jnp.sum(mask * csum, axis=0, keepdims=True) * (1.0 / elems_per_group)  # (1, G)
        mean_c = jnp.sum(mask * gmean, axis=1, keepdims=True)      # (C, 1)
        xm = x - mean_c
        csq = jnp.sum(xm * xm, axis=1, keepdims=True)              # (C, 1)
        gvar = jnp.sum(mask * csq, axis=0, keepdims=True) * (1.0 / elems_per_group)    # (1, G)
        rstd_c = jnp.sum(mask * jax.lax.rsqrt(gvar + eps), axis=1, keepdims=True)      # (C, 1)
        xg = xm * rstd_c * gng_ref[...] + gnb_ref[...]             # (C, S)

        # ---- 1x1 Conv2d == (C,C)@(C,S) channel matmul (bf16 MXU, f32 acc) ----
        xc = jnp.dot(wc_ref[...], xg.astype(jnp.bfloat16),
                     preferred_element_type=jnp.float32) + bc_ref[...]        # (C, S)

        # ---- LayerNorm over the channel dim, per pixel (two-pass) ----
        mu = jnp.sum(xc, axis=0, keepdims=True) * (1.0 / C)        # (1, S)
        xcm = xc - mu
        var = jnp.sum(xcm * xcm, axis=0, keepdims=True) * (1.0 / C)
        xl = xcm * jax.lax.rsqrt(var + eps) * lng_ref[...] + lnb_ref[...]
        xl_b = xl.astype(jnp.bfloat16)                             # (C, S)

        # ---- fused qkv projection: ONE (3C,C)@(C,S) matmul, K = C ----
        # (1/sqrt(d_head) is pre-folded into the Q rows of wqkv at init)
        qkv = jnp.dot(wqkv_ref[...], xl_b,
                      preferred_element_type=jnp.float32)          # (3C, S) f32

        # head split = row slices at C-aligned offsets + leading-dim reshapes
        # (no per-head 16-lane slicing / stacking)
        qT_h = qkv[0:C].reshape(H, d_head, S)                      # (H, d, S) f32
        k_h = qkv[C:2 * C].reshape(H, d_head, S).astype(jnp.bfloat16)   # (H, d, S)
        v_h = qkv[2 * C:3 * C].reshape(H, d_head, S).astype(jnp.bfloat16)
        q_h = jnp.transpose(qT_h, (0, 2, 1)).astype(jnp.bfloat16)  # (H, S, d)

        # ---- online-softmax attention over KV chunks (flash-style) ----
        # (H, S, S) never fully materializes when S > TK.
        # TODO(synk): for production S (>= 2048) hoist this loop onto a grid
        # axis with scratch accumulators and add a q-tile "parallel" axis so
        # the v7x megacore (2 TCs) is used even at batch 1.
        m_run = l_run = acc = None
        for ci in range(n_kv):
            kc = k_h[:, :, ci * TK:(ci + 1) * TK]                  # (H, d, TK)
            vc = v_h[:, :, ci * TK:(ci + 1) * TK]                  # (H, d, TK)
            s_c = jnp.einsum('hqd,hdk->hqk', q_h, kc,
                             preferred_element_type=jnp.float32)   # (H, S, TK) f32
            m_c = jnp.max(s_c, axis=-1, keepdims=True)
            if ci == 0:
                m_run = m_c
                p = jnp.exp(s_c - m_run)
                l_run = jnp.sum(p, axis=-1, keepdims=True)
                acc = jnp.einsum('hqk,hdk->hqd', p.astype(jnp.bfloat16), vc,
                                 preferred_element_type=jnp.float32)   # (H, S, d)
            else:
                m_new = jnp.maximum(m_run, m_c)
                alpha = jnp.exp(m_run - m_new)
                p = jnp.exp(s_c - m_new)
                l_run = alpha * l_run + jnp.sum(p, axis=-1, keepdims=True)
                acc = alpha * acc + jnp.einsum('hqk,hdk->hqd',
                                               p.astype(jnp.bfloat16), vc,
                                               preferred_element_type=jnp.float32)
                m_run = m_new

        # deferred softmax normalization on the (H,S,d) result, not on (H,S,S)
        attn = acc * pl.reciprocal(l_run, approx=True)             # (H, S, d) f32

        # ---- output projection: ONE (C,C)@(C,S) matmul (no per-head K=d) ----
        attn_cs = jnp.transpose(attn, (0, 2, 1)).reshape(C, S)     # (C, S) f32
        out = jnp.dot(wo_ref[...], attn_cs.astype(jnp.bfloat16),
                      preferred_element_type=jnp.float32) + bo_ref[...]   # (C, S)

        # ---- residual with the original (pre-norm) input ----
        o_ref[0] = (out + x).astype(o_ref.dtype)

    return kernel


def attention_block(x_nchw, params, *, num_heads=8, num_groups=32, kv_chunk=512):
    n, c, h, w = x_nchw.shape
    s = h * w
    # NCHW -> (N, C, S): pure reshape, no transpose (kernel is channels-first).
    x_ncs = x_nchw.reshape(n, c, s)

    (gn_gamma, gn_beta, wc, bc, ln_gamma, ln_beta, wqkv, wo, bo) = params

    tk = s if (s <= kv_chunk or s % kv_chunk != 0) else kv_chunk
    kernel = _make_kernel(num_heads, num_groups, s, c, tk)

    def full_spec(arr):
        rank = arr.ndim
        return pl.BlockSpec(arr.shape, lambda b, _r=rank: (0,) * _r)
    # TODO(synk): once single-buffered pipeline_mode (pl.Buffered(1)) is
    # confirmed on the target jax build, mark these grid-invariant weight
    # specs with it to halve their VMEM footprint (matters at large C on v7x).

    # Advisory cost estimate (helps XLA schedule around the custom call).
    flops = n * (10 * s * c * c + 4 * s * s * c)
    transcendentals = n * (num_heads * s * s + s + num_groups)
    bytes_accessed = (2 * n * s * c * 4          # activations in + out (f32)
                      + 5 * c * c * 2            # bf16 weights (wc + wqkv + wo)
                      + 8 * c * 4)               # affine / bias vectors
    cost = pl.CostEstimate(flops=int(flops), transcendentals=int(transcendentals),
                           bytes_accessed=int(bytes_accessed))

    # Generation-aware scoped-VMEM sizing (v5e/v6e: 128 MiB physical, v7x: 64).
    try:
        vmem_cap = int(pltpu.get_tpu_info().vmem_capacity_bytes)
    except Exception:
        vmem_cap = 64 * 1024 * 1024
    work_bytes = (2 * 2 * s * c * 4              # double-buffered x / out blocks
                  + 2 * 5 * c * c * 2            # double-buffered bf16 weights
                  + 2 * num_heads * s * tk * 4   # scores chunk + exp(p) chunk (f32)
                  + 3 * s * c * 2                # q/k/v head tensors (bf16)
                  + 8 * s * c * 4)               # f32 intermediates (qkv, acc, ...)
    vmem_limit = int(min(max(4 * work_bytes, 16 * 1024 * 1024), vmem_cap * 3 // 4))

    out_ncs = pl.pallas_call(
        kernel,
        out_shape=jax.ShapeDtypeStruct((n, c, s), jnp.float32),
        grid_spec=pltpu.PrefetchScalarGridSpec(
            num_scalar_prefetch=0,
            grid=(n,),
            in_specs=[
                pl.BlockSpec((1, c, s), lambda b: (b, 0, 0)),   # x, channels-first
                full_spec(gn_gamma), full_spec(gn_beta),
                full_spec(wc), full_spec(bc),
                full_spec(ln_gamma), full_spec(ln_beta),
                full_spec(wqkv), full_spec(wo), full_spec(bo),
            ],
            out_specs=pl.BlockSpec((1, c, s), lambda b: (b, 0, 0)),
        ),
        compiler_params=pltpu.CompilerParams(
            dimension_semantics=("parallel",),
            vmem_limit_bytes=vmem_limit),
        cost_estimate=cost,
    )(x_ncs, gn_gamma, gn_beta, wc, bc, ln_gamma, ln_beta, wqkv, wo, bo)

    # (N, C, S) -> NCHW: pure reshape.
    return out_ncs.reshape(n, c, h, w)


def init_params(key, channels, num_heads=8, num_groups=32):
    c = channels
    d = c // num_heads
    scale = 1.0 / math.sqrt(d)
    ks = jax.random.split(key, 5)
    # GroupNorm affine (channels-first column vectors)
    gn_gamma = jnp.ones((c, 1), jnp.float32)
    gn_beta = jnp.zeros((c, 1), jnp.float32)
    # 1x1 conv weight (C_out, C_in) used as-is: xc = Wc @ x
    wc = (jax.random.normal(ks[0], (c, c), jnp.float32) * 0.02).astype(jnp.bfloat16)
    bc = jnp.zeros((c, 1), jnp.float32)
    # LayerNorm affine
    ln_gamma = jnp.ones((c, 1), jnp.float32)
    ln_beta = jnp.zeros((c, 1), jnp.float32)
    # TODO(synk): FlashAttention's class body was not provided; assuming a
    # bias-free fused qkv Linear + softmax(q k^T / sqrt(d_head)) v + output
    # Linear with bias, with heads as contiguous d_head row blocks of each
    # projection -- verify head grouping / scale convention against the real
    # PyTorch weights before porting them.
    w_q = jax.random.normal(ks[1], (c, c), jnp.float32) * 0.02   # (out, in)
    w_k = jax.random.normal(ks[2], (c, c), jnp.float32) * 0.02
    w_v = jax.random.normal(ks[3], (c, c), jnp.float32) * 0.02
    # softmax scale baked into the Q rows (scores == q k^T / sqrt(d_head))
    wqkv = jnp.concatenate([w_q * scale, w_k, w_v], axis=0).astype(jnp.bfloat16)  # (3C, C)
    # output Linear weight (out, in) used as-is: out_cs = Wo @ attn_cs + bo
    wo = (jax.random.normal(ks[4], (c, c), jnp.float32) * 0.02).astype(jnp.bfloat16)
    bo = jnp.zeros((c, 1), jnp.float32)
    return (gn_gamma, gn_beta, wc, bc, ln_gamma, ln_beta, wqkv, wo, bo)


if __name__ == "__main__":
    # GroupNorm(32, C) requires C % 32 == 0; C=128 keeps the channel dim
    # 128-lane aligned and gives d_head=16 with 8 heads.
    batch, channels, height, width = 2, 128, 8, 8
    num_heads = 8

    key = jax.random.PRNGKey(0)
    kx, kp = jax.random.split(key)
    x = jax.random.normal(kx, (batch, channels, height, width), jnp.float32)
    params = init_params(kp, channels, num_heads=num_heads)

    fn = jax.jit(functools.partial(attention_block, num_heads=num_heads))
    out = fn(x, params)
    out = jax.block_until_ready(out)
    assert out.shape == x.shape and out.dtype == x.dtype
    print("KERNEL_OK")
</pallas_src>

<mosaic_0001>
module attributes {stable_mosaic.version = 11 : i64} {
  func.func @kernel(%arg0: i32, %arg1: memref<1x128x64xf32, #tpu.memory_space<vmem>>, %arg2: memref<128x1xf32, #tpu.memory_space<vmem>>, %arg3: memref<128x1xf32, #tpu.memory_space<vmem>>, %arg4: memref<128x128xbf16, #tpu.memory_space<vmem>>, %arg5: memref<128x1xf32, #tpu.memory_space<vmem>>, %arg6: memref<128x1xf32, #tpu.memory_space<vmem>>, %arg7: memref<128x1xf32, #tpu.memory_space<vmem>>, %arg8: memref<384x128xbf16, #tpu.memory_space<vmem>>, %arg9: memref<128x128xbf16, #tpu.memory_space<vmem>>, %arg10: memref<128x1xf32, #tpu.memory_space<vmem>>, %arg11: memref<1x128x64xf32, #tpu.memory_space<vmem>>) attributes {dimension_semantics = [#tpu.dimension_semantics<parallel>], iteration_bounds = array<i64: 2>, scalar_prefetch = 0 : i64, scratch_operands = 0 : i64, tpu.core_type = #tpu.core_type<tc>, window_params = [{transform_indices = @transform_0, window_bounds = array<i64: 1, 128, 64>}, {pipeline_mode = #tpu.pipeline_mode<synchronous>, transform_indices = @transform_1, window_bounds = array<i64: 128, 1>}, {pipeline_mode = #tpu.pipeline_mode<synchronous>, transform_indices = @transform_2, window_bounds = array<i64: 128, 1>}, {pipeline_mode = #tpu.pipeline_mode<synchronous>, transform_indices = @transform_3, window_bounds = array<i64: 128, 128>}, {pipeline_mode = #tpu.pipeline_mode<synchronous>, transform_indices = @transform_4, window_bounds = array<i64: 128, 1>}, {pipeline_mode = #tpu.pipeline_mode<synchronous>, transform_indices = @transform_5, window_bounds = array<i64: 128, 1>}, {pipeline_mode = #tpu.pipeline_mode<synchronous>, transform_indices = @transform_6, window_bounds = array<i64: 128, 1>}, {pipeline_mode = #tpu.pipeline_mode<synchronous>, transform_indices = @transform_7, window_bounds = array<i64: 384, 128>}, {pipeline_mode = #tpu.pipeline_mode<synchronous>, transform_indices = @transform_8, window_bounds = array<i64: 128, 128>}, {pipeline_mode = #tpu.pipeline_mode<synchronous>, transform_indices = @transform_9, window_bounds = array<i64: 128, 1>}, {transform_indices = @transform_10, window_bounds = array<i64: 1, 128, 64>}]} {
    %c0 = arith.constant 0 : index
    %c0_0 = arith.constant 0 : index
    %c0_1 = arith.constant 0 : index
    %0 = vector.load %arg1[%c0, %c0_0, %c0_1] : memref<1x128x64xf32, #tpu.memory_space<vmem>>, vector<1x128x64xf32>
    %1 = vector.shape_cast %0 : vector<1x128x64xf32> to vector<128x64xf32>
    %2 = tpu.iota {dimensions = array<i32: 0>} : vector<128x32xi32>
    %3 = tpu.iota {dimensions = array<i32: 1>} : vector<128x32xi32>
    %c4_i32 = arith.constant 4 : i32
    %4 = vector.broadcast %c4_i32 : i32 to vector<128x32xi32>
    %5 = arith.muli %3, %4 : vector<128x32xi32>
    %6 = arith.cmpi sge, %2, %5 : vector<128x32xi32>
    %c1_i32 = arith.constant 1 : i32
    %7 = vector.broadcast %c1_i32 : i32 to vector<128x32xi32>
    %8 = arith.addi %3, %7 : vector<128x32xi32>
    %c4_i32_2 = arith.constant 4 : i32
    %9 = vector.broadcast %c4_i32_2 : i32 to vector<128x32xi32>
    %10 = arith.muli %8, %9 : vector<128x32xi32>
    %11 = arith.cmpi slt, %2, %10 : vector<128x32xi32>
    %12 = arith.andi %6, %11 : vector<128x32xi1>
    %13 = arith.extui %12 : vector<128x32xi1> to vector<128x32xi32>
    %14 = arith.sitofp %13 : vector<128x32xi32> to vector<128x32xf32>
    %cst = arith.constant dense<0.000000e+00> : vector<128xf32>
    %15 = vector.multi_reduction <add>, %1, %cst [1] : vector<128x64xf32> to vector<128xf32>
    %16 = vector.shape_cast %15 : vector<128xf32> to vector<128x1xf32>
    %17 = vector.broadcast %16 : vector<128x1xf32> to vector<128x32xf32>
    %18 = arith.mulf %14, %17 : vector<128x32xf32>
    %cst_3 = arith.constant dense<0.000000e+00> : vector<32xf32>
    %19 = vector.multi_reduction <add>, %18, %cst_3 [0] : vector<128x32xf32> to vector<32xf32>
    %20 = vector.shape_cast %19 : vector<32xf32> to vector<1x32xf32>
    %cst_4 = arith.constant 3.906250e-03 : f32
    %21 = vector.broadcast %cst_4 : f32 to vector<1x32xf32>
    %22 = arith.mulf %20, %21 : vector<1x32xf32>
    %23 = vector.broadcast %22 : vector<1x32xf32> to vector<128x32xf32>
    %24 = arith.mulf %14, %23 : vector<128x32xf32>
    %cst_5 = arith.constant dense<0.000000e+00> : vector<128xf32>
    %25 = vector.multi_reduction <add>, %24, %cst_5 [1] : vector<128x32xf32> to vector<128xf32>
    %26 = vector.shape_cast %25 : vector<128xf32> to vector<128x1xf32>
    %27 = vector.broadcast %26 : vector<128x1xf32> to vector<128x64xf32>
    %28 = arith.subf %1, %27 : vector<128x64xf32>
    %29 = arith.mulf %28, %28 : vector<128x64xf32>
    %cst_6 = arith.constant dense<0.000000e+00> : vector<128xf32>
    %30 = vector.multi_reduction <add>, %29, %cst_6 [1] : vector<128x64xf32> to vector<128xf32>
    %31 = vector.shape_cast %30 : vector<128xf32> to vector<128x1xf32>
    %32 = vector.broadcast %31 : vector<128x1xf32> to vector<128x32xf32>
    %33 = arith.mulf %14, %32 : vector<128x32xf32>
    %cst_7 = arith.constant dense<0.000000e+00> : vector<32xf32>
    %34 = vector.multi_reduction <add>, %33, %cst_7 [0] : vector<128x32xf32> to vector<32xf32>
    %35 = vector.shape_cast %34 : vector<32xf32> to vector<1x32xf32>
    %cst_8 = arith.constant 3.906250e-03 : f32
    %36 = vector.broadcast %cst_8 : f32 to vector<1x32xf32>
    %37 = arith.mulf %35, %36 : vector<1x32xf32>
    %cst_9 = arith.constant 9.99999974E-6 : f32
    %38 = vector.broadcast %cst_9 : f32 to vector<1x32xf32>
    %39 = arith.addf %37, %38 : vector<1x32xf32>
    %40 = math.rsqrt %39 : vector<1x32xf32>
    %41 = vector.broadcast %40 : vector<1x32xf32> to vector<128x32xf32>
    %42 = arith.mulf %14, %41 : vector<128x32xf32>
    %cst_10 = arith.constant dense<0.000000e+00> : vector<128xf32>
    %43 = vector.multi_reduction <add>, %42, %cst_10 [1] : vector<128x32xf32> to vector<128xf32>
    %44 = vector.shape_cast %43 : vector<128xf32> to vector<128x1xf32>
    %45 = vector.broadcast %44 : vector<128x1xf32> to vector<128x64xf32>
    %46 = arith.mulf %28, %45 : vector<128x64xf32>
    %c0_11 = arith.constant 0 : index
    %c0_12 = arith.constant 0 : index
    %47 = vector.load %arg2[%c0_11, %c0_12] : memref<128x1xf32, #tpu.memory_space<vmem>>, vector<128x1xf32>
    %48 = vector.broadcast %47 : vector<128x1xf32> to vector<128x64xf32>
    %49 = arith.mulf %46, %48 : vector<128x64xf32>
    %c0_13 = arith.constant 0 : index
    %c0_14 = arith.constant 0 : index
    %50 = vector.load %arg3[%c0_13, %c0_14] : memref<128x1xf32, #tpu.memory_space<vmem>>, vector<128x1xf32>
    %51 = vector.broadcast %50 : vector<128x1xf32> to vector<128x64xf32>
    %52 = arith.addf %49, %51 : vector<128x64xf32>
    %c0_15 = arith.constant 0 : index
    %c0_16 = arith.constant 0 : index
    %53 = vector.load %arg4[%c0_15, %c0_16] : memref<128x128xbf16, #tpu.memory_space<vmem>>, vector<128x128xbf16>
    %54 = arith.truncf %52 : vector<128x64xf32> to vector<128x64xbf16>
    %cst_17 = arith.constant dense<0.000000e+00> : vector<128x64xf32>
    %55 = tpu.matmul %53, %54, %cst_17 {dimension_numbers = #tpu.dot_dimension_numbers<[1], [0], [0], [1], [0, 0, 1, 1], [], []>} : vector<128x128xbf16>, vector<128x64xbf16>, vector<128x64xf32> -> vector<128x64xf32>
    %c0_18 = arith.constant 0 : index
    %c0_19 = arith.constant 0 : index
    %56 = vector.load %arg5[%c0_18, %c0_19] : memref<128x1xf32, #tpu.memory_space<vmem>>, vector<128x1xf32>
    %57 = vector.broadcast %56 : vector<128x1xf32> to vector<128x64xf32>
    %58 = arith.addf %55, %57 : vector<128x64xf32>
    %cst_20 = arith.constant dense<0.000000e+00> : vector<64xf32>
    %59 = vector.multi_reduction <add>, %58, %cst_20 [0] : vector<128x64xf32> to vector<64xf32>
    %60 = vector.shape_cast %59 : vector<64xf32> to vector<1x64xf32>
    %cst_21 = arith.constant 7.812500e-03 : f32
    %61 = vector.broadcast %cst_21 : f32 to vector<1x64xf32>
    %62 = arith.mulf %60, %61 : vector<1x64xf32>
    %63 = vector.broadcast %62 : vector<1x64xf32> to vector<128x64xf32>
    %64 = arith.subf %58, %63 : vector<128x64xf32>
    %65 = arith.mulf %64, %64 : vector<128x64xf32>
    %cst_22 = arith.constant dense<0.000000e+00> : vector<64xf32>
    %66 = vector.multi_reduction <add>, %65, %cst_22 [0] : vector<128x64xf32> to vector<64xf32>
    %67 = vector.shape_cast %66 : vector<64xf32> to vector<1x64xf32>
    %cst_23 = arith.constant 7.812500e-03 : f32
    %68 = vector.broadcast %cst_23 : f32 to vector<1x64xf32>
    %69 = arith.mulf %67, %68 : vector<1x64xf32>
    %cst_24 = arith.constant 9.99999974E-6 : f32
    %70 = vector.broadcast %cst_24 : f32 to vector<1x64xf32>
    %71 = arith.addf %69, %70 : vector<1x64xf32>
    %72 = math.rsqrt %71 : vector<1x64xf32>
    %73 = vector.broadcast %72 : vector<1x64xf32> to vector<128x64xf32>
    %74 = arith.mulf %64, %73 : vector<128x64xf32>
    %c0_25 = arith.constant 0 : index
    %c0_26 = arith.constant 0 : index
    %75 = vector.load %arg6[%c0_25, %c0_26] : memref<128x1xf32, #tpu.memory_space<vmem>>, vector<128x1xf32>
    %76 = vector.broadcast %75 : vector<128x1xf32> to vector<128x64xf32>
    %77 = arith.mulf %74, %76 : vector<128x64xf32>
    %c0_27 = arith.constant 0 : index
    %c0_28 = arith.constant 0 : index
    %78 = vector.load %arg7[%c0_27, %c0_28] : memref<128x1xf32, #tpu.memory_space<vmem>>, vector<128x1xf32>
    %79 = vector.broadcast %78 : vector<128x1xf32> to vector<128x64xf32>
    %80 = arith.addf %77, %79 : vector<128x64xf32>
    %81 = arith.truncf %80 : vector<128x64xf32> to vector<128x64xbf16>
    %c0_29 = arith.constant 0 : index
    %c0_30 = arith.constant 0 : index
    %82 = vector.load %arg8[%c0_29, %c0_30] : memref<384x128xbf16, #tpu.memory_space<vmem>>, vector<384x128xbf16>
    %cst_31 = arith.constant dense<0.000000e+00> : vector<384x64xf32>
    %83 = tpu.matmul %82, %81, %cst_31 {dimension_numbers = #tpu.dot_dimension_numbers<[1], [0], [0], [1], [0, 0, 1, 1], [], []>} : vector<384x128xbf16>, vector<128x64xbf16>, vector<384x64xf32> -> vector<384x64xf32>
    %84 = vector.extract_strided_slice %83 {offsets = [0, 0], sizes = [128, 64], strides = [1, 1]} : vector<384x64xf32> to vector<128x64xf32>
    %85 = vector.shape_cast %84 : vector<128x64xf32> to vector<8x16x64xf32>
    %86 = vector.extract_strided_slice %83 {offsets = [128, 0], sizes = [128, 64], strides = [1, 1]} : vector<384x64xf32> to vector<128x64xf32>
    %87 = vector.shape_cast %86 : vector<128x64xf32> to vector<8x16x64xf32>
    %88 = arith.truncf %87 : vector<8x16x64xf32> to vector<8x16x64xbf16>
    %89 = vector.extract_strided_slice %83 {offsets = [256, 0], sizes = [128, 64], strides = [1, 1]} : vector<384x64xf32> to vector<128x64xf32>
    %90 = vector.shape_cast %89 : vector<128x64xf32> to vector<8x16x64xf32>
    %91 = arith.truncf %90 : vector<8x16x64xf32> to vector<8x16x64xbf16>
    %92 = tpu.transpose %85, [0, 2, 1] : vector<8x16x64xf32> -> vector<8x64x16xf32>
    %93 = arith.truncf %92 : vector<8x64x16xf32> to vector<8x64x16xbf16>
    "tpu.trace_start"() <{level = 10 : i32, message = "hqd,hdk->hqk"}> : () -> ()
    %cst_32 = arith.constant dense<0.000000e+00> : vector<8x64x64xf32>
    %94 = tpu.matmul %93, %88, %cst_32 {dimension_numbers = #tpu.dot_dimension_numbers<[2], [1], [1], [2], [0, 0, 0, 1, 1, 2], [0], [0]>} : vector<8x64x16xbf16>, vector<8x16x64xbf16>, vector<8x64x64xf32> -> vector<8x64x64xf32>
    "tpu.trace_stop"() : () -> ()
    %cst_33 = arith.constant dense<0xFF800000> : vector<8x64xf32>
    %95 = vector.multi_reduction <maximumf>, %94, %cst_33 [2] : vector<8x64x64xf32> to vector<8x64xf32>
    %96 = vector.shape_cast %95 : vector<8x64xf32> to vector<8x64x1xf32>
    %97 = vector.broadcast %96 : vector<8x64x1xf32> to vector<8x64x64xf32>
    %98 = arith.subf %94, %97 : vector<8x64x64xf32>
    %99 = math.exp %98 : vector<8x64x64xf32>
    %cst_34 = arith.constant dense<0.000000e+00> : vector<8x64xf32>
    %100 = vector.multi_reduction <add>, %99, %cst_34 [2] : vector<8x64x64xf32> to vector<8x64xf32>
    %101 = vector.shape_cast %100 : vector<8x64xf32> to vector<8x64x1xf32>
    %102 = arith.truncf %99 : vector<8x64x64xf32> to vector<8x64x64xbf16>
    "tpu.trace_start"() <{level = 10 : i32, message = "hqk,hdk->hqd"}> : () -> ()
    %cst_35 = arith.constant dense<0.000000e+00> : vector<8x64x16xf32>
    %103 = tpu.matmul %102, %91, %cst_35 {dimension_numbers = #tpu.dot_dimension_numbers<[2], [2], [1], [1], [0, 0, 0, 1, 1, 1], [0], [0]>} : vector<8x64x64xbf16>, vector<8x16x64xbf16>, vector<8x64x16xf32> -> vector<8x64x16xf32>
    "tpu.trace_stop"() : () -> ()
    %104 = tpu.reciprocal %101 {approx = true} : vector<8x64x1xf32> -> vector<8x64x1xf32>
    %105 = vector.broadcast %104 : vector<8x64x1xf32> to vector<8x64x16xf32>
    %106 = arith.mulf %103, %105 : vector<8x64x16xf32>
    %107 = tpu.transpose %106, [0, 2, 1] : vector<8x64x16xf32> -> vector<8x16x64xf32>
    %108 = vector.shape_cast %107 : vector<8x16x64xf32> to vector<128x64xf32>
    %c0_36 = arith.constant 0 : index
    %c0_37 = arith.constant 0 : index
    %109 = vector.load %arg9[%c0_36, %c0_37] : memref<128x128xbf16, #tpu.memory_space<vmem>>, vector<128x128xbf16>
    %110 = arith.truncf %108 : vector<128x64xf32> to vector<128x64xbf16>
    %cst_38 = arith.constant dense<0.000000e+00> : vector<128x64xf32>
    %111 = tpu.matmul %109, %110, %cst_38 {dimension_numbers = #tpu.dot_dimension_numbers<[1], [0], [0], [1], [0, 0, 1, 1], [], []>} : vector<128x128xbf16>, vector<128x64xbf16>, vector<128x64xf32> -> vector<128x64xf32>
    %c0_39 = arith.constant 0 : index
    %c0_40 = arith.constant 0 : index
    %112 = vector.load %arg10[%c0_39, %c0_40] : memref<128x1xf32, #tpu.memory_space<vmem>>, vector<128x1xf32>
    %113 = vector.broadcast %112 : vector<128x1xf32> to vector<128x64xf32>
    %114 = arith.addf %111, %113 : vector<128x64xf32>
    %115 = arith.addf %114, %1 : vector<128x64xf32>
    %c0_41 = arith.constant 0 : index
    %c0_42 = arith.constant 0 : index
    %c0_43 = arith.constant 0 : index
    %116 = vector.load %arg11[%c0_41, %c0_42, %c0_43] : memref<1x128x64xf32, #tpu.memory_space<vmem>>, vector<1x128x64xf32>
    %117 = vector.shape_cast %116 : vector<1x128x64xf32> to vector<128x64xf32>
    %118 = vector.shape_cast %115 : vector<128x64xf32> to vector<1x128x64xf32>
    tpu.vector_store %arg11[%c0_41, %c0_42, %c0_43], %118 {strides = array<i32>} : memref<1x128x64xf32, #tpu.memory_space<vmem>>, vector<1x128x64xf32>,
    return
  }
  func.func @transform_0(%arg0: i32) -> (i32, i32, i32) {
    %c0_i32 = arith.constant 0 : i32
    %c0_i32_0 = arith.constant 0 : i32
    %c0_i32_1 = arith.constant 0 : i32
    return %arg0, %c0_i32, %c0_i32_0 : i32, i32, i32
  }
  func.func @transform_1(%arg0: i32) -> (i32, i32) {
    %c0_i32 = arith.constant 0 : i32
    %c0_i32_0 = arith.constant 0 : i32
    %c0_i32_1 = arith.constant 0 : i32
    return %c0_i32, %c0_i32_0 : i32, i32
  }
  func.func @transform_2(%arg0: i32) -> (i32, i32) {
    %c0_i32 = arith.constant 0 : i32
    %c0_i32_0 = arith.constant 0 : i32
    %c0_i32_1 = arith.constant 0 : i32
    return %c0_i32, %c0_i32_0 : i32, i32
  }
  func.func @transform_3(%arg0: i32) -> (i32, i32) {
    %c0_i32 = arith.constant 0 : i32
    %c0_i32_0 = arith.constant 0 : i32
    %c0_i32_1 = arith.constant 0 : i32
    return %c0_i32, %c0_i32_0 : i32, i32
  }
  func.func @transform_4(%arg0: i32) -> (i32, i32) {
    %c0_i32 = arith.constant 0 : i32
    %c0_i32_0 = arith.constant 0 : i32
    %c0_i32_1 = arith.constant 0 : i32
    return %c0_i32, %c0_i32_0 : i32, i32
  }
  func.func @transform_5(%arg0: i32) -> (i32, i32) {
    %c0_i32 = arith.constant 0 : i32
    %c0_i32_0 = arith.constant 0 : i32
    %c0_i32_1 = arith.constant 0 : i32
    return %c0_i32, %c0_i32_0 : i32, i32
  }
  func.func @transform_6(%arg0: i32) -> (i32, i32) {
    %c0_i32 = arith.constant 0 : i32
    %c0_i32_0 = arith.constant 0 : i32
    %c0_i32_1 = arith.constant 0 : i32
    return %c0_i32, %c0_i32_0 : i32, i32
  }
  func.func @transform_7(%arg0: i32) -> (i32, i32) {
    %c0_i32 = arith.constant 0 : i32
    %c0_i32_0 = arith.constant 0 : i32
    %c0_i32_1 = arith.constant 0 : i32
    return %c0_i32, %c0_i32_0 : i32, i32
  }
  func.func @transform_8(%arg0: i32) -> (i32, i32) {
    %c0_i32 = arith.constant 0 : i32
    %c0_i32_0 = arith.constant 0 : i32
    %c0_i32_1 = arith.constant 0 : i32
    return %c0_i32, %c0_i32_0 : i32, i32
  }
  func.func @transform_9(%arg0: i32) -> (i32, i32) {
    %c0_i32 = arith.constant 0 : i32
    %c0_i32_0 = arith.constant 0 : i32
    %c0_i32_1 = arith.constant 0 : i32
    return %c0_i32, %c0_i32_0 : i32, i32
  }
  func.func @transform_10(%arg0: i32) -> (i32, i32, i32) {
    %c0_i32 = arith.constant 0 : i32
    %c0_i32_0 = arith.constant 0 : i32
    %c0_i32_1 = arith.constant 0 : i32
    return %arg0, %c0_i32, %c0_i32_0 : i32, i32, i32
  }
}

</mosaic_0001>

<bundles_post_ra>
// kernel: attention_block.1
= control target key start
LH: loop header
LB: loop body
LE: loop exit
PB: predicated region body
PF: predicated region fallthrough
CT: control target
= control target key end

     0   :  { %s6104_s13 = smov 0   ;;  %s8166_s0 = inlined_call_operand.vmem [shape: f32[2,128,64], index: 0, kind: input, shape index: {}]   ;;  %s8167_s1 = inlined_call_operand.vmem [shape: f32[128,1], index: 1, kind: input, shape index: {}]   ;;  %s8168_s2 = inlined_call_operand.vmem [shape: f32[128,1], index: 2, kind: input, shape index: {}]   ;;  %s8169_s3 = inlined_call_operand.vmem [shape: bf16[128,128], index: 3, kind: input, shape index: {}]   ;;  %s8170_s4 = inlined_call_operand.vmem [shape: f32[128,1], index: 4, kind: input, shape index: {}]   ;;  %s8171_s5 = inlined_call_operand.vmem [shape: f32[128,1], index: 5, kind: input, shape index: {}]   ;;  %s8172_s6 = inlined_call_operand.vmem [shape: f32[128,1], index: 6, kind: input, shape index: {}]   ;;  %s8173_s7 = inlined_call_operand.vmem [shape: bf16[384,128], index: 7, kind: input, shape index: {}]   ;;  %s8174_s8 = inlined_call_operand.vmem [shape: bf16[128,128], index: 8, kind: input, shape index: {}]   ;;  %s8175_s9 = inlined_call_operand.vmem [shape: f32[128,1], index: 9, kind: input, shape index: {}]   ;;  %s8176_s10 = inlined_call_operand.vmem [shape: f32[2,128,64], index: 10, kind: output, shape index: {}]  }
   0x1 LB: > { %s5032_s14 = sadd.s32 4294967295, %s6045_s13   ;;  %p5036_p0 = scmp.ge.s32.totalorder %s6045_s13, 1  ;;  %s6045_s13 = sphi %s6104_s13, %s20_s13  }
   0x2   : > { %p312_p1 = scmp.lt.s32.totalorder %s6045_s13, 3 }
   0x4   : > { %p313_p2 = pnand %p5036_p0, %p312_p1 }
   0x6   : > { %316 = sbr.rel (%p313_p2) target bundleno = 2678 (0xa76), region = 60 }
   0xd   : > { %p350_p3 = scmp.lt.s32.totalorder %s5032_s14, 1  ;;  %v6047_v0 = vmov 0   ;;  %vm479_vm0 = vcmask 523264   ;;  %v864_v33 = vld [vmem:[%s8167_s1 + $0x8] sm:$0xff]  ;;  %v975_v34 = vld [vmem:[%s8168_s2] sm:$0xff]  ;;  %v865_v37 = vld [vmem:[%s8167_s1 + $0x10] sm:$0xff]  ;;  %v377_v38 = vlaneseq }
   0xe   : > { %5618 = vset.pattern.permute.xlu1 %v6047_v0  ;;  %5617 = vset.pattern.permute.xlu0 %v6047_v0  ;;  %v863_v35 = vld [vmem:[%s8167_s1] sm:$0xff]  ;;  %v976_v36 = vld [vmem:[%s8168_s2 + $0x8] sm:$0xff]  ;;  %v6048_v50 = vmov 0.0  }
   0xf   : > { %s8244_s14 = smov (!%p350_p3, %s5032_s14), 1  ;;  %v395_v39 = vand.u32 127, %v377_v38  ;;  %v6217_v41 = vshrl.u32 %v377_v38, 7 }
  0x10   : > { %s5163_s15 = sshll.u32 %s8244_s14, 7 }
  0x11   : > { %s6120_s18 = scalar_lea.vmem %s8166_s0, %s5163_s15  ;;  %v413_v40 = vadd.s32 1, %v395_v39  ;;  %v6219_v42 = vmul.u32 4, %v395_v39  ;;  %v380_v44 = vadd.s32 16, %v6217_v41  ;;  %v379_v45 = vadd.s32 8, %v6217_v41  ;;  %s8113_s21 = scalar_lea.vmem %s8176_s10, %s5163_s15 }
  0x12   : > { %v6123_v1 = vld [vmem:[%s6120_s18] sm:$0xff]  ;;  %v6126_v2 = vld [vmem:[%s6120_s18 + $0x10] sm:$0xff]  ;;  %v6129_v3 = vld [vmem:[%s6120_s18 + $0x8] sm:$0xff]  ;;  %v381_v46 = vadd.s32 24, %v6217_v41  ;;  %v382_v47 = vadd.s32 32, %v6217_v41  ;;  %v383_v48 = vadd.s32 40, %v6217_v41 }
  0x13   : > { %v480_v4 = vsel %vm479_vm0, %v6123_v1, 0.0  ;;  %v486_v5 = vsel %vm479_vm0, %v6126_v2, 0.0  ;;  %v6136_v6 = vld [vmem:[%s6120_s18 + $0x18] sm:$0xff]  ;;  %v6139_v7 = vld [vmem:[%s6120_s18 + $0x20] sm:$0xff]  ;;  %v6142_v8 = vld [vmem:[%s6120_s18 + $0x28] sm:$0xff]  ;;  %v483_v10 = vsel %vm479_vm0, %v6129_v3, 0.0  ;;  %vm397_vm1 = vcmp.ge.s32.totalorder %v6217_v41, %v6219_v42 }
  0x14   : > { %481 = vadd.xlane.f32.xlu0 %v480_v4  ;;  %487 = vadd.xlane.f32.xlu1 %v486_v5  ;;  %v6145_v9 = vld [vmem:[%s6120_s18 + $0x30] sm:$0xff]  ;;  %v489_v11 = vsel %vm479_vm0, %v6136_v6, 0.0  ;;  %v6152_v12 = vld [vmem:[%s6120_s18 + $0x38] sm:$0xff]  ;;  %v6155_v13 = vld [vmem:[%s6120_s18 + $0x40] sm:$0xff]  ;;  %v492_v14 = vsel %vm479_vm0, %v6139_v7, 0.0  ;;  %v495_v15 = vsel %vm479_vm0, %v6142_v8, 0.0  ;;  %vm399_vm3 = vcmp.ge.s32.totalorder %v380_v44, %v6219_v42 }
  0x15   : > { %v498_v16 = vsel %vm479_vm0, %v6145_v9, 0.0  ;;  %v501_v17 = vsel %vm479_vm0, %v6152_v12, 0.0  ;;  %v504_v18 = vsel %vm479_vm0, %v6155_v13, 0.0  ;;  %v6168_v19 = vld [vmem:[%s6120_s18 + $0x48] sm:$0xff]  ;;  %v6171_v20 = vld [vmem:[%s6120_s18 + $0x50] sm:$0xff]  ;;  %v6176_v22 = vld [vmem:[%s6120_s18 + $0x58] sm:$0xff]  ;;  %vm398_vm5 = vcmp.ge.s32.totalorder %v379_v45, %v6219_v42 }
  0x16   : > { %v507_v21 = vsel %vm479_vm0, %v6168_v19, 0.0  ;;  %v510_v23 = vsel %vm479_vm0, %v6171_v20, 0.0  ;;  %v513_v24 = vsel %vm479_vm0, %v6176_v22, 0.0  ;;  %v6183_v25 = vld [vmem:[%s6120_s18 + $0x60] sm:$0xff]  ;;  %v6186_v26 = vld [vmem:[%s6120_s18 + $0x68] sm:$0xff]  ;;  %v6189_v27 = vld [vmem:[%s6120_s18 + $0x70] sm:$0xff]  ;;  %vm400_vm8 = vcmp.ge.s32.totalorder %v381_v46, %v6219_v42 }
  0x17   : > { %v516_v28 = vsel %vm479_vm0, %v6183_v25, 0.0  ;;  %v519_v29 = vsel %vm479_vm0, %v6186_v26, 0.0  ;;  %v6196_v30 = vld [vmem:[%s6120_s18 + $0x78] sm:$0xff]  ;;  %v522_v31 = vsel %vm479_vm0, %v6189_v27, 0.0  ;;  %v6221_v43 = vmul.u32 4, %v413_v40 }
  0x18   : > { %484 = vadd.xlane.f32.xlu0 %v483_v10  ;;  %490 = vadd.xlane.f32.xlu1 %v489_v11  ;;  %v525_v32 = vsel %vm479_vm0, %v6196_v30, 0.0  ;;  %vm401_vm13 = vcmp.ge.s32.totalorder %v382_v47, %v6219_v42  ;;  %v384_v49 = vadd.s32 48, %v6217_v41  ;;  %vm402_vm15 = vcmp.ge.s32.totalorder %v383_v48, %v6219_v42 }
  0x19   : > { %vm415_vm2 = vcmp.lt.s32.totalorder %v6217_v41, %v6221_v43  ;;  %vm417_vm4 = vcmp.lt.s32.totalorder %v380_v44, %v6221_v43  ;;  %vm416_vm6 = vcmp.lt.s32.totalorder %v379_v45, %v6221_v43  ;;  %vm418_vm9 = vcmp.lt.s32.totalorder %v381_v46, %v6221_v43 }
  0x1a   : > { %vm431_vm7 = vmand %vm397_vm1, %vm415_vm2  ;;  %vm419_vm14 = vcmp.lt.s32.totalorder %v382_v47, %v6221_v43  ;;  %vm420_vm1 = vcmp.lt.s32.totalorder %v383_v48, %v6221_v43  ;;  %v385_v54 = vadd.s32 56, %v6217_v41  ;;  %v386_v58 = vadd.s32 64, %v6217_v41 }
  0x1b   : > { %vm433_vm10 = vmand %vm399_vm3, %vm417_vm4  ;;  %v6242_v51 = vsel %vm431_vm7, 1.0, %v6048_v50  ;;  %vm403_vm4 = vcmp.ge.s32.totalorder %v384_v49, %v6219_v42  ;;  %v387_v62 = vadd.s32 72, %v6217_v41  ;;  %v391_v44 = vadd.s32 104, %v6217_v41 }
  0x1c   : > { %493 = vadd.xlane.f32.xlu0 %v492_v14  ;;  %496 = vadd.xlane.f32.xlu1 %v495_v15  ;;  %vm432_vm11 = vmand %vm398_vm5, %vm416_vm6  ;;  %v6248_v55 = vsel %vm433_vm10, 1.0, %v6048_v50  ;;  %vm421_vm5 = vcmp.lt.s32.totalorder %v384_v49, %v6221_v43  ;;  %vm544_vm6 = vcmask 261120   ;;  %vm404_vm7 = vcmp.ge.s32.totalorder %v385_v54, %v6219_v42 }
  0x1d   : > { %vm434_vm12 = vmand %vm400_vm8, %vm418_vm9  ;;  %v6251_v56 = vsel %vm432_vm11, 1.0, %v6048_v50  ;;  %vm422_vm8 = vcmp.lt.s32.totalorder %v385_v54, %v6221_v43  ;;  %vm405_vm10 = vcmp.ge.s32.totalorder %v386_v58, %v6219_v42 }
  0x1e   : > { %v6254_v57 = vsel %vm434_vm12, 1.0, %v6048_v50  ;;  %vm435_vm2 = vmand %vm401_vm13, %vm419_vm14  ;;  %vm423_vm12 = vcmp.lt.s32.totalorder %v386_v58, %v6221_v43  ;;  %vm406_vm13 = vcmp.ge.s32.totalorder %v387_v62, %v6219_v42  ;;  %vm424_vm14 = vcmp.lt.s32.totalorder %v387_v62, %v6221_v43 }
  0x1f   : > { %vm436_vm3 = vmand %vm402_vm15, %vm420_vm1  ;;  %v6267_v5 = vsel %vm435_vm2, 1.0, %v6048_v50  ;;  %v392_v58 = vadd.s32 112, %v6217_v41  ;;  %v393_v62 = vadd.s32 120, %v6217_v41 }
  0x20   : > { %499 = vadd.xlane.f32.xlu0 %v498_v16  ;;  %502 = vadd.xlane.f32.xlu1 %v501_v17  ;;  %v6270_v10 = vsel %vm436_vm3, 1.0, %v6048_v50  ;;  %vm6272_vm9 = vmand %vm403_vm4, %vm421_vm5  ;;  %v388_v16 = vadd.s32 80, %v6217_v41 }
  0x21   : > { %vm438_vm11 = vmand %vm404_vm7, %vm422_vm8 }
  0x22   : > { %vm6300_vm15 = vmand %vm405_vm10, %vm423_vm12  ;;  %vm407_vm2 = vcmp.ge.s32.totalorder %v388_v16, %v6219_v42  ;;  %vm425_vm3 = vcmp.lt.s32.totalorder %v388_v16, %v6221_v43  ;;  %vm428_vm12 = vcmp.lt.s32.totalorder %v391_v44, %v6221_v43 }
  0x23   : > { %vm440_vm1 = vmand %vm406_vm13, %vm424_vm14  ;;  %v6317_v49 = vsel %vm6300_vm15, 1.0, %v6048_v50  ;;  %vm411_vm15 = vcmp.ge.s32.totalorder %v392_v58, %v6219_v42 }
  0x24   : > { %505 = vadd.xlane.f32.xlu0 %v504_v18  ;;  %508 = vadd.xlane.f32.xlu1 %v507_v21  ;;  %vm6324_vm7 = vmand %vm407_vm2, %vm425_vm3  ;;  %vm412_vm2 = vcmp.ge.s32.totalorder %v393_v62, %v6219_v42  ;;  %vm430_vm3 = vcmp.lt.s32.totalorder %v393_v62, %v6221_v43 }
  0x28   : > { %511 = vadd.xlane.f32.xlu0 %v510_v23  ;;  %514 = vadd.xlane.f32.xlu1 %v513_v24  ;;  %v389_v23 = vadd.s32 88, %v6217_v41 }
  0x2a   : > { %vm408_vm4 = vcmp.ge.s32.totalorder %v389_v23, %v6219_v42  ;;  %vm426_vm5 = vcmp.lt.s32.totalorder %v389_v23, %v6221_v43 }
  0x2b   : > { %vm442_vm8 = vmand %vm408_vm4, %vm426_vm5 }
  0x2c   : > { %517 = vadd.xlane.f32.xlu0 %v516_v28  ;;  %520 = vadd.xlane.f32.xlu1 %v519_v29  ;;  %vm446_vm5 = vmand %vm412_vm2, %vm430_vm3 }
  0x30   : > { %523 = vadd.xlane.f32.xlu0 %v522_v31  ;;  %526 = vadd.xlane.f32.xlu1 %v525_v32 }
  0x41   : > { %886 = vperm.xlu1 %5618, %v864_v33   ;;  %v6291_v33 = vsel %vm6272_vm9, 1.0, %v6048_v50 }
  0x45   : > { %993 = vperm.xlu1 %5618, %v975_v34   ;;  %v6294_v34 = vsel %vm438_vm11, 1.0, %v6048_v50  ;;  %vm410_vm11 = vcmp.ge.s32.totalorder %v391_v44, %v6219_v42  ;;  %v6370_v44 = vsel %vm446_vm5, 1.0, %v6048_v50 }
  0x46   : > { %881 = vperm.xlu0 %5617, %v863_v35   ;;  %vm444_vm14 = vmand %vm410_vm11, %vm428_vm12 }
  0x49   : > { %998 = vperm.xlu1 %5618, %v976_v36  }
  0x4d   : > { %891 = vperm.xlu1 %5618, %v865_v37   ;;  %v390_v37 = vadd.s32 96, %v6217_v41 }
  0x4f   : > { %vm409_vm9 = vcmp.ge.s32.totalorder %v390_v37, %v6219_v42  ;;  %vm427_vm10 = vcmp.lt.s32.totalorder %v390_v37, %v6221_v43 }
  0x50   : > { %vm443_vm13 = vmand %vm409_vm9, %vm427_vm10 }
  0xa1   : > { %v482_v52 = vpop.xlane.xlu0 %481  ;;  %v488_v53 = vpop.xlane.xlu1 %487 }
  0xa2   : > { %v528_v59 = vmul.f32 %v6242_v51, %v482_v52  ;;  %v530_v63 = vmul.f32 %v6248_v55, %v488_v53  ;;  %v6320_v52 = vsel %vm440_vm1, 1.0, %v6048_v50  ;;  %vm429_vm1 = vcmp.lt.s32.totalorder %v392_v58, %v6221_v43 }
  0xa3   : > { %vm445_vm4 = vmand %vm411_vm15, %vm429_vm1 }
  0xa4   : > { %v545_v14 = vsel %vm544_vm6, %v528_v59, 0.0  ;;  %v548_v24 = vsel %vm544_vm6, %v530_v63, 0.0 }
  0xa5   : > { %v485_v60 = vpop.xlane.xlu0 %484  ;;  %v491_v61 = vpop.xlane.xlu1 %490 }
  0xa6   : > { %v529_v0 = vmul.f32 %v6251_v56, %v485_v60  ;;  %v531_v4 = vmul.f32 %v6254_v57, %v491_v61 }
  0xa8   : > { %v546_v15 = vsel %vm544_vm6, %v529_v0, 0.0  ;;  %v550_v28 = vsel %vm544_vm6, %v531_v4, 0.0 }
  0xa9   : > { %v547_v17 = vadd.f32 %v546_v15, %v545_v14  ;;  %v494_v18 = vpop.xlane.xlu0 %493  ;;  %v497_v21 = vpop.xlane.xlu1 %496  ;;  %v6341_v14 = vsel %vm6324_vm7, 1.0, %v6048_v50  ;;  %v6344_v15 = vsel %vm442_vm8, 1.0, %v6048_v50 }
  0xaa   : > { %v532_v29 = vmul.f32 %v6267_v5, %v494_v18  ;;  %v533_v31 = vmul.f32 %v6270_v10, %v497_v21 }
  0xab   : > { %v549_v32 = vadd.f32 %v548_v24, %v547_v17 }
  0xac   : > { %v552_v36 = vsel %vm544_vm6, %v532_v29, 0.0  ;;  %v554_v45 = vsel %vm544_vm6, %v533_v31, 0.0  ;;  %v6357_v29 = vsel %vm443_vm13, 1.0, %v6048_v50  ;;  %v6360_v31 = vsel %vm444_vm14, 1.0, %v6048_v50 }
  0xad   : > { %v551_v38 = vadd.f32 %v550_v28, %v549_v32  ;;  %v500_v39 = vpop.xlane.xlu0 %499  ;;  %v503_v40 = vpop.xlane.xlu1 %502 }
  0xae   : > { %v534_v46 = vmul.f32 %v6291_v33, %v500_v39  ;;  %v535_v47 = vmul.f32 %v6294_v34, %v503_v40  ;;  %v6367_v40 = vsel %vm445_vm4, 1.0, %v6048_v50 }
  0xaf   : > { %v553_v48 = vadd.f32 %v552_v36, %v551_v38 }
  0xb0   : > { %v556_v54 = vsel %vm544_vm6, %v534_v46, 0.0  ;;  %v558_v63 = vsel %vm544_vm6, %v535_v47, 0.0 }
  0xb1   : > { %v555_v59 = vadd.f32 %v554_v45, %v553_v48  ;;  %v506_v60 = vpop.xlane.xlu0 %505  ;;  %v509_v61 = vpop.xlane.xlu1 %508 }
  0xb2   : > { %v536_v0 = vmul.f32 %v6317_v49, %v506_v60  ;;  %v537_v4 = vmul.f32 %v6320_v52, %v509_v61 }
  0xb3   : > { %v557_v11 = vadd.f32 %v556_v54, %v555_v59 }
  0xb4   : > { %v560_v41 = vsel %vm544_vm6, %v536_v0, 0.0  ;;  %v562_v21 = vsel %vm544_vm6, %v537_v4, 0.0 }
  0xb5   : > { %v559_v16 = vadd.f32 %v558_v63, %v557_v11  ;;  %v512_v17 = vpop.xlane.xlu0 %511  ;;  %v515_v18 = vpop.xlane.xlu1 %514 }
  0xb6   : > { %v538_v23 = vmul.f32 %v6341_v14, %v512_v17  ;;  %v539_v24 = vmul.f32 %v6344_v15, %v515_v18 }
  0xb7   : > { %v561_v28 = vadd.f32 %v560_v41, %v559_v16 }
  0xb8   : > { %v564_v32 = vsel %vm544_vm6, %v538_v23, 0.0  ;;  %v566_v36 = vsel %vm544_vm6, %v539_v24, 0.0 }
  0xb9   : > { %v563_v42 = vadd.f32 %v562_v21, %v561_v28  ;;  %v518_v35 = vpop.xlane.xlu0 %517  ;;  %v521_v43 = vpop.xlane.xlu1 %520 }
  0xba   : > { %v540_v37 = vmul.f32 %v6357_v29, %v518_v35  ;;  %v541_v38 = vmul.f32 %v6360_v31, %v521_v43 }
  0xbb   : > { %v565_v39 = vadd.f32 %v564_v32, %v563_v42 }
  0xbc   : > { %v568_v45 = vsel %vm544_vm6, %v540_v37, 0.0  ;;  %v570_v53 = vsel %vm544_vm6, %v541_v38, 0.0 }
  0xbd   : > { %v567_v46 = vadd.f32 %v566_v36, %v565_v39  ;;  %v524_v47 = vpop.xlane.xlu0 %523  ;;  %v527_v48 = vpop.xlane.xlu1 %526 }
  0xbe   : > { %v542_v54 = vmul.f32 %v6367_v40, %v524_v47  ;;  %v543_v58 = vmul.f32 %v6370_v44, %v527_v48 }
  0xbf   : > { %v569_v59 = vadd.f32 %v568_v45, %v567_v46 }
  0xc0   : > { %v572_v60 = vsel %vm544_vm6, %v542_v54, 0.0  ;;  %v574_v62 = vsel %vm544_vm6, %v543_v58, 0.0 }
  0xc1   : > { %v571_v61 = vadd.f32 %v570_v53, %v569_v59 }
  0xc3   : > { %v573_v63 = vadd.f32 %v572_v60, %v571_v61 }
  0xc5   : > { %v575_v50 = vadd.f32 %v574_v62, %v573_v63 }
  0xc7   : > { %v576_v0 = vrot.slane %v575_v50, 4 }
  0xc9   : > { %v577_v4 = vadd.f32 %v576_v0, %v575_v50 }
  0xcb   : > { %v578_v11 = vrot.slane %v577_v4, 2 }
  0xcd   : > { %v579_v41 = vadd.f32 %v578_v11, %v577_v4 }
  0xcf   : > { %v580_v16 = vrot.slane %v579_v41, 1 }
  0xd1   : > { %v581_v17 = vadd.f32 %v580_v16, %v579_v41 }
  0xd3   : > { %v582_v18 = vmul.f32 0.00390625, %v581_v17  ;;  %v977_v17 = vld [vmem:[%s8168_s2 + $0x10] sm:$0xff] }
  0xd5   : > { %v584_v21 = vmul.f32 %v6251_v56, %v582_v18  ;;  %v583_v23 = vmul.f32 %v6242_v51, %v582_v18  ;;  %v586_v32 = vmul.f32 %v6254_v57, %v582_v18  ;;  %v585_v42 = vmul.f32 %v6248_v55, %v582_v18 }
  0xd6   : > { %v588_v36 = vmul.f32 %v6270_v10, %v582_v18  ;;  %v587_v37 = vmul.f32 %v6267_v5, %v582_v18  ;;  %v590_v45 = vmul.f32 %v6294_v34, %v582_v18  ;;  %v589_v46 = vmul.f32 %v6291_v33, %v582_v18 }
  0xd7   : > { %v602_v24 = vsel %vm544_vm6, %v584_v21, 0.0  ;;  %v599_v28 = vsel %vm544_vm6, %v583_v23, 0.0  ;;  %v608_v35 = vsel %vm544_vm6, %v586_v32, 0.0  ;;  %v605_v43 = vsel %vm544_vm6, %v585_v42, 0.0  ;;  %v978_v21 = vld [vmem:[%s8168_s2 + $0x18] sm:$0xff]  ;;  %v867_v23 = vld [vmem:[%s8167_s1 + $0x20] sm:$0xff]  ;;  %v6422_v42 = vpop.permute.xlu1 %886 }
  0xd8   : > { %603 = vadd.xlane.f32.xlu1 %v602_v24  ;;  %600 = vadd.xlane.f32.xlu0 %v599_v28  ;;  %v614_v38 = vsel %vm544_vm6, %v588_v36, 0.0  ;;  %v611_v39 = vsel %vm544_vm6, %v587_v37, 0.0  ;;  %v620_v47 = vsel %vm544_vm6, %v590_v45, 0.0  ;;  %v617_v48 = vsel %vm544_vm6, %v589_v46, 0.0  ;;  %v866_v24 = vld [vmem:[%s8167_s1 + $0x18] sm:$0xff]  ;;  %v6428_v36 = vpop.permute.xlu0 %881 }
  0xd9   : > { %v592_v53 = vmul.f32 %v6320_v52, %v582_v18  ;;  %v591_v54 = vmul.f32 %v6317_v49, %v582_v18  ;;  %v594_v60 = vmul.f32 %v6344_v15, %v582_v18  ;;  %v593_v61 = vmul.f32 %v6341_v14, %v582_v18 }
  0xda   : > { %v596_v50 = vmul.f32 %v6360_v31, %v582_v18  ;;  %v595_v0 = vmul.f32 %v6357_v29, %v582_v18  ;;  %v597_v41 = vmul.f32 %v6367_v40, %v582_v18  ;;  %v598_v28 = vmul.f32 %v6370_v44, %v582_v18 }
  0xdb   : > { %v626_v58 = vsel %vm544_vm6, %v592_v53, 0.0  ;;  %v623_v59 = vsel %vm544_vm6, %v591_v54, 0.0  ;;  %v632_v62 = vsel %vm544_vm6, %v594_v60, 0.0  ;;  %v629_v63 = vsel %vm544_vm6, %v593_v61, 0.0 }
  0xdc   : > { %609 = vadd.xlane.f32.xlu1 %v608_v35  ;;  %606 = vadd.xlane.f32.xlu0 %v605_v43  ;;  %v638_v4 = vsel %vm544_vm6, %v596_v50, 0.0  ;;  %v635_v11 = vsel %vm544_vm6, %v595_v0, 0.0  ;;  %v641_v16 = vsel %vm544_vm6, %v597_v41, 0.0  ;;  %v644_v32 = vsel %vm544_vm6, %v598_v28, 0.0  ;;  %v6424_v35 = vpop.permute.xlu1 %993 }
  0xe0   : > { %615 = vadd.xlane.f32.xlu1 %v614_v38  ;;  %612 = vadd.xlane.f32.xlu0 %v611_v39  ;;  %v6426_v43 = vpop.permute.xlu1 %998 }
  0xe4   : > { %621 = vadd.xlane.f32.xlu1 %v620_v47  ;;  %618 = vadd.xlane.f32.xlu0 %v617_v48  ;;  %v6430_v37 = vpop.permute.xlu1 %891 }
  0xe8   : > { %627 = vadd.xlane.f32.xlu1 %v626_v58  ;;  %624 = vadd.xlane.f32.xlu0 %v623_v59 }
  0xec   : > { %633 = vadd.xlane.f32.xlu1 %v632_v62  ;;  %630 = vadd.xlane.f32.xlu0 %v629_v63 }
  0xf0   : > { %639 = vadd.xlane.f32.xlu1 %v638_v4  ;;  %636 = vadd.xlane.f32.xlu0 %v635_v11 }
  0xf4   : > { %642 = vadd.xlane.f32.xlu0 %v641_v16 }
 0x101   : > { %1003 = vperm.xlu1 %5618, %v977_v17  }
 0x105   : > { %1008 = vperm.xlu1 %5618, %v978_v21  }
 0x109   : > { %901 = vperm.xlu1 %5618, %v867_v23  }
 0x10a   : > { %896 = vperm.xlu0 %5617, %v866_v24  }
 0x12d   : > { %645 = vadd.xlane.f32.xlu1 %v644_v32 }
 0x165   : > { %v604_v38 = vpop.xlane.xlu1 %603  ;;  %v601_v39 = vpop.xlane.xlu0 %600 }
 0x166   : > { %v6433_v45 = vsub.f32 %v6129_v3, %v604_v38  ;;  %v6436_v18 = vsub.f32 %v6123_v1, %v601_v39 }
 0x168   : > { %v664_v46 = vmul.f32 %v6433_v45, %v6433_v45  ;;  %v663_v47 = vmul.f32 %v6436_v18, %v6436_v18 }
 0x169   : > { %v610_v48 = vpop.xlane.xlu1 %609  ;;  %v607_v53 = vpop.xlane.xlu0 %606 }
 0x16a   : > { %v6443_v54 = vsub.f32 %v6136_v6, %v610_v48  ;;  %v6446_v58 = vsub.f32 %v6126_v2, %v607_v53  ;;  %v682_v3 = vsel %vm479_vm0, %v664_v46, 0.0  ;;  %v679_v59 = vsel %vm479_vm0, %v663_v47, 0.0 }
 0x16b   : > { %683 = vadd.xlane.f32.xlu1 %v682_v3  ;;  %680 = vadd.xlane.f32.xlu0 %v679_v59 }
 0x16c   : > { %v666_v1 = vmul.f32 %v6443_v54, %v6443_v54  ;;  %v665_v60 = vmul.f32 %v6446_v58, %v6446_v58 }
 0x16d   : > { %v616_v61 = vpop.xlane.xlu1 %615  ;;  %v613_v62 = vpop.xlane.xlu0 %612 }
 0x16e   : > { %v6455_v6 = vsub.f32 %v6142_v8, %v616_v61  ;;  %v6458_v2 = vsub.f32 %v6139_v7, %v613_v62  ;;  %v688_v63 = vsel %vm479_vm0, %v666_v1, 0.0  ;;  %v685_v50 = vsel %vm479_vm0, %v665_v60, 0.0 }
 0x16f   : > { %689 = vadd.xlane.f32.xlu1 %v688_v63  ;;  %686 = vadd.xlane.f32.xlu0 %v685_v50 }
 0x170   : > { %v668_v0 = vmul.f32 %v6455_v6, %v6455_v6  ;;  %v667_v4 = vmul.f32 %v6458_v2, %v6458_v2 }
 0x171   : > { %v622_v11 = vpop.xlane.xlu1 %621  ;;  %v619_v41 = vpop.xlane.xlu0 %618 }
 0x172   : > { %v6467_v8 = vsub.f32 %v6152_v12, %v622_v11  ;;  %v6470_v7 = vsub.f32 %v6145_v9, %v619_v41  ;;  %v694_v16 = vsel %vm479_vm0, %v668_v0, 0.0  ;;  %v691_v17 = vsel %vm479_vm0, %v667_v4, 0.0 }
 0x173   : > { %695 = vadd.xlane.f32.xlu1 %v694_v16  ;;  %692 = vadd.xlane.f32.xlu0 %v691_v17  ;;  %v979_v17 = vld [vmem:[%s8168_s2 + $0x20] sm:$0xff] }
 0x174   : > { %v670_v21 = vmul.f32 %v6467_v8, %v6467_v8  ;;  %v669_v23 = vmul.f32 %v6470_v7, %v6470_v7 }
 0x175   : > { %v628_v24 = vpop.xlane.xlu1 %627  ;;  %v625_v28 = vpop.xlane.xlu0 %624 }
 0x176   : > { %v6479_v12 = vsub.f32 %v6168_v19, %v628_v24  ;;  %v6482_v9 = vsub.f32 %v6155_v13, %v625_v28  ;;  %v700_v32 = vsel %vm479_vm0, %v670_v21, 0.0  ;;  %v697_v38 = vsel %vm479_vm0, %v669_v23, 0.0  ;;  %v868_v21 = vld [vmem:[%s8167_s1 + $0x28] sm:$0xff]  ;;  %v869_v23 = vld [vmem:[%s8167_s1 + $0x30] sm:$0xff]  ;;  %v982_v24 = vld [vmem:[%s8168_s2 + $0x38] sm:$0xff] }
 0x177   : > { %701 = vadd.xlane.f32.xlu1 %v700_v32  ;;  %698 = vadd.xlane.f32.xlu0 %v697_v38  ;;  %v871_v28 = vld [vmem:[%s8167_s1 + $0x40] sm:$0xff]  ;;  %v984_v38 = vld [vmem:[%s8168_s2 + $0x48] sm:$0xff] }
 0x178   : > { %v672_v39 = vmul.f32 %v6479_v12, %v6479_v12  ;;  %v671_v46 = vmul.f32 %v6482_v9, %v6482_v9 }
 0x179   : > { %v634_v47 = vpop.xlane.xlu1 %633  ;;  %v631_v48 = vpop.xlane.xlu0 %630 }
 0x17a   : > { %v6491_v19 = vsub.f32 %v6176_v22, %v634_v47  ;;  %v6494_v13 = vsub.f32 %v6171_v20, %v631_v48  ;;  %v706_v53 = vsel %vm479_vm0, %v672_v39, 0.0  ;;  %v703_v3 = vsel %vm479_vm0, %v671_v46, 0.0  ;;  %v873_v39 = vld [vmem:[%s8167_s1 + $0x50] sm:$0xff]  ;;  %v986_v47 = vld [vmem:[%s8168_s2 + $0x58] sm:$0xff] }
 0x17b   : > { %707 = vadd.xlane.f32.xlu1 %v706_v53  ;;  %704 = vadd.xlane.f32.xlu0 %v703_v3  ;;  %v876_v53 = vld [vmem:[%s8167_s1 + $0x68] sm:$0xff] }
 0x17c   : > { %v674_v59 = vmul.f32 %v6491_v19, %v6491_v19  ;;  %v673_v1 = vmul.f32 %v6494_v13, %v6494_v13 }
 0x17d   : > { %v640_v60 = vpop.xlane.xlu1 %639  ;;  %v637_v61 = vpop.xlane.xlu0 %636 }
 0x17e   : > { %v6503_v22 = vsub.f32 %v6186_v26, %v640_v60  ;;  %v6506_v20 = vsub.f32 %v6183_v25, %v637_v61  ;;  %v712_v62 = vsel %vm479_vm0, %v674_v59, 0.0  ;;  %v709_v63 = vsel %vm479_vm0, %v673_v1, 0.0  ;;  %v988_v59 = vld [vmem:[%s8168_s2 + $0x68] sm:$0xff]  ;;  %v878_v61 = vld [vmem:[%s8167_s1 + $0x78] sm:$0xff] }
 0x17f   : > { %713 = vadd.xlane.f32.xlu1 %v712_v62  ;;  %710 = vadd.xlane.f32.xlu0 %v709_v63  ;;  %v870_v63 = vld [vmem:[%s8167_s1 + $0x38] sm:$0xff] }
 0x180   : > { %v676_v50 = vmul.f32 %v6503_v22, %v6503_v22  ;;  %v675_v0 = vmul.f32 %v6506_v20, %v6506_v20 }
 0x181   : > { %v643_v4 = vpop.xlane.xlu0 %642  ;;  %v6540_v32 = vpop.permute.xlu1 %1003 }
 0x182   : > { %v6515_v11 = vsub.f32 %v6189_v27, %v643_v4  ;;  %v718_v26 = vsel %vm479_vm0, %v676_v50, 0.0  ;;  %v715_v25 = vsel %vm479_vm0, %v675_v0, 0.0  ;;  %v980_v27 = vld [vmem:[%s8168_s2 + $0x28] sm:$0xff]  ;;  %v983_v0 = vld [vmem:[%s8168_s2 + $0x40] sm:$0xff]  ;;  %v874_v4 = vld [vmem:[%s8167_s1 + $0x58] sm:$0xff] }
 0x183   : > { %719 = vadd.xlane.f32.xlu1 %v718_v26  ;;  %716 = vadd.xlane.f32.xlu0 %v715_v25  ;;  %v872_v50 = vld [vmem:[%s8167_s1 + $0x48] sm:$0xff]  ;;  %v985_v26 = vld [vmem:[%s8168_s2 + $0x50] sm:$0xff]  ;;  %v875_v25 = vld [vmem:[%s8167_s1 + $0x60] sm:$0xff] }
 0x184   : > { %v677_v41 = vmul.f32 %v6515_v11, %v6515_v11 }
 0x185   : > { %v6548_v46 = vpop.permute.xlu1 %1008 }
 0x186   : > { %v721_v16 = vsel %vm479_vm0, %v677_v41, 0.0  ;;  %v987_v41 = vld [vmem:[%s8168_s2 + $0x60] sm:$0xff] }
 0x187   : > { %722 = vadd.xlane.f32.xlu0 %v721_v16  ;;  %v877_v16 = vld [vmem:[%s8167_s1 + $0x70] sm:$0xff] }
 0x189   : > { %v6553_v48 = vpop.permute.xlu1 %901 }
 0x194   : > { %1013 = vperm.xlu1 %5618, %v979_v17   ;;  %v6597_v17 = vpop.permute.xlu0 %896 }
 0x198   : > { %1018 = vperm.xlu1 %5618, %v980_v27  }
 0x19d   : > { %906 = vperm.xlu0 %5617, %v868_v21  }
 0x1a1   : > { %911 = vperm.xlu0 %5617, %v869_v23  }
 0x1a5   : > { %1028 = vperm.xlu0 %5617, %v982_v24  }
 0x1a9   : > { %921 = vperm.xlu0 %5617, %v871_v28  }
 0x1ad   : > { %1038 = vperm.xlu0 %5617, %v984_v38  }
 0x1b1   : > { %931 = vperm.xlu0 %5617, %v873_v39  }
 0x1b5   : > { %1048 = vperm.xlu0 %5617, %v986_v47  }
 0x1b9   : > { %946 = vperm.xlu0 %5617, %v876_v53  }
 0x1ba   : > { %v646_v3 = vpop.xlane.xlu1 %645 }
 0x1bb   : > { %v6562_v1 = vsub.f32 %v6196_v30, %v646_v3  ;;  %v981_v30 = vld [vmem:[%s8168_s2 + $0x30] sm:$0xff] }
 0x1bd   : > { %1058 = vperm.xlu0 %5617, %v988_v59   ;;  %v678_v60 = vmul.f32 %v6562_v1, %v6562_v1 }
 0x1bf   : > { %v724_v62 = vsel %vm479_vm0, %v678_v60, 0.0 }
 0x1c0   : > { %725 = vadd.xlane.f32.xlu1 %v724_v62 }
 0x1c1   : > { %956 = vperm.xlu0 %5617, %v878_v61  }
 0x1d1   : > { %916 = vperm.xlu1 %5618, %v870_v63  }
 0x1d5   : > { %1023 = vperm.xlu1 %5618, %v981_v30  }
 0x1d9   : > { %926 = vperm.xlu1 %5618, %v872_v50  }
 0x1dd   : > { %1033 = vperm.xlu1 %5618, %v983_v0  }
 0x1e1   : > { %936 = vperm.xlu1 %5618, %v874_v4  }
 0x1e5   : > { %1043 = vperm.xlu1 %5618, %v985_v26  }
 0x1e9   : > { %941 = vperm.xlu1 %5618, %v875_v25  }
 0x1ed   : > { %1053 = vperm.xlu1 %5618, %v987_v41  }
 0x1f1   : > { %951 = vperm.xlu1 %5618, %v877_v16  }
 0x1f8   : > { %v681_v27 = vpop.xlane.xlu0 %680  ;;  %v684_v21 = vpop.xlane.xlu1 %683 }
 0x1f9   : > { %v728_v24 = vmul.f32 %v6251_v56, %v684_v21  ;;  %v727_v28 = vmul.f32 %v6242_v51, %v681_v27 }
 0x1fb   : > { %v744_v39 = vsel %vm544_vm6, %v728_v24, 0.0  ;;  %v743_v47 = vsel %vm544_vm6, %v727_v28, 0.0 }
 0x1fc   : > { %v687_v23 = vpop.xlane.xlu0 %686  ;;  %v690_v53 = vpop.xlane.xlu1 %689  ;;  %v745_v59 = vadd.f32 %v744_v39, %v743_v47 }
 0x1fd   : > { %v729_v38 = vmul.f32 %v6248_v55, %v687_v23  ;;  %v730_v61 = vmul.f32 %v6254_v57, %v690_v53 }
 0x1ff   : > { %v746_v3 = vsel %vm544_vm6, %v729_v38, 0.0  ;;  %v748_v30 = vsel %vm544_vm6, %v730_v61, 0.0 }
 0x200   : > { %v693_v60 = vpop.xlane.xlu0 %692  ;;  %v747_v62 = vadd.f32 %v746_v3, %v745_v59  ;;  %v696_v50 = vpop.xlane.xlu1 %695 }
 0x201   : > { %v731_v63 = vmul.f32 %v6267_v5, %v693_v60  ;;  %v732_v25 = vmul.f32 %v6270_v10, %v696_v50 }
 0x202   : > { %v749_v0 = vadd.f32 %v748_v30, %v747_v62 }
 0x203   : > { %v750_v4 = vsel %vm544_vm6, %v731_v63, 0.0  ;;  %v752_v27 = vsel %vm544_vm6, %v732_v25, 0.0 }
 0x204   : > { %v699_v26 = vpop.xlane.xlu0 %698  ;;  %v751_v41 = vadd.f32 %v750_v4, %v749_v0  ;;  %v702_v21 = vpop.xlane.xlu1 %701 }
 0x205   : > { %v733_v16 = vmul.f32 %v6291_v33, %v699_v26  ;;  %v734_v38 = vmul.f32 %v6294_v34, %v702_v21 }
 0x206   : > { %v753_v23 = vadd.f32 %v752_v27, %v751_v41 }
 0x207   : > { %v754_v24 = vsel %vm544_vm6, %v733_v16, 0.0  ;;  %v756_v3 = vsel %vm544_vm6, %v734_v38, 0.0 }
 0x208   : > { %v705_v28 = vpop.xlane.xlu0 %704  ;;  %v755_v39 = vadd.f32 %v754_v24, %v753_v23  ;;  %v708_v53 = vpop.xlane.xlu1 %707 }
 0x209   : > { %v735_v47 = vmul.f32 %v6317_v49, %v705_v28  ;;  %v736_v62 = vmul.f32 %v6320_v52, %v708_v53 }
 0x20a   : > { %v757_v59 = vadd.f32 %v756_v3, %v755_v39 }
 0x20b   : > { %v758_v60 = vsel %vm544_vm6, %v735_v47, 0.0  ;;  %v760_v0 = vsel %vm544_vm6, %v736_v62, 0.0 }
 0x20c   : > { %v711_v61 = vpop.xlane.xlu0 %710  ;;  %v759_v63 = vadd.f32 %v758_v60, %v757_v59  ;;  %v714_v30 = vpop.xlane.xlu1 %713 }
 0x20d   : > { %v737_v50 = vmul.f32 %v6341_v14, %v711_v61  ;;  %v738_v16 = vmul.f32 %v6344_v15, %v714_v30 }
 0x20e   : > { %v761_v4 = vadd.f32 %v760_v0, %v759_v63 }
 0x20f   : > { %v762_v26 = vsel %vm544_vm6, %v737_v50, 0.0  ;;  %v764_v23 = vsel %vm544_vm6, %v738_v16, 0.0 }
 0x210   : > { %v720_v25 = vpop.xlane.xlu1 %719  ;;  %v717_v41 = vpop.xlane.xlu0 %716  ;;  %v763_v27 = vadd.f32 %v762_v26, %v761_v4 }
 0x211   : > { %v739_v21 = vmul.f32 %v6357_v29, %v717_v41  ;;  %v740_v47 = vmul.f32 %v6360_v31, %v720_v25 }
 0x212   : > { %v765_v24 = vadd.f32 %v764_v23, %v763_v27 }
 0x213   : > { %v766_v38 = vsel %vm544_vm6, %v739_v21, 0.0  ;;  %v768_v60 = vsel %vm544_vm6, %v740_v47, 0.0 }
 0x214   : > { %v6624_v28 = vpop.permute.xlu1 %1013  ;;  %v723_v39 = vpop.xlane.xlu0 %722  ;;  %v767_v53 = vadd.f32 %v766_v38, %v765_v24 }
 0x215   : > { %v741_v3 = vmul.f32 %v6367_v40, %v723_v39 }
 0x216   : > { %v769_v61 = vadd.f32 %v768_v60, %v767_v53 }
 0x217   : > { %v770_v62 = vsel %vm544_vm6, %v741_v3, 0.0 }
 0x218   : > { %v6629_v59 = vpop.permute.xlu1 %1018  ;;  %v771_v50 = vadd.f32 %v770_v62, %v769_v61 }
 0x24d   : > { %v726_v63 = vpop.xlane.xlu1 %725 }
 0x24e   : > { %v742_v30 = vmul.f32 %v6370_v44, %v726_v63 }
 0x250   : > { %v772_v0 = vsel %vm544_vm6, %v742_v30, 0.0 }
 0x251   : > { %v773_v4 = vadd.f32 %v772_v0, %v771_v50 }
 0x253   : > { %v774_v26 = vrot.slane %v773_v4, 4 }
 0x255   : > { %v775_v41 = vadd.f32 %v774_v26, %v773_v4 }
 0x257   : > { %v776_v25 = vrot.slane %v775_v41, 2 }
 0x259   : > { %v777_v16 = vadd.f32 %v776_v25, %v775_v41 }
 0x25b   : > { %v778_v27 = vrot.slane %v777_v16, 1 }
 0x25d   : > { %v779_v21 = vadd.f32 %v778_v27, %v777_v16 }
 0x25f   : > { %v780_v23 = vmul.f32 0.00390625, %v779_v21 }
 0x261   : > { %v781_v24 = vadd.f32 1e-05, %v780_v23 }
 0x263   : > { %5763 = vrsqrt.f32 %v781_v24 }
 0x26d   : > { %v5764_v38 = vpop.eup %5763 }
 0x26e   : > { %v784_v39 = vmul.f32 %v5764_v38, %v6251_v56  ;;  %v783_v47 = vmul.f32 %v5764_v38, %v6242_v51  ;;  %v786_v60 = vmul.f32 %v5764_v38, %v6254_v57  ;;  %v785_v61 = vmul.f32 %v5764_v38, %v6248_v55 }
 0x26f   : > { %v788_v30 = vmul.f32 %v5764_v38, %v6270_v10  ;;  %v787_v56 = vmul.f32 %v5764_v38, %v6267_v5  ;;  %v789_v57 = vmul.f32 %v5764_v38, %v6291_v33  ;;  %v790_v55 = vmul.f32 %v5764_v38, %v6294_v34 }
 0x270   : > { %v802_v53 = vsel %vm544_vm6, %v784_v39, 0.0  ;;  %v799_v3 = vsel %vm544_vm6, %v783_v47, 0.0  ;;  %v808_v62 = vsel %vm544_vm6, %v786_v60, 0.0  ;;  %v805_v63 = vsel %vm544_vm6, %v785_v61, 0.0  ;;  %v1115_v39 = vld [vmem:[%s8170_s4 + $0x20] sm:$0xff]  ;;  %v1114_v47 = vld [vmem:[%s8170_s4 + $0x18] sm:$0xff] }
 0x271   : > { %803 = vadd.xlane.f32.xlu1 %v802_v53  ;;  %800 = vadd.xlane.f32.xlu0 %v799_v3  ;;  %v814_v51 = vsel %vm544_vm6, %v788_v30, 0.0  ;;  %v811_v50 = vsel %vm544_vm6, %v787_v56, 0.0  ;;  %v817_v0 = vsel %vm544_vm6, %v789_v57, 0.0  ;;  %v820_v4 = vsel %vm544_vm6, %v790_v55, 0.0  ;;  %v5723_v53 = vld [vmem:[%s8169_s3] sm:$0xff]   ;;  %v1117_v3 = vld [vmem:[%s8170_s4 + $0x30] sm:$0xff] }
 0x272   : > { %v791_v10 = vmul.f32 %v5764_v38, %v6317_v49  ;;  %v792_v5 = vmul.f32 %v5764_v38, %v6320_v52  ;;  %v793_v33 = vmul.f32 %v5764_v38, %v6341_v14  ;;  %v794_v34 = vmul.f32 %v5764_v38, %v6344_v15  ;;  %5325 = vmatprep.mubr.bf16.mxu1 %v5723_v53  ;;  %v1116_v60 = vld [vmem:[%s8170_s4 + $0x28] sm:$0xff]  ;;  %v1119_v61 = vld [vmem:[%s8170_s4 + $0x40] sm:$0xff]  ;;  %v1597_v53 = vld [vmem:[%s8172_s6 + $0x38] sm:$0xff] }
 0x273   : > { %v795_v49 = vmul.f32 %v5764_v38, %v6357_v29  ;;  %v796_v52 = vmul.f32 %v5764_v38, %v6360_v31  ;;  %v797_v14 = vmul.f32 %v5764_v38, %v6367_v40  ;;  %v798_v15 = vmul.f32 %v5764_v38, %v6370_v44  ;;  %v989_v29 = vld [vmem:[%s8168_s2 + $0x70] sm:$0xff]  ;;  %v1111_v31 = vld [vmem:[%s8170_s4] sm:$0xff]  ;;  %v990_v40 = vld [vmem:[%s8168_s2 + $0x78] sm:$0xff] }
 0x274   : > { %v823_v26 = vsel %vm544_vm6, %v791_v10, 0.0  ;;  %v826_v41 = vsel %vm544_vm6, %v792_v5, 0.0  ;;  %v829_v25 = vsel %vm544_vm6, %v793_v33, 0.0  ;;  %v832_v16 = vsel %vm544_vm6, %v794_v34, 0.0  ;;  %v1113_v44 = vld [vmem:[%s8170_s4 + $0x10] sm:$0xff]  ;;  %v1112_v38 = vld [vmem:[%s8170_s4 + $0x8] sm:$0xff]  ;;  %v6730_v10 = vpop.permute.xlu0 %906  ;;  %v6743_v34 = vpop.permute.xlu1 %916 }
 0x275   : > { %809 = vadd.xlane.f32.xlu1 %v808_v62  ;;  %806 = vadd.xlane.f32.xlu0 %v805_v63  ;;  %v835_v27 = vsel %vm544_vm6, %v795_v49, 0.0  ;;  %v838_v21 = vsel %vm544_vm6, %v796_v52, 0.0  ;;  %v841_v23 = vsel %vm544_vm6, %v797_v14, 0.0  ;;  %v844_v24 = vsel %vm544_vm6, %v798_v15, 0.0  ;;  %v1118_v62 = vld [vmem:[%s8170_s4 + $0x38] sm:$0xff]  ;;  %v1121_v63 = vld [vmem:[%s8170_s4 + $0x50] sm:$0xff] }
 0x276   : > { %v1120_v30 = vld [vmem:[%s8170_s4 + $0x48] sm:$0xff]  ;;  %v1123_v56 = vld [vmem:[%s8170_s4 + $0x60] sm:$0xff]  ;;  %vm2431_vm6 = vcmask 130048  }
 0x277   : > { %v1124_v57 = vld [vmem:[%s8170_s4 + $0x68] sm:$0xff]  ;;  %v1478_v55 = vld [vmem:[%s8171_s5] sm:$0xff] }
 0x278   : > { %v1479_v5 = vld [vmem:[%s8171_s5 + $0x8] sm:$0xff]  ;;  %v6741_v33 = vpop.permute.xlu0 %911  ;;  %v1482_v49 = vld [vmem:[%s8171_s5 + $0x20] sm:$0xff] }
 0x279   : > { %815 = vadd.xlane.f32.xlu1 %v814_v51  ;;  %812 = vadd.xlane.f32.xlu0 %v811_v50  ;;  %v1122_v51 = vld [vmem:[%s8170_s4 + $0x58] sm:$0xff]  ;;  %v1125_v50 = vld [vmem:[%s8170_s4 + $0x70] sm:$0xff]  ;;  %v1594_v14 = vld [vmem:[%s8172_s6 + $0x20] sm:$0xff] }
 0x27a   : > { %v1483_v15 = vld [vmem:[%s8171_s5 + $0x28] sm:$0xff] }
 0x27c   : > { %v6754_v52 = vpop.permute.xlu0 %1028 }
 0x27d   : > { %818 = vadd.xlane.f32.xlu1 %v817_v0  ;;  %821 = vadd.xlane.f32.xlu0 %v820_v4  ;;  %v1126_v0 = vld [vmem:[%s8170_s4 + $0x78] sm:$0xff]  ;;  %v1590_v4 = vld [vmem:[%s8172_s6] sm:$0xff] }
 0x281   : > { %824 = vadd.xlane.f32.xlu1 %v823_v26  ;;  %827 = vadd.xlane.f32.xlu0 %v826_v41  ;;  %v1480_v26 = vld [vmem:[%s8171_s5 + $0x10] sm:$0xff]  ;;  %v1591_v41 = vld [vmem:[%s8172_s6 + $0x8] sm:$0xff] }
 0x285   : > { %830 = vadd.xlane.f32.xlu1 %v829_v25  ;;  %833 = vadd.xlane.f32.xlu0 %v832_v16  ;;  %v1592_v25 = vld [vmem:[%s8172_s6 + $0x10] sm:$0xff]  ;;  %v1481_v16 = vld [vmem:[%s8171_s5 + $0x18] sm:$0xff] }
 0x289   : > { %836 = vadd.xlane.f32.xlu1 %v835_v27  ;;  %839 = vadd.xlane.f32.xlu0 %v838_v21  ;;  %v6756_v27 = vpop.permute.xlu1 %1023  ;;  %v1593_v21 = vld [vmem:[%s8172_s6 + $0x18] sm:$0xff] }
 0x28d   : > { %842 = vadd.xlane.f32.xlu1 %v841_v23  ;;  %845 = vadd.xlane.f32.xlu0 %v844_v24  ;;  %v6767_v23 = vpop.permute.xlu0 %921  ;;  %v6769_v24 = vpop.permute.xlu1 %926 }
 0x29e   : > { %1063 = vperm.xlu1 %5618, %v989_v29   ;;  %v1484_v29 = vld [vmem:[%s8171_s5 + $0x30] sm:$0xff] }
 0x2a2   : > { %1129 = vperm.xlu1 %5618, %v1111_v31   ;;  %v1595_v31 = vld [vmem:[%s8172_s6 + $0x28] sm:$0xff] }
 0x2a3   : > { %1068 = vperm.xlu0 %5617, %v990_v40   ;;  %v1596_v40 = vld [vmem:[%s8172_s6 + $0x30] sm:$0xff] }
 0x2a6   : > { %1139 = vperm.xlu1 %5618, %v1113_v44   ;;  %v6780_v44 = vpop.permute.xlu0 %1038 }
 0x2a7   : > { %1134 = vperm.xlu0 %5617, %v1112_v38   ;;  %v6782_v38 = vpop.permute.xlu1 %1033 }
 0x2aa   : > { %1149 = vperm.xlu1 %5618, %v1115_v39   ;;  %v1485_v39 = vld [vmem:[%s8171_s5 + $0x38] sm:$0xff] }
 0x2ab   : > { %1144 = vperm.xlu0 %5617, %v1114_v47   ;;  %v1486_v47 = vld [vmem:[%s8171_s5 + $0x40] sm:$0xff] }
 0x2ae   : > { %1159 = vperm.xlu1 %5618, %v1117_v3   ;;  %v6793_v3 = vpop.permute.xlu0 %931 }
 0x2af   : > { %1154 = vperm.xlu0 %5617, %v1116_v60   ;;  %v6795_v60 = vpop.permute.xlu1 %936 }
 0x2b2   : > { %1169 = vperm.xlu1 %5618, %v1119_v61   ;;  %v1598_v61 = vld [vmem:[%s8172_s6 + $0x40] sm:$0xff] }
 0x2b3   : > { %1164 = vperm.xlu0 %5617, %v1118_v62   ;;  %v1487_v62 = vld [vmem:[%s8171_s5 + $0x48] sm:$0xff] }
 0x2b6   : > { %1179 = vperm.xlu1 %5618, %v1121_v63   ;;  %v1488_v63 = vld [vmem:[%s8171_s5 + $0x50] sm:$0xff] }
 0x2b7   : > { %1174 = vperm.xlu0 %5617, %v1120_v30   ;;  %v6806_v30 = vpop.permute.xlu0 %1048 }
 0x2ba   : > { %1189 = vperm.xlu1 %5618, %v1123_v56   ;;  %v6808_v56 = vpop.permute.xlu1 %1043 }
 0x2bb   : > { %1184 = vperm.xlu0 %5617, %v1122_v51   ;;  %v1599_v51 = vld [vmem:[%s8172_s6 + $0x48] sm:$0xff] }
 0x2be   : > { %1199 = vperm.xlu1 %5618, %v1125_v50   ;;  %v1600_v50 = vld [vmem:[%s8172_s6 + $0x50] sm:$0xff] }
 0x2bf   : > { %1194 = vperm.xlu0 %5617, %v1124_v57   ;;  %v1489_v57 = vld [vmem:[%s8171_s5 + $0x58] sm:$0xff] }
 0x2c2   : > { %1496 = vperm.xlu1 %5618, %v1478_v55   ;;  %v6819_v55 = vpop.permute.xlu0 %946 }
 0x2c3   : > { %1204 = vperm.xlu0 %5617, %v1126_v0   ;;  %v6821_v0 = vpop.permute.xlu1 %941 }
 0x2c6   : > { %1608 = vperm.xlu1 %5618, %v1590_v4   ;;  %v1490_v4 = vld [vmem:[%s8171_s5 + $0x60] sm:$0xff] }
 0x2c7   : > { %1501 = vperm.xlu0 %5617, %v1479_v5   ;;  %v1601_v5 = vld [vmem:[%s8172_s6 + $0x58] sm:$0xff] }
 0x2ca   : > { %1506 = vperm.xlu1 %5618, %v1480_v26   ;;  %v1602_v26 = vld [vmem:[%s8172_s6 + $0x60] sm:$0xff] }
 0x2cb   : > { %1613 = vperm.xlu0 %5617, %v1591_v41   ;;  %v6832_v41 = vpop.permute.xlu0 %1058 }
 0x2ce   : > { %1618 = vperm.xlu1 %5618, %v1592_v25   ;;  %v6834_v25 = vpop.permute.xlu1 %1053 }
 0x2cf   : > { %1511 = vperm.xlu0 %5617, %v1481_v16   ;;  %v1491_v16 = vld [vmem:[%s8171_s5 + $0x68] sm:$0xff] }
 0x2d2   : > { %1516 = vperm.xlu1 %5618, %v1482_v49   ;;  %v1492_v49 = vld [vmem:[%s8171_s5 + $0x70] sm:$0xff] }
 0x2d3   : > { %1623 = vperm.xlu0 %5617, %v1593_v21   ;;  %v1603_v21 = vld [vmem:[%s8172_s6 + $0x68] sm:$0xff] }
 0x2d6   : > { %1628 = vperm.xlu1 %5618, %v1594_v14   ;;  %v6845_v14 = vpop.permute.xlu0 %956 }
 0x2d7   : > { %1521 = vperm.xlu0 %5617, %v1483_v15   ;;  %v6847_v15 = vpop.permute.xlu1 %951 }
 0x2da   : > { %1526 = vperm.xlu1 %5618, %v1484_v29   ;;  %v1604_v29 = vld [vmem:[%s8172_s6 + $0x70] sm:$0xff] }
 0x2db   : > { %1633 = vperm.xlu0 %5617, %v1595_v31   ;;  %v1493_v31 = vld [vmem:[%s8171_s5 + $0x78] sm:$0xff] }
 0x2de   : > { %1638 = vperm.xlu1 %5618, %v1596_v40  }
 0x2df   : > { %1531 = vperm.xlu0 %5617, %v1485_v39  }
 0x2e2   : > { %1536 = vperm.xlu1 %5618, %v1486_v47  }
 0x2e3   : > { %1643 = vperm.xlu0 %5617, %v1597_v53  }
 0x2e6   : > { %1648 = vperm.xlu1 %5618, %v1598_v61   ;;  %v1605_v61 = vld [vmem:[%s8172_s6 + $0x78] sm:$0xff] }
 0x2e7   : > { %1541 = vperm.xlu0 %5617, %v1487_v62  }
 0x2ea   : > { %1546 = vperm.xlu1 %5618, %v1488_v63  }
 0x2eb   : > { %1653 = vperm.xlu0 %5617, %v1599_v51  }
 0x2ee   : > { %1658 = vperm.xlu1 %5618, %v1600_v50  }
 0x2ef   : > { %1551 = vperm.xlu0 %5617, %v1489_v57  }
 0x2f2   : > { %1556 = vperm.xlu1 %5618, %v1490_v4  }
 0x2f3   : > { %1663 = vperm.xlu0 %5617, %v1601_v5  }
 0x2f6   : > { %1668 = vperm.xlu1 %5618, %v1602_v26  }
 0x2f7   : > { %1561 = vperm.xlu0 %5617, %v1491_v16  }
 0x2fa   : > { %1566 = vperm.xlu1 %5618, %v1492_v49  }
 0x2fb   : > { %1673 = vperm.xlu0 %5617, %v1603_v21  }
 0x2fe   : > { %1678 = vperm.xlu1 %5618, %v1604_v29   ;;  %v804_v40 = vpop.xlane.xlu1 %803  ;;  %v801_v39 = vpop.xlane.xlu0 %800 }
 0x2ff   : > { %v848_v47 = vmul.f32 %v804_v40, %v6433_v45  ;;  %v847_v53 = vmul.f32 %v801_v39, %v6436_v18  ;;  %1571 = vperm.xlu0 %5617, %v1493_v31  }
 0x301   : > { %v960_v62 = vmul.f32 %v6422_v42, %v848_v47  ;;  %v959_v63 = vmul.f32 %v6428_v36, %v847_v53 }
 0x302   : > { %v810_v51 = vpop.xlane.xlu1 %809  ;;  %v807_v50 = vpop.xlane.xlu0 %806 }
 0x303   : > { %v850_v57 = vmul.f32 %v810_v51, %v6443_v54  ;;  %v849_v4 = vmul.f32 %v807_v50, %v6446_v58  ;;  %1683 = vperm.xlu0 %5617, %v1605_v61   ;;  %v1071_v45 = vadd.f32 %v6424_v35, %v959_v63  ;;  %v1072_v18 = vadd.f32 %v6426_v43, %v960_v62 }
 0x305   : > { %v962_v5 = vmul.f32 %v6597_v17, %v850_v57  ;;  %v961_v26 = vmul.f32 %v6430_v37, %v849_v4  ;;  %v1103_v16 = vpack.c.bf16 %v1072_v18, %v1071_v45 }
 0x306   : > { %v816_v49 = vpop.xlane.xlu1 %815  ;;  %v813_v42 = vpop.xlane.xlu0 %812 }
 0x307   : > { %v1074_v36 = vadd.f32 %v6548_v46, %v962_v5  ;;  %v1073_v21 = vadd.f32 %v6540_v32, %v961_v26  ;;  %v852_v54 = vmul.f32 %v816_v49, %v6455_v6  ;;  %v851_v58 = vmul.f32 %v813_v42, %v6458_v2  ;;  %5309 = vmatprep.subr.bf16.mxu1 %v1103_v16  ;;  %v5729_v49 = vld [vmem:[%s8169_s3 + $0x30] sm:$0xff]   ;;  %v5730_v42 = vld [vmem:[%s8169_s3 + $0x38] sm:$0xff]  }
 0x308   : > { %5310 = vmatpush3.bf16.msra.mxu1 %v1103_v16 }
 0x309   : > { %v964_v35 = vmul.f32 %v6730_v10, %v852_v54  ;;  %v963_v43 = vmul.f32 %v6553_v48, %v851_v58  ;;  %v1104_v17 = vpack.c.bf16 %v1074_v36, %v1073_v21 }
 0x30a   : > { %v819_v29 = vpop.xlane.xlu1 %818  ;;  %v822_v37 = vpop.xlane.xlu0 %821 }
 0x30b   : > { %v1076_v31 = vadd.f32 %v6629_v59, %v964_v35  ;;  %v1075_v40 = vadd.f32 %v6624_v28, %v963_v43  ;;  %v853_v46 = vmul.f32 %v819_v29, %v6470_v7  ;;  %v854_v32 = vmul.f32 %v822_v37, %v6467_v8  ;;  %5311 = vmatprep.subr.bf16.mxu1 %v1104_v17 }
 0x30c   : > { %5312 = vmatpush3.bf16.msra.mxu1 %v1104_v17 }
 0x30d   : > { %v965_v6 = vmul.f32 %v6741_v33, %v853_v46  ;;  %v966_v2 = vmul.f32 %v6743_v34, %v854_v32  ;;  %v1105_v10 = vpack.c.bf16 %v1076_v31, %v1075_v40 }
 0x30e   : > { %v825_v39 = vpop.xlane.xlu1 %824  ;;  %v828_v48 = vpop.xlane.xlu0 %827 }
 0x30f   : > { %v1077_v47 = vadd.f32 %v6756_v27, %v965_v6  ;;  %v1078_v53 = vadd.f32 %v6754_v52, %v966_v2  ;;  %v855_v59 = vmul.f32 %v825_v39, %v6482_v9  ;;  %v856_v28 = vmul.f32 %v828_v48, %v6479_v12  ;;  %5313 = vmatprep.subr.bf16.mxu1 %v1105_v10 }
 0x310   : > { %5314 = vmatpush3.bf16.msra.mxu1 %v1105_v10 }
 0x311   : > { %v967_v8 = vmul.f32 %v6767_v23, %v855_v59  ;;  %v968_v7 = vmul.f32 %v6769_v24, %v856_v28  ;;  %v1106_v33 = vpack.c.bf16 %v1078_v53, %v1077_v47 }
 0x312   : > { %v831_v61 = vpop.xlane.xlu1 %830  ;;  %v834_v34 = vpop.xlane.xlu0 %833 }
 0x313   : > { %v1079_v62 = vadd.f32 %v6782_v38, %v967_v8  ;;  %v1080_v63 = vadd.f32 %v6780_v44, %v968_v7  ;;  %v857_v27 = vmul.f32 %v831_v61, %v6494_v13  ;;  %v858_v52 = vmul.f32 %v834_v34, %v6491_v19  ;;  %5315 = vmatprep.subr.bf16.mxu1 %v1106_v33 }
 0x314   : > { %5316 = vmatpush3.bf16.msra.mxu1 %v1106_v33 }
 0x315   : > { %v969_v12 = vmul.f32 %v6793_v3, %v857_v27  ;;  %v970_v9 = vmul.f32 %v6795_v60, %v858_v52  ;;  %v1107_v23 = vpack.c.bf16 %v1080_v63, %v1079_v62 }
 0x316   : > { %v837_v51 = vpop.xlane.xlu1 %836  ;;  %v840_v24 = vpop.xlane.xlu0 %839 }
 0x317   : > { %v1081_v50 = vadd.f32 %v6808_v56, %v969_v12  ;;  %v1082_v57 = vadd.f32 %v6806_v30, %v970_v9  ;;  %v859_v38 = vmul.f32 %v837_v51, %v6506_v20  ;;  %v860_v44 = vmul.f32 %v840_v24, %v6503_v22  ;;  %5317 = vmatprep.subr.bf16.mxu1 %v1107_v23 }
 0x318   : > { %5318 = vmatpush3.bf16.msra.mxu1 %v1107_v23 }
 0x319   : > { %v971_v19 = vmul.f32 %v6821_v0, %v859_v38  ;;  %v972_v13 = vmul.f32 %v6819_v55, %v860_v44  ;;  %v1108_v3 = vpack.c.bf16 %v1082_v57, %v1081_v50 }
 0x31a   : > { %v843_v4 = vpop.xlane.xlu1 %842  ;;  %v846_v60 = vpop.xlane.xlu0 %845 }
 0x31b   : > { %v1083_v45 = vadd.f32 %v6834_v25, %v971_v19  ;;  %v1084_v18 = vadd.f32 %v6832_v41, %v972_v13  ;;  %v861_v56 = vmul.f32 %v843_v4, %v6515_v11  ;;  %5319 = vmatprep.subr.bf16.mxu1 %v1108_v3  ;;  %v862_v20 = vmul.f32 %v846_v60, %v6562_v1  ;;  %v5724_v11 = vld [vmem:[%s8169_s3 + $0x8] sm:$0xff]   ;;  %v5725_v1 = vld [vmem:[%s8169_s3 + $0x10] sm:$0xff]   ;;  %v5726_v41 = vld [vmem:[%s8169_s3 + $0x18] sm:$0xff]  }
 0x31c   : > { %5320 = vmatpush3.bf16.msra.mxu1 %v1108_v3 }
 0x31d   : > { %v1109_v22 = vpack.c.bf16 %v1084_v18, %v1083_v45  ;;  %v973_v30 = vmul.f32 %v6847_v15, %v861_v56  ;;  %v974_v55 = vmul.f32 %v6845_v14, %v862_v20  ;;  %v5727_v14 = vld [vmem:[%s8169_s3 + $0x20] sm:$0xff]   ;;  %v5728_v15 = vld [vmem:[%s8169_s3 + $0x28] sm:$0xff]  }
 0x31e   : > { %v1064_v0 = vpop.permute.xlu1 %1063 }
 0x31f   : > { %5321 = vmatprep.subr.bf16.mxu1 %v1109_v22  ;;  %v1085_v26 = vadd.f32 %v1064_v0, %v973_v30 }
 0x320   : > { %5322 = vmatpush3.bf16.msra.mxu1 %v1109_v22 }
 0x322   : > { %v1069_v5 = vpop.permute.xlu0 %1068  ;;  %v1130_v36 = vpop.permute.xlu1 %1129 }
 0x323   : > { %v1086_v16 = vadd.f32 %v1069_v5, %v974_v55 }
 0x325   : > { %v1110_v25 = vpack.c.bf16 %v1086_v16, %v1085_v26 }
 0x326   : > { %v1135_v21 = vpop.permute.xlu0 %1134  ;;  %v1140_v54 = vpop.permute.xlu1 %1139 }
 0x327   : > { %5323 = vmatprep.subr.bf16.mxu1 %v1110_v25 }
 0x328   : > { %5324 = vmatpush3.bf16.msra.mxu1 %v1110_v25 }
 0x32a   : > { %v1145_v58 = vpop.permute.xlu0 %1144  ;;  %v1150_v35 = vpop.permute.xlu1 %1149 }
 0x32b   : > { %5326 = vmatmul.mubr.bf16.vlgmr.msra.gmra.mrb[0].mxu1 %v5724_v11 }
 0x32c   : > { %5329 = vmatprep.mubr.bf16.mxu1 %v5725_v1 }
 0x32e   : > { %v1155_v43 = vpop.permute.xlu0 %1154  ;;  %v1160_v40 = vpop.permute.xlu1 %1159 }
 0x332   : > { %v1165_v2 = vpop.permute.xlu0 %1164  ;;  %v1170_v28 = vpop.permute.xlu1 %1169 }
 0x333   : > { %5330 = vmatmul.mubr.bf16.gmra.mrb[4].mxu1 %v5726_v41 }
 0x334   : > { %5333 = vmatprep.mubr.bf16.mxu1 %v5727_v14 }
 0x336   : > { %v1175_v62 = vpop.permute.xlu0 %1174  ;;  %v1180_v50 = vpop.permute.xlu1 %1179 }
 0x33a   : > { %v1185_v19 = vpop.permute.xlu0 %1184  ;;  %v1190_v0 = vpop.permute.xlu1 %1189 }
 0x33b   : > { %5334 = vmatmul.mubr.bf16.gmra.mrb[8].mxu1 %v5728_v15 }
 0x33c   : > { %5337 = vmatprep.mubr.bf16.mxu1 %v5729_v49 }
 0x33e   : > { %v1195_v16 = vpop.permute.xlu0 %1194 }
 0x343   : > { %5338 = vmatmul.mubr.bf16.gmra.mrb[12].mxu1 %v5730_v42 }
 0x3fe   : > { %v5327_v17 = vpop.f32.mrb[0].mxu1 }
 0x3ff   : > { %v1289_v29 = vpop.f32.mrb[1].mxu1  ;;  %v6927_v32 = vadd.f32 %v5327_v17, %v1140_v54 }
 0x400   : > { %v6925_v37 = vadd.f32 %v1289_v29, %v1130_v36  ;;  %v5328_v31 = vpop.f32.mrb[2].mxu1  ;;  %v5731_v36 = vld [vmem:[%s8173_s7] sm:$0xff]   ;;  %v1205_v29 = vpop.permute.xlu0 %1204 }
 0x401   : > { %v1292_v46 = vpop.f32.mrb[3].mxu1  ;;  %v6933_v39 = vadd.f32 %v5328_v31, %v1145_v58  ;;  %v1355_v53 = vsel %vm479_vm0, %v6927_v32, 0.0  ;;  %5357 = vmatprep.mubr.bf16.mxu1 %v5731_v36 }
 0x402   : > { %v6929_v6 = vadd.f32 %v1292_v46, %v1135_v21  ;;  %v1352_v10 = vsel %vm479_vm0, %v6925_v37, 0.0  ;;  %v1200_v21 = vpop.permute.xlu1 %1199 }
 0x403   : > { %v1357_v33 = vsel %vm479_vm0, %v6933_v39, 0.0 }
 0x404   : > { %v1353_v48 = vsel %vm479_vm0, %v6929_v6, 0.0 }
 0x405   : > { %v1354_v47 = vadd.f32 %v1353_v48, %v1352_v10 }
 0x406   : > { %v5331_v59 = vpop.f32.mrb[4].mxu1 }
 0x407   : > { %v1356_v8 = vadd.f32 %v1355_v53, %v1354_v47  ;;  %v1305_v7 = vpop.f32.mrb[5].mxu1  ;;  %v6943_v52 = vadd.f32 %v5331_v59, %v1160_v40 }
 0x408   : > { %v6941_v61 = vadd.f32 %v1305_v7, %v1150_v35  ;;  %v5332_v34 = vpop.f32.mrb[6].mxu1  ;;  %v6970_v7 = vpop.permute.xlu0 %1501 }
 0x409   : > { %v1358_v63 = vadd.f32 %v1357_v33, %v1356_v8  ;;  %v1308_v27 = vpop.f32.mrb[7].mxu1  ;;  %v6949_v51 = vadd.f32 %v5332_v34, %v1165_v2  ;;  %v1363_v38 = vsel %vm479_vm0, %v6943_v52, 0.0 }
 0x40a   : > { %v1359_v12 = vsel %vm479_vm0, %v6941_v61, 0.0  ;;  %v6947_v9 = vadd.f32 %v1308_v27, %v1155_v43 }
 0x40b   : > { %v1360_v23 = vadd.f32 %v1359_v12, %v1358_v63  ;;  %v1365_v4 = vsel %vm479_vm0, %v6949_v51, 0.0 }
 0x40c   : > { %v1361_v24 = vsel %vm479_vm0, %v6947_v9, 0.0  ;;  %v6974_v27 = vpop.permute.xlu0 %1613 }
 0x40d   : > { %v1362_v57 = vadd.f32 %v1361_v24, %v1360_v23 }
 0x40e   : > { %v5335_v44 = vpop.f32.mrb[8].mxu1 }
 0x40f   : > { %v1364_v13 = vadd.f32 %v1363_v38, %v1362_v57  ;;  %v1321_v3 = vpop.f32.mrb[9].mxu1  ;;  %v1330_v20 = vadd.f32 %v5335_v44, %v1180_v50 }
 0x410   : > { %v1322_v60 = vadd.f32 %v1321_v3, %v1170_v28  ;;  %v5336_v45 = vpop.f32.mrb[10].mxu1  ;;  %v6968_v28 = vpop.permute.xlu1 %1496 }
 0x411   : > { %v1366_v18 = vadd.f32 %v1365_v4, %v1364_v13  ;;  %v1324_v56 = vpop.f32.mrb[11].mxu1  ;;  %v1333_v5 = vadd.f32 %v5336_v45, %v1185_v19  ;;  %v1371_v11 = vsel %vm479_vm0, %v1330_v20, 0.0 }
 0x412   : > { %v1367_v22 = vsel %vm479_vm0, %v1322_v60, 0.0  ;;  %v1325_v30 = vadd.f32 %v1324_v56, %v1175_v62 }
 0x413   : > { %v1368_v55 = vadd.f32 %v1367_v22, %v1366_v18  ;;  %v1373_v15 = vsel %vm479_vm0, %v1333_v5, 0.0 }
 0x414   : > { %v1369_v26 = vsel %vm479_vm0, %v1325_v30, 0.0  ;;  %v6972_v62 = vpop.permute.xlu1 %1608 }
 0x415   : > { %v1370_v25 = vadd.f32 %v1369_v26, %v1368_v55 }
 0x416   : > { %v5339_v1 = vpop.f32.mrb[12].mxu1 }
 0x417   : > { %v1372_v41 = vadd.f32 %v1371_v11, %v1370_v25  ;;  %v1337_v14 = vpop.f32.mrb[13].mxu1  ;;  %v1346_v35 = vadd.f32 %v5339_v1, %v1200_v21 }
 0x418   : > { %v1338_v49 = vadd.f32 %v1337_v14, %v1190_v0  ;;  %v5340_v42 = vpop.f32.mrb[14].mxu1  ;;  %v6976_v24 = vpop.permute.xlu1 %1506 }
 0x419   : > { %v1374_v54 = vadd.f32 %v1373_v15, %v1372_v41  ;;  %v1340_v58 = vpop.f32.mrb[15].mxu1  ;;  %v1349_v40 = vadd.f32 %v5340_v42, %v1205_v29  ;;  %v1379_v10 = vsel %vm479_vm0, %v1346_v35, 0.0 }
 0x41a   : > { %v1375_v43 = vsel %vm479_vm0, %v1338_v49, 0.0  ;;  %v1341_v17 = vadd.f32 %v1340_v58, %v1195_v16 }
 0x41b   : > { %v1376_v31 = vadd.f32 %v1375_v43, %v1374_v54  ;;  %v1381_v47 = vsel %vm479_vm0, %v1349_v40, 0.0 }
 0x41c   : > { %v1377_v46 = vsel %vm479_vm0, %v1341_v17, 0.0  ;;  %v7024_v56 = vpop.permute.xlu1 %1618 }
 0x41d   : > { %v1378_v2 = vadd.f32 %v1377_v46, %v1376_v31 }
 0x41f   : > { %v1380_v48 = vadd.f32 %v1379_v10, %v1378_v2 }
 0x420   : > { %v7037_v11 = vpop.permute.xlu1 %1516 }
 0x421   : > { %v1382_v53 = vadd.f32 %v1381_v47, %v1380_v48 }
 0x423   : > { %v1383_v59 = vrot.slane %v1382_v53, 4 }
 0x425   : > { %v1384_v8 = vadd.f32 %v1383_v59, %v1382_v53 }
 0x427   : > { %v1385_v33 = vrot.slane %v1384_v8, 2 }
 0x429   : > { %v1386_v34 = vadd.f32 %v1385_v33, %v1384_v8 }
 0x42b   : > { %v1387_v63 = vrot.slane %v1386_v34, 1 }
 0x42d   : > { %v1388_v12 = vadd.f32 %v1387_v63, %v1386_v34 }
 0x42f   : > { %v1389_v23 = vmul.f32 0.0078125, %v1388_v12 }
 0x431   : > { %v6979_v50 = vsub.f32 %v6925_v37, %v1389_v23  ;;  %v6982_v57 = vsub.f32 %v6929_v6, %v1389_v23  ;;  %v6985_v38 = vsub.f32 %v6927_v32, %v1389_v23  ;;  %v6988_v44 = vsub.f32 %v6933_v39, %v1389_v23  ;;  %v7002_v6 = vpop.permute.xlu0 %1511 }
 0x432   : > { %v6991_v19 = vsub.f32 %v6941_v61, %v1389_v23  ;;  %v6994_v13 = vsub.f32 %v6947_v9, %v1389_v23  ;;  %v6997_v3 = vsub.f32 %v6943_v52, %v1389_v23  ;;  %v7000_v37 = vsub.f32 %v6949_v51, %v1389_v23 }
 0x433   : > { %v7004_v4 = vsub.f32 %v1322_v60, %v1389_v23  ;;  %v7006_v32 = vsub.f32 %v1325_v30, %v1389_v23  ;;  %v7008_v39 = vsub.f32 %v1330_v20, %v1389_v23  ;;  %v7010_v45 = vsub.f32 %v1333_v5, %v1389_v23 }
 0x434   : > { %v7012_v61 = vsub.f32 %v1338_v49, %v1389_v23  ;;  %v7014_v9 = vsub.f32 %v1341_v17, %v1389_v23  ;;  %v7016_v18 = vsub.f32 %v1346_v35, %v1389_v23  ;;  %v7018_v52 = vsub.f32 %v1349_v40, %v1389_v23  ;;  %v7050_v35 = vpop.permute.xlu1 %1628 }
 0x435   : > { %v1406_v51 = vmul.f32 %v6979_v50, %v6979_v50  ;;  %v1407_v60 = vmul.f32 %v6982_v57, %v6982_v57  ;;  %v1408_v20 = vmul.f32 %v6985_v38, %v6985_v38  ;;  %v7028_v22 = vpop.permute.xlu0 %1623  ;;  %v1409_v30 = vmul.f32 %v6988_v44, %v6988_v44 }
 0x436   : > { %v1410_v26 = vmul.f32 %v6991_v19, %v6991_v19  ;;  %v1411_v1 = vmul.f32 %v6994_v13, %v6994_v13  ;;  %v1412_v49 = vmul.f32 %v6997_v3, %v6997_v3  ;;  %v1413_v21 = vmul.f32 %v7000_v37, %v7000_v37 }
 0x437   : > { %v1422_v0 = vsel %vm479_vm0, %v1406_v51, 0.0  ;;  %v1423_v55 = vsel %vm479_vm0, %v1407_v60, 0.0  ;;  %v1425_v16 = vsel %vm479_vm0, %v1408_v20, 0.0  ;;  %v1427_v41 = vsel %vm479_vm0, %v1409_v30, 0.0 }
 0x438   : > { %v1424_v5 = vadd.f32 %v1423_v55, %v1422_v0  ;;  %v1429_v42 = vsel %vm479_vm0, %v1410_v26, 0.0  ;;  %v1431_v54 = vsel %vm479_vm0, %v1411_v1, 0.0  ;;  %v1414_v43 = vmul.f32 %v7004_v4, %v7004_v4  ;;  %v7063_v53 = vpop.permute.xlu1 %1526 }
 0x439   : > { %v7042_v15 = vpop.permute.xlu0 %1521  ;;  %v1433_v17 = vsel %vm479_vm0, %v1412_v49, 0.0  ;;  %v1415_v40 = vmul.f32 %v7006_v32, %v7006_v32  ;;  %v1435_v46 = vsel %vm479_vm0, %v1413_v21, 0.0  ;;  %v1416_v10 = vmul.f32 %v7008_v39, %v7008_v39 }
 0x43a   : > { %v1426_v25 = vadd.f32 %v1425_v16, %v1424_v5  ;;  %v1437_v48 = vsel %vm479_vm0, %v1414_v43, 0.0  ;;  %v1417_v59 = vmul.f32 %v7010_v45, %v7010_v45  ;;  %v1418_v63 = vmul.f32 %v7012_v61, %v7012_v61 }
 0x43b   : > { %v1439_v8 = vsel %vm479_vm0, %v1415_v40, 0.0  ;;  %v1441_v12 = vsel %vm479_vm0, %v1416_v10, 0.0  ;;  %v1419_v51 = vmul.f32 %v7014_v9, %v7014_v9  ;;  %v1420_v0 = vmul.f32 %v7016_v18, %v7016_v18 }
 0x43c   : > { %v1428_v14 = vadd.f32 %v1427_v41, %v1426_v25  ;;  %v1443_v60 = vsel %vm479_vm0, %v1417_v59, 0.0  ;;  %v1639_v30 = vpop.permute.xlu1 %1638  ;;  %v1445_v55 = vsel %vm479_vm0, %v1418_v63, 0.0  ;;  %v1421_v16 = vmul.f32 %v7018_v52, %v7018_v52 }
 0x43d   : > { %v7055_v31 = vpop.permute.xlu0 %1633  ;;  %v1447_v25 = vsel %vm479_vm0, %v1419_v51, 0.0  ;;  %v1449_v41 = vsel %vm479_vm0, %v1420_v0, 0.0 }
 0x43e   : > { %v1430_v36 = vadd.f32 %v1429_v42, %v1428_v14  ;;  %v1451_v42 = vsel %vm479_vm0, %v1421_v16, 0.0 }
 0x440   : > { %v1432_v58 = vadd.f32 %v1431_v54, %v1430_v36  ;;  %v1537_v49 = vpop.permute.xlu1 %1536 }
 0x441   : > { %v7068_v34 = vpop.permute.xlu0 %1531 }
 0x442   : > { %v1434_v29 = vadd.f32 %v1433_v17, %v1432_v58 }
 0x444   : > { %v1436_v2 = vadd.f32 %v1435_v46, %v1434_v29  ;;  %v7084_v43 = vpop.permute.xlu1 %1648 }
 0x445   : > { %v1644_v26 = vpop.permute.xlu0 %1643 }
 0x446   : > { %v1438_v47 = vadd.f32 %v1437_v48, %v1436_v2 }
 0x448   : > { %v1440_v33 = vadd.f32 %v1439_v8, %v1438_v47  ;;  %v1547_v2 = vpop.permute.xlu1 %1546 }
 0x449   : > { %v1542_v21 = vpop.permute.xlu0 %1541 }
 0x44a   : > { %v1442_v23 = vadd.f32 %v1441_v12, %v1440_v33 }
 0x44c   : > { %v1444_v20 = vadd.f32 %v1443_v60, %v1442_v23  ;;  %v1659_v8 = vpop.permute.xlu1 %1658 }
 0x44d   : > { %v1654_v29 = vpop.permute.xlu0 %1653 }
 0x44e   : > { %v1446_v5 = vadd.f32 %v1445_v55, %v1444_v20 }
 0x450   : > { %v1448_v1 = vadd.f32 %v1447_v25, %v1446_v5  ;;  %v1557_v63 = vpop.permute.xlu1 %1556 }
 0x451   : > { %v1552_v48 = vpop.permute.xlu0 %1551 }
 0x452   : > { %v1450_v14 = vadd.f32 %v1449_v41, %v1448_v1 }
 0x454   : > { %v1452_v36 = vadd.f32 %v1451_v42, %v1450_v14  ;;  %v1669_v51 = vpop.permute.xlu1 %1668 }
 0x455   : > { %v1664_v33 = vpop.permute.xlu0 %1663 }
 0x456   : > { %v1453_v54 = vrot.slane %v1452_v36, 4 }
 0x458   : > { %v1454_v58 = vadd.f32 %v1453_v54, %v1452_v36  ;;  %v1567_v54 = vpop.permute.xlu1 %1566 }
 0x459   : > { %v1562_v12 = vpop.permute.xlu0 %1561 }
 0x45a   : > { %v1455_v17 = vrot.slane %v1454_v58, 2 }
 0x45c   : > { %v1456_v40 = vadd.f32 %v1455_v17, %v1454_v58 }
 0x45d   : > { %v1674_v41 = vpop.permute.xlu0 %1673 }
 0x45e   : > { %v1457_v46 = vrot.slane %v1456_v40, 1 }
 0x460   : > { %v1458_v10 = vadd.f32 %v1457_v46, %v1456_v40 }
 0x461   : > { %v1572_v40 = vpop.permute.xlu0 %1571 }
 0x462   : > { %v1459_v47 = vmul.f32 0.0078125, %v1458_v10 }
 0x464   : > { %v1460_v59 = vadd.f32 1e-05, %v1459_v47 }
 0x466   : > { %5765 = vrsqrt.f32 %v1460_v59 }
 0x470   : > { %v5766_v23 = vpop.eup %5765 }
 0x471   : > { %v1475_v60 = vmul.f32 %v5766_v23, %v7014_v9  ;;  %v1462_v20 = vmul.f32 %v5766_v23, %v6979_v50  ;;  %v1463_v0 = vmul.f32 %v5766_v23, %v6982_v57  ;;  %v1464_v55 = vmul.f32 %v5766_v23, %v6985_v38 }
 0x472   : > { %v1465_v5 = vmul.f32 %v5766_v23, %v6988_v44  ;;  %v1466_v16 = vmul.f32 %v5766_v23, %v6991_v19  ;;  %v1467_v25 = vmul.f32 %v5766_v23, %v6994_v13  ;;  %v1468_v1 = vmul.f32 %v5766_v23, %v6997_v3 }
 0x473   : > { %v1587_v14 = vmul.f32 %v1562_v12, %v1475_v60  ;;  %v1574_v42 = vmul.f32 %v6968_v28, %v1462_v20  ;;  %v1575_v9 = vmul.f32 %v6970_v7, %v1463_v0  ;;  %v1576_v50 = vmul.f32 %v6976_v24, %v1464_v55  ;;  %v1679_v12 = vpop.permute.xlu1 %1678  ;;  %v1684_v0 = vpop.permute.xlu0 %1683 }
 0x474   : > { %v1577_v57 = vmul.f32 %v7002_v6, %v1465_v5  ;;  %v1578_v38 = vmul.f32 %v7037_v11, %v1466_v16  ;;  %v1579_v44 = vmul.f32 %v7042_v15, %v1467_v25  ;;  %v1469_v19 = vmul.f32 %v5766_v23, %v7000_v37  ;;  %v5740_v16 = vld [vmem:[%s8173_s7 + $0x48] sm:$0xff]   ;;  %v5741_v25 = vld [vmem:[%s8173_s7 + $0x50] sm:$0xff]  }
 0x475   : > { %v1686_v13 = vadd.f32 %v6972_v62, %v1574_v42  ;;  %v1687_v3 = vadd.f32 %v6974_v27, %v1575_v9  ;;  %v1688_v36 = vadd.f32 %v7024_v56, %v1576_v50  ;;  %v1580_v28 = vmul.f32 %v7063_v53, %v1468_v1  ;;  %v5742_v1 = vld [vmem:[%s8173_s7 + $0x58] sm:$0xff]   ;;  %v5745_v42 = vld [vmem:[%s8173_s7 + $0x70] sm:$0xff]  }
 0x476   : > { %v1689_v7 = vadd.f32 %v7028_v22, %v1577_v57  ;;  %v1690_v24 = vadd.f32 %v7050_v35, %v1578_v38  ;;  %v1691_v6 = vadd.f32 %v7055_v31, %v1579_v44  ;;  %v1581_v11 = vmul.f32 %v7068_v34, %v1469_v19  ;;  %v5746_v9 = vld [vmem:[%s8173_s7 + $0x78] sm:$0xff]  }
 0x477   : > { %v1702_v15 = vpack.c.bf16 %v1687_v3, %v1686_v13  ;;  %v1692_v58 = vadd.f32 %v1639_v30, %v1580_v28  ;;  %v1470_v37 = vmul.f32 %v5766_v23, %v7004_v4  ;;  %v1471_v62 = vmul.f32 %v5766_v23, %v7006_v32 }
 0x478   : > { %v1703_v27 = vpack.c.bf16 %v1689_v7, %v1688_v36  ;;  %v1704_v17 = vpack.c.bf16 %v1691_v6, %v1690_v24  ;;  %v1693_v56 = vadd.f32 %v1644_v26, %v1581_v11  ;;  %v1472_v53 = vmul.f32 %v5766_v23, %v7008_v39 }
 0x479   : > { %5341 = vmatprep.subr.bf16.mxu1 %v1702_v15  ;;  %v1582_v22 = vmul.f32 %v1537_v49, %v1470_v37  ;;  %v1583_v35 = vmul.f32 %v1542_v21, %v1471_v62  ;;  %v1473_v31 = vmul.f32 %v5766_v23, %v7010_v45  ;;  %v1474_v34 = vmul.f32 %v5766_v23, %v7012_v61 }
 0x47a   : > { %5342 = vmatpush3.bf16.msra.mxu1 %v1702_v15  ;;  %v1705_v46 = vpack.c.bf16 %v1693_v56, %v1692_v58  ;;  %v1584_v30 = vmul.f32 %v1547_v2, %v1472_v53  ;;  %v1699_v10 = vadd.f32 %v1674_v41, %v1587_v14  ;;  %v1476_v4 = vmul.f32 %v5766_v23, %v7016_v18  ;;  %v5743_v41 = vld [vmem:[%s8173_s7 + $0x60] sm:$0xff]   ;;  %v5744_v14 = vld [vmem:[%s8173_s7 + $0x68] sm:$0xff]  }
 0x47b   : > { %5343 = vmatprep.subr.bf16.mxu1 %v1703_v27  ;;  %v1694_v32 = vadd.f32 %v7084_v43, %v1582_v22  ;;  %v1695_v26 = vadd.f32 %v1654_v29, %v1583_v35  ;;  %v1585_v47 = vmul.f32 %v1552_v48, %v1473_v31  ;;  %v1586_v39 = vmul.f32 %v1557_v63, %v1474_v34  ;;  %v5733_v29 = vld [vmem:[%s8173_s7 + $0x10] sm:$0xff]   ;;  %v5734_v48 = vld [vmem:[%s8173_s7 + $0x18] sm:$0xff]  }
 0x47c   : > { %v1696_v59 = vadd.f32 %v1659_v8, %v1584_v30  ;;  %v1477_v49 = vmul.f32 %v5766_v23, %v7018_v52  ;;  %v1588_v21 = vmul.f32 %v1567_v54, %v1476_v4  ;;  %v5732_v52 = vld [vmem:[%s8173_s7 + $0x8] sm:$0xff]   ;;  %v5735_v8 = vld [vmem:[%s8173_s7 + $0x20] sm:$0xff]   ;;  %v5737_v63 = vld [vmem:[%s8173_s7 + $0x30] sm:$0xff]  }
 0x47d   : > { %v1706_v45 = vpack.c.bf16 %v1695_v26, %v1694_v32  ;;  %v1697_v60 = vadd.f32 %v1664_v33, %v1585_v47  ;;  %v1698_v61 = vadd.f32 %v1669_v51, %v1586_v39  ;;  %v5736_v33 = vld [vmem:[%s8173_s7 + $0x28] sm:$0xff]   ;;  %v5738_v23 = vld [vmem:[%s8173_s7 + $0x38] sm:$0xff]   ;;  %v5739_v51 = vld [vmem:[%s8173_s7 + $0x40] sm:$0xff]  }
 0x47e   : > { %5344 = vmatpush3.bf16.msra.mxu1 %v1703_v27  ;;  %v1589_v20 = vmul.f32 %v1572_v40, %v1477_v49  ;;  %v1700_v2 = vadd.f32 %v1679_v12, %v1588_v21 }
 0x47f   : > { %5345 = vmatprep.subr.bf16.mxu1 %v1704_v17  ;;  %v1707_v18 = vpack.c.bf16 %v1697_v60, %v1696_v59  ;;  %v1708_v55 = vpack.c.bf16 %v1699_v10, %v1698_v61  ;;  %v5747_v60 = vld [vmem:[%s8173_s7 + $0x80] sm:$0xff]   ;;  %v5748_v61 = vld [vmem:[%s8173_s7 + $0x88] sm:$0xff]  }
 0x480   : > { %v1701_v5 = vadd.f32 %v1684_v0, %v1589_v20  ;;  %v5749_v20 = vld [vmem:[%s8173_s7 + $0x90] sm:$0xff]   ;;  %v5751_v0 = vld [vmem:[%s8173_s7 + $0xa0] sm:$0xff]  }
 0x482   : > { %5346 = vmatpush3.bf16.msra.mxu1 %v1704_v17  ;;  %v1709_v43 = vpack.c.bf16 %v1701_v5, %v1700_v2  ;;  %v5750_v2 = vld [vmem:[%s8173_s7 + $0x98] sm:$0xff]  }
 0x483   : > { %5347 = vmatprep.subr.bf16.mxu1 %v1705_v46 }
 0x486   : > { %5348 = vmatpush3.bf16.msra.mxu1 %v1705_v46 }
 0x487   : > { %5349 = vmatprep.subr.bf16.mxu1 %v1706_v45 }
 0x48a   : > { %5350 = vmatpush3.bf16.msra.mxu1 %v1706_v45 }
 0x48b   : > { %5351 = vmatprep.subr.bf16.mxu1 %v1707_v18 }
 0x48e   : > { %5352 = vmatpush3.bf16.msra.mxu1 %v1707_v18  ;;  %v5752_v18 = vld [vmem:[%s8173_s7 + $0xa8] sm:$0xff]  }
 0x48f   : > { %5353 = vmatprep.subr.bf16.mxu1 %v1708_v55 }
 0x492   : > { %5354 = vmatpush3.bf16.msra.mxu1 %v1708_v55 }
 0x493   : > { %5355 = vmatprep.subr.bf16.mxu1 %v1709_v43 }
 0x496   : > { %5356 = vmatpush3.bf16.msra.mxu1 %v1709_v43  ;;  %v5753_v43 = vld [vmem:[%s8173_s7 + $0xb0] sm:$0xff]  }
 0x499   : > { %5358 = vmatmul.mubr.bf16.vlgmr.msra.gmra.mrb[16].mxu1 %v5732_v52  ;;  %v5754_v52 = vld [vmem:[%s8173_s7 + $0xb8] sm:$0xff]  }
 0x49a   : > { %5361 = vmatprep.mubr.bf16.mxu1 %v5733_v29 }
 0x4a1   : > { %5362 = vmatmul.mubr.bf16.gmra.mrb[20].mxu1 %v5734_v48 }
 0x4a2   : > { %5365 = vmatprep.mubr.bf16.mxu1 %v5735_v8 }
 0x4a9   : > { %5366 = vmatmul.mubr.bf16.gmra.mrb[24].mxu1 %v5736_v33 }
 0x4aa   : > { %5369 = vmatprep.mubr.bf16.mxu1 %v5737_v63 }
 0x4b1   : > { %5370 = vmatmul.mubr.bf16.gmra.mrb[28].mxu1 %v5738_v23 }
 0x4b2   : > { %5373 = vmatprep.mubr.bf16.mxu1 %v5739_v51 }
 0x4b9   : > { %5374 = vmatmul.mubr.bf16.gmra.mrb[32].mxu1 %v5740_v16 }
 0x4ba   : > { %5377 = vmatprep.mubr.bf16.mxu1 %v5741_v25 }
 0x4c1   : > { %5378 = vmatmul.mubr.bf16.gmra.mrb[36].mxu1 %v5742_v1 }
 0x4c2   : > { %5381 = vmatprep.mubr.bf16.mxu1 %v5743_v41 }
 0x4c9   : > { %5382 = vmatmul.mubr.bf16.gmra.mrb[40].mxu1 %v5744_v14 }
 0x4ca   : > { %5385 = vmatprep.mubr.bf16.mxu1 %v5745_v42 }
 0x4d1   : > { %5386 = vmatmul.mubr.bf16.gmra.mrb[44].mxu1 %v5746_v9 }
 0x4d2   : > { %5389 = vmatprep.mubr.bf16.mxu1 %v5747_v60 }
 0x4d9   : > { %5390 = vmatmul.mubr.bf16.gmra.mrb[48].mxu1 %v5748_v61 }
 0x4da   : > { %5393 = vmatprep.mubr.bf16.mxu1 %v5749_v20 }
 0x4e1   : > { %5394 = vmatmul.mubr.bf16.gmra.mrb[52].mxu1 %v5750_v2 }
 0x4e2   : > { %5397 = vmatprep.mubr.bf16.mxu1 %v5751_v0 }
 0x4e9   : > { %5398 = vmatmul.mubr.bf16.gmra.mrb[56].mxu1 %v5752_v18 }
 0x4ea   : > { %5401 = vmatprep.mubr.bf16.mxu1 %v5753_v43 }
 0x4f1   : > { %5402 = vmatmul.mubr.bf16.gmra.mrb[60].mxu1 %v5754_v52 }
 0x56c   : > { %v5359_v50 = vpop.f32.mrb[16].mxu1 }
 0x56d   : > { %2175 = vxpose.xlu0.b32.start [1/2] (short) (narrow) %v5359_v50, 64  ;;  %v1936_v57 = vpop.f32.mrb[17].mxu1 }
 0x56e   : > { %2143 = vxpose.xlu1.b32.start [1/2] (short) (narrow) %v1936_v57, 64  ;;  %v5360_v38 = vpop.f32.mrb[18].mxu1 }
 0x56f   : > { %v1939_v44 = vpop.f32.mrb[19].mxu1 }
 0x571   : > { %2176 = vxpose.xlu0.b32.end [2/2] (short) (narrow) %v5360_v38, 64 }
 0x572   : > { %2144 = vxpose.xlu1.b32.end [2/2] (short) (narrow) %v1939_v44, 64 }
 0x574   : > { %v5363_v19 = vpop.f32.mrb[20].mxu1 }
 0x575   : > { %v1952_v13 = vpop.f32.mrb[21].mxu1 }
 0x576   : > { %v5364_v3 = vpop.f32.mrb[22].mxu1 }
 0x577   : > { %v1955_v36 = vpop.f32.mrb[23].mxu1 }
 0x57c   : > { %v5367_v28 = vpop.f32.mrb[24].mxu1 }
 0x57d   : > { %v1968_v7 = vpop.f32.mrb[25].mxu1 }
 0x57e   : > { %v5368_v24 = vpop.f32.mrb[26].mxu1 }
 0x57f   : > { %v1971_v6 = vpop.f32.mrb[27].mxu1 }
 0x584   : > { %v5371_v11 = vpop.f32.mrb[28].mxu1 }
 0x585   : > { %v1984_v54 = vpop.f32.mrb[29].mxu1 }
 0x586   : > { %v5372_v15 = vpop.f32.mrb[30].mxu1 }
 0x587   : > { %v1987_v58 = vpop.f32.mrb[31].mxu1 }
 0x58a   : > { %2207 = vxpose.xlu0.b32.start [1/2] (short) (narrow) %v1952_v13, 64 }
 0x58b   : > { %2239 = vxpose.xlu1.b32.start [1/2] (short) (narrow) %v5363_v19, 64 }
 0x58c   : > { %v5375_v37 = vpop.f32.mrb[32].mxu1 }
 0x58d   : > { %v2000_v62 = vpop.f32.mrb[33].mxu1 }
 0x58e   : > { %2208 = vxpose.xlu0.b32.end [2/2] (short) (narrow) %v1955_v36, 64  ;;  %v5376_v27 = vpop.f32.mrb[34].mxu1 }
 0x58f   : > { %2240 = vxpose.xlu1.b32.end [2/2] (short) (narrow) %v5364_v3, 64  ;;  %v7162_v17 = vpack.c.bf16 %v5376_v27, %v5375_v37  ;;  %v2003_v56 = vpop.f32.mrb[35].mxu1 }
 0x590   : > { %v2127_v53 = vpack.c.bf16 %v2003_v56, %v2000_v62 }
 0x592   : > { %5405 = vmatprep.subr.bf16.mxu0 %v2127_v53 }
 0x593   : > { %5406 = vmatpush3.bf16.msra.mxu0 %v2127_v53 }
 0x594   : > { %5415 = vmatprep.subr.bf16.mxu0 %v7162_v17  ;;  %v5379_v40 = vpop.f32.mrb[36].mxu1 }
 0x595   : > { %v2016_v22 = vpop.f32.mrb[37].mxu1 }
 0x596   : > { %v5380_v35 = vpop.f32.mrb[38].mxu1 }
 0x597   : > { %v7165_v31 = vpack.c.bf16 %v5380_v35, %v5379_v40  ;;  %v2019_v34 = vpop.f32.mrb[39].mxu1 }
 0x598   : > { %v7167_v46 = vpack.c.bf16 %v2019_v34, %v2016_v22 }
 0x59c   : > { %v5383_v30 = vpop.f32.mrb[40].mxu1 }
 0x59d   : > { %v2032_v10 = vpop.f32.mrb[41].mxu1 }
 0x59e   : > { %v5384_v4 = vpop.f32.mrb[42].mxu1 }
 0x59f   : > { %v7169_v32 = vpack.c.bf16 %v5384_v4, %v5383_v30  ;;  %v2035_v26 = vpop.f32.mrb[43].mxu1 }
 0x5a0   : > { %v7171_v47 = vpack.c.bf16 %v2035_v26, %v2032_v10 }
 0x5a4   : > { %v5387_v39 = vpop.f32.mrb[44].mxu1 }
 0x5a5   : > { %v2048_v59 = vpop.f32.mrb[45].mxu1 }
 0x5a6   : > { %v5388_v49 = vpop.f32.mrb[46].mxu1 }
 0x5a7   : > { %2271 = vxpose.xlu0.b32.start [1/2] (short) (narrow) %v1968_v7, 64  ;;  %v7173_v21 = vpack.c.bf16 %v5388_v49, %v5387_v39  ;;  %v2051_v12 = vpop.f32.mrb[47].mxu1 }
 0x5a8   : > { %2303 = vxpose.xlu1.b32.start [1/2] (short) (narrow) %v5367_v28, 64  ;;  %v7175_v45 = vpack.c.bf16 %v2051_v12, %v2048_v59 }
 0x5a9   : > { %5597 = vmatprep.subr.bf16.mxu1 %v7173_v21 }
 0x5aa   : > { %5598 = vmatpush3.bf16.msra.mxu1 %v7173_v21 }
 0x5ab   : > { %2272 = vxpose.xlu0.b32.end [2/2] (short) (narrow) %v1971_v6, 64 }
 0x5ac   : > { %2304 = vxpose.xlu1.b32.end [2/2] (short) (narrow) %v5368_v24, 64 }
 0x5c4   : > { %2335 = vxpose.xlu0.b32.start [1/2] (short) (narrow) %v1984_v54, 64 }
 0x5c5   : > { %2367 = vxpose.xlu1.b32.start [1/2] (short) (narrow) %v5371_v11, 64 }
 0x5c8   : > { %2336 = vxpose.xlu0.b32.end [2/2] (short) (narrow) %v1987_v58, 64 }
 0x5c9   : > { %2368 = vxpose.xlu1.b32.end [2/2] (short) (narrow) %v5372_v15, 64 }
 0x5ed   : > { %v2191_v55 = vpop.trf.xlu0 }
 0x5ee   : > { %v2159_v5 = vpop.trf.xlu1 }
 0x5f1   : > { %v2192_v29 = vpop.trf.xlu0 }
 0x5f2   : > { %v2160_v48 = vpop.trf.xlu1  ;;  %v2403_v19 = vpack.c.bf16 %v2192_v29, %v2191_v55 }
 0x5f3   : > { %v2399_v8 = vpack.c.bf16 %v2160_v48, %v2159_v5 }
 0x5f5   : > { %v2193_v33 = vpop.trf.xlu0  ;;  %5407 = vmatprep.mubr.msk.bf16.mxu0 %vm2431_vm6, %v2399_v8 }
 0x5f6   : > { %v2161_v63 = vpop.trf.xlu1 }
 0x5f9   : > { %v2194_v23 = vpop.trf.xlu0 }
 0x5fa   : > { %v2162_v51 = vpop.trf.xlu1  ;;  %v2404_v7 = vpack.c.bf16 %v2194_v23, %v2193_v33 }
 0x5fb   : > { %v2400_v16 = vpack.c.bf16 %v2162_v51, %v2161_v63 }
 0x5fd   : > { %v2195_v25 = vpop.trf.xlu0  ;;  %5408 = vmatmul.mubr.msk.bf16.vlgmr.msra.gmra.mrb[0].mxu0 %vm2431_vm6, %v2400_v16 }
 0x5fe   : > { %v2163_v1 = vpop.trf.xlu1  ;;  %5416 = vmatpush3.bf16.msra.mxu0 %v7162_v17 }
 0x5ff   : > { %5425 = vmatprep.subr.bf16.mxu0 %v7167_v46 }
 0x601   : > { %v2196_v41 = vpop.trf.xlu0 }
 0x602   : > { %v2164_v14 = vpop.trf.xlu1  ;;  %v2405_v24 = vpack.c.bf16 %v2196_v41, %v2195_v25 }
 0x603   : > { %v2401_v42 = vpack.c.bf16 %v2164_v14, %v2163_v1 }
 0x605   : > { %v2197_v9 = vpop.trf.xlu0  ;;  %5411 = vmatprep.mubr.msk.bf16.mxu0 %vm2431_vm6, %v2401_v42 }
 0x606   : > { %v2165_v50 = vpop.trf.xlu1 }
 0x609   : > { %v2198_v57 = vpop.trf.xlu0 }
 0x60a   : > { %v2166_v38 = vpop.trf.xlu1  ;;  %v2406_v58 = vpack.c.bf16 %v2198_v57, %v2197_v9 }
 0x60b   : > { %v2402_v44 = vpack.c.bf16 %v2166_v38, %v2165_v50 }
 0x60d   : > { %v2223_v13 = vpop.trf.xlu0  ;;  %5412 = vmatmul.mubr.msk.bf16.gmra.mrb[4].mxu0 %vm2431_vm6, %v2402_v44 }
 0x60e   : > { %5417 = vmatprep.mubr.msk.bf16.mxu0 %vm2431_vm6, %v2403_v19  ;;  %v2255_v3 = vpop.trf.xlu1 }
 0x611   : > { %v2224_v36 = vpop.trf.xlu0 }
 0x612   : > { %v2256_v28 = vpop.trf.xlu1  ;;  %v2407_v37 = vpack.c.bf16 %v2224_v36, %v2223_v13 }
 0x613   : > { %v2411_v10 = vpack.c.bf16 %v2256_v28, %v2255_v3 }
 0x615   : > { %v2225_v6 = vpop.trf.xlu0  ;;  %5418 = vmatmul.mubr.msk.bf16.vlgmr.msra.gmra.mrb[8].mxu0 %vm2431_vm6, %v2404_v7 }
 0x616   : > { %5426 = vmatpush3.bf16.msra.mxu0 %v7167_v46  ;;  %5421 = vmatprep.mubr.msk.bf16.mxu0 %vm2431_vm6, %v2405_v24  ;;  %v2257_v11 = vpop.trf.xlu1 }
 0x617   : > { %5435 = vmatprep.subr.bf16.mxu0 %v7165_v31 }
 0x619   : > { %v2226_v54 = vpop.trf.xlu0 }
 0x61a   : > { %v2258_v15 = vpop.trf.xlu1  ;;  %v2408_v53 = vpack.c.bf16 %v2226_v54, %v2225_v6 }
 0x61b   : > { %v2412_v49 = vpack.c.bf16 %v2258_v15, %v2257_v11 }
 0x61d   : > { %v2227_v62 = vpop.trf.xlu0  ;;  %5422 = vmatmul.mubr.msk.bf16.gmra.mrb[12].mxu0 %vm2431_vm6, %v2406_v58 }
 0x61e   : > { %5427 = vmatprep.mubr.msk.bf16.mxu0 %vm2431_vm6, %v2407_v37  ;;  %v2259_v27 = vpop.trf.xlu1 }
 0x621   : > { %v2228_v17 = vpop.trf.xlu0 }
 0x622   : > { %v2260_v56 = vpop.trf.xlu1  ;;  %v2409_v40 = vpack.c.bf16 %v2228_v17, %v2227_v62  ;;  %v5391_v62 = vpop.f32.mrb[48].mxu1 }
 0x623   : > { %v2413_v12 = vpack.c.bf16 %v2260_v56, %v2259_v27  ;;  %v2064_v27 = vpop.f32.mrb[49].mxu1 }
 0x625   : > { %v2229_v22 = vpop.trf.xlu0  ;;  %5428 = vmatmul.mubr.msk.bf16.vlgmr.msra.gmra.mrb[16].mxu0 %vm2431_vm6, %v2408_v53 }
 0x626   : > { %5436 = vmatpush3.bf16.msra.mxu0 %v7165_v31  ;;  %5431 = vmatprep.mubr.msk.bf16.mxu0 %vm2431_vm6, %v2409_v40  ;;  %v2261_v35 = vpop.trf.xlu1 }
 0x627   : > { %5445 = vmatprep.subr.bf16.mxu0 %v7171_v47 }
 0x629   : > { %v2230_v34 = vpop.trf.xlu0 }
 0x62a   : > { %v2410_v46 = vpack.c.bf16 %v2230_v34, %v2229_v22  ;;  %v2262_v30 = vpop.trf.xlu1 }
 0x62b   : > { %v2414_v2 = vpack.c.bf16 %v2262_v30, %v2261_v35 }
 0x62d   : > { %v2287_v4 = vpop.trf.xlu0  ;;  %5432 = vmatmul.mubr.msk.bf16.gmra.mrb[20].mxu0 %vm2431_vm6, %v2410_v46 }
 0x62e   : > { %5437 = vmatprep.mubr.msk.bf16.mxu0 %vm2431_vm6, %v2411_v10  ;;  %v2319_v26 = vpop.trf.xlu1 }
 0x631   : > { %v2288_v39 = vpop.trf.xlu0 }
 0x632   : > { %v2320_v59 = vpop.trf.xlu1  ;;  %v2415_v0 = vpack.c.bf16 %v2288_v39, %v2287_v4 }
 0x633   : > { %v2419_v23 = vpack.c.bf16 %v2320_v59, %v2319_v26 }
 0x635   : > { %v2289_v31 = vpop.trf.xlu0  ;;  %5438 = vmatmul.mubr.msk.bf16.vlgmr.msra.gmra.mrb[24].mxu0 %vm2431_vm6, %v2412_v49 }
 0x636   : > { %5446 = vmatpush3.bf16.msra.mxu0 %v7171_v47  ;;  %5441 = vmatprep.mubr.msk.bf16.mxu0 %vm2431_vm6, %v2413_v12  ;;  %v2321_v60 = vpop.trf.xlu1 }
 0x637   : > { %5455 = vmatprep.subr.bf16.mxu0 %v7169_v32 }
 0x639   : > { %v2290_v61 = vpop.trf.xlu0 }
 0x63a   : > { %v2322_v20 = vpop.trf.xlu1  ;;  %v2416_v52 = vpack.c.bf16 %v2290_v61, %v2289_v31 }
 0x63b   : > { %v2420_v41 = vpack.c.bf16 %v2322_v20, %v2321_v60 }
 0x63d   : > { %v2291_v18 = vpop.trf.xlu0  ;;  %5442 = vmatmul.mubr.msk.bf16.gmra.mrb[28].mxu0 %vm2431_vm6, %v2414_v2 }
 0x63e   : > { %5447 = vmatprep.mubr.msk.bf16.mxu0 %vm2431_vm6, %v2415_v0  ;;  %v2323_v55 = vpop.trf.xlu1 }
 0x641   : > { %v2292_v5 = vpop.trf.xlu0 }
 0x642   : > { %v2324_v43 = vpop.trf.xlu1  ;;  %v2417_v29 = vpack.c.bf16 %v2292_v5, %v2291_v18 }
 0x643   : > { %v2421_v14 = vpack.c.bf16 %v2324_v43, %v2323_v55 }
 0x645   : > { %v2293_v47 = vpop.trf.xlu0  ;;  %5448 = vmatmul.mubr.msk.bf16.vlgmr.msra.gmra.mrb[32].mxu0 %vm2431_vm6, %v2416_v52 }
 0x646   : > { %5456 = vmatpush3.bf16.msra.mxu0 %v7169_v32  ;;  %5451 = vmatprep.mubr.msk.bf16.mxu0 %vm2431_vm6, %v2417_v29  ;;  %v2325_v48 = vpop.trf.xlu1 }
 0x647   : > { %5465 = vmatprep.subr.bf16.mxu0 %v7175_v45 }
 0x649   : > { %v2294_v8 = vpop.trf.xlu0 }
 0x64a   : > { %v2418_v33 = vpack.c.bf16 %v2294_v8, %v2293_v47  ;;  %v2326_v63 = vpop.trf.xlu1 }
 0x64b   : > { %v2422_v57 = vpack.c.bf16 %v2326_v63, %v2325_v48 }
 0x64d   : > { %v2351_v51 = vpop.trf.xlu0  ;;  %5452 = vmatmul.mubr.msk.bf16.gmra.mrb[36].mxu0 %vm2431_vm6, %v2418_v33 }
 0x64e   : > { %5457 = vmatprep.mubr.msk.bf16.mxu0 %vm2431_vm6, %v2419_v23  ;;  %v2383_v16 = vpop.trf.xlu1 }
 0x651   : > { %v2352_v25 = vpop.trf.xlu0 }
 0x652   : > { %v2384_v1 = vpop.trf.xlu1  ;;  %v2423_v38 = vpack.c.bf16 %v2352_v25, %v2351_v51 }
 0x653   : > { %v2427_v58 = vpack.c.bf16 %v2384_v1, %v2383_v16 }
 0x655   : > { %v2353_v32 = vpop.trf.xlu0  ;;  %5458 = vmatmul.mubr.msk.bf16.vlgmr.msra.gmra.mrb[40].mxu0 %vm2431_vm6, %v2420_v41 }
 0x656   : > { %5466 = vmatpush3.bf16.msra.mxu0 %v7175_v45  ;;  %5461 = vmatprep.mubr.msk.bf16.mxu0 %vm2431_vm6, %v2421_v14  ;;  %v2385_v42 = vpop.trf.xlu1 }
 0x657   : > { %5475 = vmatprep.subr.bf16.mxu0 %v7173_v21 }
 0x659   : > { %v2354_v9 = vpop.trf.xlu0 }
 0x65a   : > { %v2386_v50 = vpop.trf.xlu1  ;;  %v2424_v36 = vpack.c.bf16 %v2354_v9, %v2353_v32 }
 0x65b   : > { %v2428_v37 = vpack.c.bf16 %v2386_v50, %v2385_v42 }
 0x65d   : > { %v2355_v44 = vpop.trf.xlu0  ;;  %5462 = vmatmul.mubr.msk.bf16.gmra.mrb[44].mxu0 %vm2431_vm6, %v2422_v57 }
 0x65e   : > { %5467 = vmatprep.mubr.msk.bf16.mxu0 %vm2431_vm6, %v2423_v38  ;;  %v2387_v19 = vpop.trf.xlu1 }
 0x661   : > { %v2356_v13 = vpop.trf.xlu0 }
 0x662   : > { %v2388_v3 = vpop.trf.xlu1  ;;  %v2425_v45 = vpack.c.bf16 %v2356_v13, %v2355_v44 }
 0x663   : > { %v2429_v28 = vpack.c.bf16 %v2388_v3, %v2387_v19 }
 0x665   : > { %v2357_v7 = vpop.trf.xlu0  ;;  %5468 = vmatmul.mubr.msk.bf16.vlgmr.msra.gmra.mrb[48].mxu0 %vm2431_vm6, %v2424_v36  ;;  %5481 = vmatprep.mubr.msk.bf16.mxu1 %vm2431_vm6, %v2429_v28 }
 0x666   : > { %5476 = vmatpush3.bf16.msra.mxu0 %v7173_v21  ;;  %5471 = vmatprep.mubr.msk.bf16.mxu0 %vm2431_vm6, %v2425_v45  ;;  %v2389_v24 = vpop.trf.xlu1  ;;  %v5392_v21 = vpop.f32.mrb[50].mxu1 }
 0x667   : > { %v2136_v17 = vpack.c.bf16 %v5392_v21, %v5391_v62  ;;  %v2067_v56 = vpop.f32.mrb[51].mxu1 }
 0x668   : > { %v2135_v53 = vpack.c.bf16 %v2067_v56, %v2064_v27  ;;  %v5395_v35 = vpop.f32.mrb[52].mxu1 }
 0x669   : > { %v2358_v6 = vpop.trf.xlu0  ;;  %v3749_v40 = vsel %vm479_vm0, %v2136_v17, 0  ;;  %5600 = vmatprep.subr.msk.bf16.mxu1 %vm479_vm0, %v2136_v17  ;;  %v2080_v34 = vpop.f32.mrb[53].mxu1 }
 0x66a   : > { %v2426_v11 = vpack.c.bf16 %v2358_v6, %v2357_v7  ;;  %v2390_v54 = vpop.trf.xlu1  ;;  %v3669_v22 = vsel %vm479_vm0, %v2135_v53, 0  ;;  %5599 = vmatprep.subr.msk.bf16.mxu0 %vm479_vm0, %v2135_v53  ;;  %v5396_v46 = vpop.f32.mrb[54].mxu1 }
 0x66b   : > { %v2430_v15 = vpack.c.bf16 %v2390_v54, %v2389_v24  ;;  %v7252_v30 = vpack.c.bf16 %v5396_v46, %v5395_v35  ;;  %v2083_v10 = vpop.f32.mrb[55].mxu1 }
 0x66c   : > { %v7254_v4 = vpack.c.bf16 %v2083_v10, %v2080_v34  ;;  %v5399_v26 = vpop.f32.mrb[56].mxu1 }
 0x66d   : > { %5472 = vmatmul.mubr.msk.bf16.gmra.mrb[52].mxu0 %vm2431_vm6, %v2426_v11  ;;  %5482 = vmatmul.mubr.msk.bf16.vlgmr.msra.gmra.mrb[64].mxu1 %vm2431_vm6, %v2430_v15  ;;  %v2096_v39 = vpop.f32.mrb[57].mxu1 }
 0x66e   : > { %5477 = vmatprep.mubr.msk.bf16.mxu0 %vm2431_vm6, %v2427_v58  ;;  %5496 = vmatpush3.bf16.xpose.msra.mxu1 %v3749_v40  ;;  %v5400_v59 = vpop.f32.mrb[58].mxu1 }
 0x66f   : > { %5602 = vmatprep.subr.msk.bf16.mxu1 %vm479_vm0, %v7252_v30  ;;  %v7260_v49 = vpack.c.bf16 %v5400_v59, %v5399_v26  ;;  %v2099_v12 = vpop.f32.mrb[59].mxu1 }
 0x670   : > { %v7262_v31 = vpack.c.bf16 %v2099_v12, %v2096_v39  ;;  %v5403_v60 = vpop.f32.mrb[60].mxu1 }
 0x671   : > { %v2112_v61 = vpop.f32.mrb[61].mxu1 }
 0x672   : > { %v5404_v20 = vpop.f32.mrb[62].mxu1 }
 0x673   : > { %v7264_v2 = vpack.c.bf16 %v5404_v20, %v5403_v60  ;;  %v2115_v0 = vpop.f32.mrb[63].mxu1 }
 0x674   : > { %v7266_v18 = vpack.c.bf16 %v2115_v0, %v2112_v61 }
 0x675   : > { %5478 = vmatmul.mubr.msk.bf16.vlgmr.msra.gmra.mrb[56].mxu0 %vm2431_vm6, %v2428_v37 }
 0x676   : > { %5486 = vmatpush3.bf16.xpose.msra.mxu0 %v3669_v22 }
 0x677   : > { %5601 = vmatprep.subr.msk.bf16.mxu0 %vm479_vm0, %v7254_v4 }
 0x6d0   : > { %v7268_v55 = vpop.f32.mrb[0].mxu0 }
 0x6d1   : > { %v7270_v5 = vpop.f32.mrb[1].mxu0  ;;  %v3054_v43 = vsel %vm479_vm0, %v7268_v55, -inf }
 0x6d2   : > { %3055 = vmax.xlane.f32.xlu0 %v3054_v43  ;;  %v7274_v52 = vpop.f32.mrb[2].mxu0  ;;  %v3048_v48 = vsel %vm479_vm0, %v7270_v5, -inf }
 0x6d3   : > { %v7276_v29 = vpop.f32.mrb[3].mxu0  ;;  %v3057_v47 = vsel %vm479_vm0, %v7274_v52, -inf }
 0x6d4   : > { %3058 = vmax.xlane.f32.xlu1 %v3057_v47  ;;  %v3051_v8 = vsel %vm479_vm0, %v7276_v29, -inf }
 0x6d6   : > { %3049 = vmax.xlane.f32.xlu0 %v3048_v48 }
 0x6d8   : > { %3052 = vmax.xlane.f32.xlu1 %v3051_v8 }
 0x6e0   : > { %v7284_v33 = vpop.f32.mrb[4].mxu0 }
 0x6e1   : > { %v7286_v63 = vpop.f32.mrb[5].mxu0  ;;  %v3066_v23 = vsel %vm479_vm0, %v7284_v33, -inf }
 0x6e2   : > { %3067 = vmax.xlane.f32.xlu0 %v3066_v23  ;;  %v7290_v51 = vpop.f32.mrb[6].mxu0  ;;  %v3060_v1 = vsel %vm479_vm0, %v7286_v63, -inf }
 0x6e3   : > { %v7292_v16 = vpop.f32.mrb[7].mxu0  ;;  %v3069_v25 = vsel %vm479_vm0, %v7290_v51, -inf }
 0x6e4   : > { %3070 = vmax.xlane.f32.xlu1 %v3069_v25  ;;  %v3063_v41 = vsel %vm479_vm0, %v7292_v16, -inf }
 0x6e6   : > { %3061 = vmax.xlane.f32.xlu0 %v3060_v1 }
 0x6e8   : > { %3064 = vmax.xlane.f32.xlu1 %v3063_v41  ;;  %v7300_v14 = vpop.f32.mrb[8].mxu0 }
 0x6e9   : > { %v7302_v32 = vpop.f32.mrb[9].mxu0  ;;  %v3078_v42 = vsel %vm479_vm0, %v7300_v14, -inf }
 0x6ea   : > { %3079 = vmax.xlane.f32.xlu0 %v3078_v42  ;;  %v7306_v9 = vpop.f32.mrb[10].mxu0  ;;  %v3072_v38 = vsel %vm479_vm0, %v7302_v32, -inf }
 0x6eb   : > { %v7308_v50 = vpop.f32.mrb[11].mxu0  ;;  %v3081_v57 = vsel %vm479_vm0, %v7306_v9, -inf }
 0x6ec   : > { %3082 = vmax.xlane.f32.xlu1 %v3081_v57  ;;  %v3075_v44 = vsel %vm479_vm0, %v7308_v50, -inf }
 0x6ee   : > { %3073 = vmax.xlane.f32.xlu0 %v3072_v38 }
 0x6f0   : > { %3076 = vmax.xlane.f32.xlu1 %v3075_v44  ;;  %v7316_v19 = vpop.f32.mrb[12].mxu0 }
 0x6f1   : > { %v7318_v13 = vpop.f32.mrb[13].mxu0  ;;  %v3090_v3 = vsel %vm479_vm0, %v7316_v19, -inf }
 0x6f2   : > { %3091 = vmax.xlane.f32.xlu0 %v3090_v3  ;;  %v7322_v36 = vpop.f32.mrb[14].mxu0  ;;  %v3084_v7 = vsel %vm479_vm0, %v7318_v13, -inf }
 0x6f3   : > { %v7324_v28 = vpop.f32.mrb[15].mxu0  ;;  %v3093_v45 = vsel %vm479_vm0, %v7322_v36, -inf }
 0x6f4   : > { %3094 = vmax.xlane.f32.xlu1 %v3093_v45  ;;  %v3087_v24 = vsel %vm479_vm0, %v7324_v28, -inf }
 0x6f6   : > { %3085 = vmax.xlane.f32.xlu0 %v3084_v7 }
 0x6f8   : > { %3088 = vmax.xlane.f32.xlu1 %v3087_v24  ;;  %v7332_v6 = vpop.f32.mrb[16].mxu0 }
 0x6f9   : > { %v7334_v11 = vpop.f32.mrb[17].mxu0  ;;  %v3102_v54 = vsel %vm479_vm0, %v7332_v6, -inf }
 0x6fa   : > { %3103 = vmax.xlane.f32.xlu0 %v3102_v54  ;;  %v7338_v15 = vpop.f32.mrb[18].mxu0  ;;  %v3096_v62 = vsel %vm479_vm0, %v7334_v11, -inf }
 0x6fb   : > { %v7340_v58 = vpop.f32.mrb[19].mxu0  ;;  %v3105_v37 = vsel %vm479_vm0, %v7338_v15, -inf }
 0x6fc   : > { %3106 = vmax.xlane.f32.xlu1 %v3105_v37  ;;  %v3099_v27 = vsel %vm479_vm0, %v7340_v58, -inf }
 0x6fe   : > { %3097 = vmax.xlane.f32.xlu0 %v3096_v62 }
 0x700   : > { %3100 = vmax.xlane.f32.xlu1 %v3099_v27  ;;  %v7348_v21 = vpop.f32.mrb[20].mxu0 }
 0x701   : > { %v7350_v17 = vpop.f32.mrb[21].mxu0  ;;  %v3114_v56 = vsel %vm479_vm0, %v7348_v21, -inf }
 0x702   : > { %3115 = vmax.xlane.f32.xlu0 %v3114_v56  ;;  %v7354_v53 = vpop.f32.mrb[22].mxu0  ;;  %v3108_v35 = vsel %vm479_vm0, %v7350_v17, -inf }
 0x703   : > { %v7356_v40 = vpop.f32.mrb[23].mxu0  ;;  %v3117_v22 = vsel %vm479_vm0, %v7354_v53, -inf }
 0x704   : > { %3118 = vmax.xlane.f32.xlu1 %v3117_v22  ;;  %v3111_v34 = vsel %vm479_vm0, %v7356_v40, -inf }
 0x706   : > { %3109 = vmax.xlane.f32.xlu0 %v3108_v35 }
 0x708   : > { %3112 = vmax.xlane.f32.xlu1 %v3111_v34  ;;  %v7364_v46 = vpop.f32.mrb[24].mxu0 }
 0x709   : > { %v7366_v10 = vpop.f32.mrb[25].mxu0  ;;  %v3126_v26 = vsel %vm479_vm0, %v7364_v46, -inf }
 0x70a   : > { %3127 = vmax.xlane.f32.xlu0 %v3126_v26  ;;  %v7370_v39 = vpop.f32.mrb[26].mxu0  ;;  %v3120_v60 = vsel %vm479_vm0, %v7366_v10, -inf }
 0x70b   : > { %v7372_v59 = vpop.f32.mrb[27].mxu0  ;;  %v3129_v12 = vsel %vm479_vm0, %v7370_v39, -inf }
 0x70c   : > { %3130 = vmax.xlane.f32.xlu1 %v3129_v12  ;;  %v3123_v61 = vsel %vm479_vm0, %v7372_v59, -inf }
 0x70e   : > { %3121 = vmax.xlane.f32.xlu0 %v3120_v60 }
 0x710   : > { %3124 = vmax.xlane.f32.xlu1 %v3123_v61  ;;  %v7380_v20 = vpop.f32.mrb[28].mxu0 }
 0x711   : > { %v7382_v0 = vpop.f32.mrb[29].mxu0  ;;  %v3138_v43 = vsel %vm479_vm0, %v7380_v20, -inf }
 0x712   : > { %3139 = vmax.xlane.f32.xlu0 %v3138_v43  ;;  %v7386_v47 = vpop.f32.mrb[30].mxu0  ;;  %v3132_v23 = vsel %vm479_vm0, %v7382_v0, -inf }
 0x713   : > { %v7388_v48 = vpop.f32.mrb[31].mxu0  ;;  %v3141_v8 = vsel %vm479_vm0, %v7386_v47, -inf }
 0x714   : > { %3142 = vmax.xlane.f32.xlu1 %v3141_v8  ;;  %v3135_v25 = vsel %vm479_vm0, %v7388_v48, -inf }
 0x716   : > { %3133 = vmax.xlane.f32.xlu0 %v3132_v23 }
 0x718   : > { %3136 = vmax.xlane.f32.xlu1 %v3135_v25  ;;  %v7396_v1 = vpop.f32.mrb[32].mxu0 }
 0x719   : > { %v7398_v41 = vpop.f32.mrb[33].mxu0  ;;  %v3150_v42 = vsel %vm479_vm0, %v7396_v1, -inf }
 0x71a   : > { %3151 = vmax.xlane.f32.xlu0 %v3150_v42  ;;  %v7402_v57 = vpop.f32.mrb[34].mxu0  ;;  %v3144_v3 = vsel %vm479_vm0, %v7398_v41, -inf }
 0x71b   : > { %v7404_v38 = vpop.f32.mrb[35].mxu0  ;;  %v3153_v44 = vsel %vm479_vm0, %v7402_v57, -inf }
 0x71c   : > { %3154 = vmax.xlane.f32.xlu1 %v3153_v44  ;;  %v3147_v45 = vsel %vm479_vm0, %v7404_v38, -inf }
 0x71e   : > { %3145 = vmax.xlane.f32.xlu0 %v3144_v3 }
 0x720   : > { %3148 = vmax.xlane.f32.xlu1 %v3147_v45  ;;  %v7412_v7 = vpop.f32.mrb[36].mxu0 }
 0x721   : > { %v7414_v24 = vpop.f32.mrb[37].mxu0  ;;  %v3162_v54 = vsel %vm479_vm0, %v7412_v7, -inf }
 0x722   : > { %3163 = vmax.xlane.f32.xlu0 %v3162_v54  ;;  %v7418_v37 = vpop.f32.mrb[38].mxu0  ;;  %v3156_v56 = vsel %vm479_vm0, %v7414_v24, -inf }
 0x723   : > { %v7420_v62 = vpop.f32.mrb[39].mxu0  ;;  %v3165_v27 = vsel %vm479_vm0, %v7418_v37, -inf }
 0x724   : > { %3166 = vmax.xlane.f32.xlu1 %v3165_v27  ;;  %v3159_v22 = vsel %vm479_vm0, %v7420_v62, -inf }
 0x726   : > { %3157 = vmax.xlane.f32.xlu0 %v3156_v56 }
 0x728   : > { %3160 = vmax.xlane.f32.xlu1 %v3159_v22  ;;  %v7428_v35 = vpop.f32.mrb[40].mxu0 }
 0x729   : > { %v7430_v34 = vpop.f32.mrb[41].mxu0  ;;  %v3174_v26 = vsel %vm479_vm0, %v7428_v35, -inf }
 0x72a   : > { %3175 = vmax.xlane.f32.xlu0 %v3174_v26  ;;  %v7434_v12 = vpop.f32.mrb[42].mxu0  ;;  %v3168_v43 = vsel %vm479_vm0, %v7430_v34, -inf }
 0x72b   : > { %v7436_v60 = vpop.f32.mrb[43].mxu0  ;;  %v3177_v61 = vsel %vm479_vm0, %v7434_v12, -inf }
 0x72c   : > { %3178 = vmax.xlane.f32.xlu1 %v3177_v61  ;;  %v3171_v8 = vsel %vm479_vm0, %v7436_v60, -inf }
 0x72e   : > { %3169 = vmax.xlane.f32.xlu0 %v3168_v43 }
 0x730   : > { %3172 = vmax.xlane.f32.xlu1 %v3171_v8  ;;  %v7444_v23 = vpop.f32.mrb[44].mxu0 }
 0x731   : > { %8203 = vst [vmem:[#allocation2_spill] sm:$0xff] %v7444_v23  ;;  %v7446_v25 = vpop.f32.mrb[45].mxu0  ;;  %v3186_v42 = vsel %vm479_vm0, %v7444_v23, -inf }
 0x732   : > { %8204 = vst [vmem:[#allocation3_spill] sm:$0xff] %v7446_v25  ;;  %3187 = vmax.xlane.f32.xlu0 %v3186_v42  ;;  %v7450_v44 = vpop.f32.mrb[46].mxu0  ;;  %v3180_v54 = vsel %vm479_vm0, %v7446_v25, -inf }
 0x733   : > { %8205 = vst [vmem:[#allocation4_spill] sm:$0xff] %v7450_v44  ;;  %v7452_v3 = vpop.f32.mrb[47].mxu0  ;;  %v3189_v45 = vsel %vm479_vm0, %v7450_v44, -inf }
 0x734   : > { %8206 = vst [vmem:[#allocation5_spill] sm:$0xff] %v7452_v3  ;;  %3190 = vmax.xlane.f32.xlu1 %v3189_v45  ;;  %v3183_v27 = vsel %vm479_vm0, %v7452_v3, -inf }
 0x736   : > { %3181 = vmax.xlane.f32.xlu0 %v3180_v54 }
 0x738   : > { %3184 = vmax.xlane.f32.xlu1 %v3183_v27  ;;  %v7460_v56 = vpop.f32.mrb[48].mxu0 }
 0x739   : > { %8207 = vst [vmem:[#allocation6_spill] sm:$0xff] %v7460_v56  ;;  %v7462_v22 = vpop.f32.mrb[49].mxu0  ;;  %v3198_v26 = vsel %vm479_vm0, %v7460_v56, -inf }
 0x73a   : > { %8208 = vst [vmem:[#allocation7_spill] sm:$0xff] %v7462_v22  ;;  %3199 = vmax.xlane.f32.xlu0 %v3198_v26  ;;  %v7466_v61 = vpop.f32.mrb[50].mxu0  ;;  %v3192_v42 = vsel %vm479_vm0, %v7462_v22, -inf }
 0x73b   : > { %8209 = vst [vmem:[#allocation8_spill] sm:$0xff] %v7466_v61  ;;  %v7468_v43 = vpop.f32.mrb[51].mxu0  ;;  %v3201_v8 = vsel %vm479_vm0, %v7466_v61, -inf }
 0x73c   : > { %8210 = vst [vmem:[#allocation9_spill] sm:$0xff] %v7468_v43  ;;  %3202 = vmax.xlane.f32.xlu1 %v3201_v8  ;;  %v3195_v45 = vsel %vm479_vm0, %v7468_v43, -inf }
 0x73e   : > { %3193 = vmax.xlane.f32.xlu0 %v3192_v42 }
 0x740   : > { %3196 = vmax.xlane.f32.xlu1 %v3195_v45  ;;  %v7476_v54 = vpop.f32.mrb[52].mxu0  ;;  %v7478_v27 = vpop.f32.mrb[64].mxu1 }
 0x741   : > { %8211 = vst [vmem:[#allocation10_spill] sm:$0xff] %v7476_v54  ;;  %8212 = vst [vmem:[#allocation11_spill] sm:$0xff] %v7478_v27  ;;  %v7480_v26 = vpop.f32.mrb[53].mxu0  ;;  %v7482_v56 = vpop.f32.mrb[65].mxu1 }
 0x742   : > { %8213 = vst [vmem:[#allocation12_spill] sm:$0xff] %v7480_v26  ;;  %8214 = vst [vmem:[#allocation13_spill] sm:$0xff] %v7482_v56  ;;  %v7484_v3 = vpop.f32.mrb[54].mxu0  ;;  %v3204_v8 = vsel %vm479_vm0, %v7480_v26, -inf  ;;  %v7488_v61 = vpop.f32.mrb[66].mxu1 }
 0x743   : > { %8215 = vst [vmem:[#allocation14_spill] sm:$0xff] %v7484_v3  ;;  %8216 = vst [vmem:[#allocation15_spill] sm:$0xff] %v7488_v61  ;;  %3205 = vmax.xlane.f32.xlu0 %v3204_v8  ;;  %v7490_v42 = vpop.f32.mrb[55].mxu0  ;;  %v7492_v43 = vpop.f32.mrb[67].mxu1 }
 0x744   : > { %8217 = vst [vmem:[#allocation16_spill] sm:$0xff] %v7490_v42  ;;  %8218 = vst [vmem:[#allocation17_spill] sm:$0xff] %v7492_v43  ;;  %v3207_v45 = vsel %vm479_vm0, %v7490_v42, -inf }
 0x745   : > { %3208 = vmax.xlane.f32.xlu1 %v3207_v45 }
 0x748   : > { %v7496_v22 = vpop.f32.mrb[56].mxu0 }
 0x749   : > { %8219 = vst [vmem:[#allocation18_spill] sm:$0xff] %v7496_v22  ;;  %v7498_v25 = vpop.f32.mrb[57].mxu0  ;;  %v3222_v44 = vsel %vm479_vm0, %v7496_v22, -inf  ;;  %v3210_v22 = vsel %vm479_vm0, %v7476_v54, -inf }
 0x74a   : > { %8220 = vst [vmem:[#allocation19_spill] sm:$0xff] %v7498_v25  ;;  %3223 = vmax.xlane.f32.xlu0 %v3222_v44  ;;  %v7502_v26 = vpop.f32.mrb[58].mxu0  ;;  %v3216_v42 = vsel %vm479_vm0, %v7498_v25, -inf  ;;  %v3213_v44 = vsel %vm479_vm0, %v7484_v3, -inf }
 0x74b   : > { %8221 = vst [vmem:[#allocation20_spill] sm:$0xff] %v7502_v26  ;;  %v7504_v23 = vpop.f32.mrb[59].mxu0  ;;  %v3225_v8 = vsel %vm479_vm0, %v7502_v26, -inf  ;;  %v3228_v26 = vsel %vm479_vm0, %v7482_v56, -inf }
 0x74c   : > { %8222 = vst [vmem:[#allocation21_spill] sm:$0xff] %v7504_v23  ;;  %3226 = vmax.xlane.f32.xlu1 %v3225_v8  ;;  %v3219_v45 = vsel %vm479_vm0, %v7504_v23, -inf  ;;  %v3231_v8 = vsel %vm479_vm0, %v7492_v43, -inf }
 0x74e   : > { %3217 = vmax.xlane.f32.xlu0 %v3216_v42  ;;  %v3234_v42 = vsel %vm479_vm0, %v7478_v27, -inf }
 0x750   : > { %3220 = vmax.xlane.f32.xlu1 %v3219_v45  ;;  %v3237_v45 = vsel %vm479_vm0, %v7488_v61, -inf }
 0x752   : > { %3211 = vmax.xlane.f32.xlu0 %v3210_v22 }
 0x754   : > { %3214 = vmax.xlane.f32.xlu1 %v3213_v44 }
 0x756   : > { %3229 = vmax.xlane.f32.xlu0 %v3228_v26 }
 0x758   : > { %3232 = vmax.xlane.f32.xlu1 %v3231_v8 }
 0x75a   : > { %3235 = vmax.xlane.f32.xlu0 %v3234_v42 }
 0x75c   : > { %3238 = vmax.xlane.f32.xlu1 %v3237_v45 }
 0x75f   : > { %v3056_v22 = vpop.xlane.xlu0 %3055 }
 0x760   : > { %v3242_v3 = vsub.f32 %v7268_v55, %v3056_v22 }
 0x761   : > { %v3059_v44 = vpop.xlane.xlu1 %3058 }
 0x762   : > { %v3308_v54 = vmul.f32 1.442695, %v3242_v3  ;;  %v3243_v56 = vsub.f32 %v7274_v52, %v3059_v44 }
 0x763   : > { %v3050_v26 = vpop.xlane.xlu0 %3049 }
 0x764   : > { %5767 = vpow2.f32 %v3308_v54  ;;  %v3310_v23 = vmul.f32 1.442695, %v3243_v56  ;;  %v3240_v8 = vsub.f32 %v7270_v5, %v3050_v26 }
 0x765   : > { %v3053_v43 = vpop.xlane.xlu1 %3052 }
 0x766   : > { %5769 = vpow2.f32 %v3310_v23  ;;  %v3304_v27 = vmul.f32 1.442695, %v3240_v8  ;;  %v3241_v42 = vsub.f32 %v7276_v29, %v3053_v43 }
 0x768   : > { %5771 = vpow2.f32 %v3304_v27  ;;  %v3306_v61 = vmul.f32 1.442695, %v3241_v42 }
 0x76a   : > { %5773 = vpow2.f32 %v3306_v61 }
 0x76e   : > { %v5768_v45 = vpop.eup %5767 }
 0x76f   : > { %v3068_v25 = vpop.xlane.xlu0 %3067  ;;  %v3438_v55 = vsel %vm479_vm0, %v5768_v45, 0.0 }
 0x770   : > { %v5770_v3 = vpop.eup %5769  ;;  %v3246_v52 = vsub.f32 %v7284_v33, %v3068_v25  ;;  %3439 = vadd.xlane.f32.xlu0 %v3438_v55  ;;  %v3829_v55 = vsel %vm479_vm0, %v7254_v4, 0 }
 0x771   : > { %v3071_v54 = vpop.xlane.xlu1 %3070  ;;  %v3625_v56 = vpack.c.bf16 %v5770_v3, %v5768_v45 }
 0x772   : > { %v5772_v22 = vpop.eup %5771  ;;  %v3316_v5 = vmul.f32 1.442695, %v3246_v52  ;;  %v3247_v23 = vsub.f32 %v7290_v51, %v3071_v54  ;;  %v3441_v51 = vsel %vm479_vm0, %v5770_v3, 0.0 }
 0x773   : > { %v3062_v44 = vpop.xlane.xlu0 %3061  ;;  %v3432_v29 = vsel %vm479_vm0, %v5772_v22, 0.0 }
 0x774   : > { %v5774_v43 = vpop.eup %5773  ;;  %5775 = vpow2.f32 %v3316_v5  ;;  %v3318_v61 = vmul.f32 1.442695, %v3247_v23  ;;  %v3244_v27 = vsub.f32 %v7286_v63, %v3062_v44  ;;  %3433 = vadd.xlane.f32.xlu0 %v3432_v29 }
 0x775   : > { %v3065_v26 = vpop.xlane.xlu1 %3064  ;;  %v3435_v8 = vsel %vm479_vm0, %v5774_v43, 0.0  ;;  %v3624_v33 = vpack.c.bf16 %v5774_v43, %v5772_v22 }
 0x776   : > { %5777 = vpow2.f32 %v3318_v61  ;;  %v3312_v25 = vmul.f32 1.442695, %v3244_v27  ;;  %v3245_v42 = vsub.f32 %v7292_v16, %v3065_v26  ;;  %3436 = vadd.xlane.f32.xlu1 %v3435_v8 }
 0x777   : > { %v3080_v45 = vpop.xlane.xlu0 %3079  ;;  %5487 = vmatprep.mubr.msk.bf16.mxu0 %vm479_vm0, %v3624_v33 }
 0x778   : > { %5779 = vpow2.f32 %v3312_v25  ;;  %v3314_v63 = vmul.f32 1.442695, %v3245_v42  ;;  %v3250_v52 = vsub.f32 %v7300_v14, %v3080_v45  ;;  %5488 = vmatmul.mubr.msk.bf16.vlgmr.msra.gmra.mrb[60].mxu0 %vm479_vm0, %v3625_v56  ;;  %3442 = vadd.xlane.f32.xlu0 %v3441_v51 }
 0x779   : > { %5506 = vmatpush3.bf16.xpose.msra.mxu0 %v3829_v55  ;;  %v3083_v54 = vpop.xlane.xlu1 %3082 }
 0x77a   : > { %5781 = vpow2.f32 %v3314_v63  ;;  %v3324_v16 = vmul.f32 1.442695, %v3250_v52  ;;  %v3251_v22 = vsub.f32 %v7306_v9, %v3083_v54  ;;  %5603 = vmatprep.subr.msk.bf16.mxu0 %vm479_vm0, %v7262_v31 }
 0x77b   : > { %v3074_v3 = vpop.xlane.xlu0 %3073 }
 0x77c   : > { %5783 = vpow2.f32 %v3324_v16  ;;  %v3326_v5 = vmul.f32 1.442695, %v3251_v22  ;;  %v3248_v4 = vsub.f32 %v7302_v32, %v3074_v3 }
 0x77d   : > { %v3077_v23 = vpop.xlane.xlu1 %3076 }
 0x77e   : > { %v5776_v44 = vpop.eup %5775  ;;  %5785 = vpow2.f32 %v3326_v5  ;;  %v3320_v14 = vmul.f32 1.442695, %v3248_v4  ;;  %v3249_v56 = vsub.f32 %v7308_v50, %v3077_v23 }
 0x77f   : > { %v3092_v29 = vpop.xlane.xlu0 %3091  ;;  %v3450_v43 = vsel %vm479_vm0, %v5776_v44, 0.0 }
 0x780   : > { %v5778_v61 = vpop.eup %5777  ;;  %5787 = vpow2.f32 %v3320_v14  ;;  %v3322_v9 = vmul.f32 1.442695, %v3249_v56  ;;  %v3254_v27 = vsub.f32 %v7316_v19, %v3092_v29  ;;  %3451 = vadd.xlane.f32.xlu0 %v3450_v43 }
 0x781   : > { %v3095_v26 = vpop.xlane.xlu1 %3094  ;;  %v3627_v8 = vpack.c.bf16 %v5778_v61, %v5776_v44  ;;  %v3453_v3 = vsel %vm479_vm0, %v5778_v61, 0.0 }
 0x782   : > { %v5780_v33 = vpop.eup %5779  ;;  %5789 = vpow2.f32 %v3322_v9  ;;  %v3332_v32 = vmul.f32 1.442695, %v3254_v27  ;;  %v3255_v25 = vsub.f32 %v7322_v36, %v3095_v26 }
 0x783   : > { %v3086_v42 = vpop.xlane.xlu0 %3085  ;;  %v3444_v45 = vsel %vm479_vm0, %v5780_v33, 0.0 }
 0x784   : > { %v5782_v50 = vpop.eup %5781  ;;  %5791 = vpow2.f32 %v3332_v32  ;;  %v3334_v51 = vmul.f32 1.442695, %v3255_v25  ;;  %v3252_v55 = vsub.f32 %v7318_v13, %v3086_v42  ;;  %3445 = vadd.xlane.f32.xlu0 %v3444_v45 }
 0x785   : > { %v3089_v63 = vpop.xlane.xlu1 %3088  ;;  %v3447_v19 = vsel %vm479_vm0, %v5782_v50, 0.0  ;;  %v3626_v52 = vpack.c.bf16 %v5782_v50, %v5780_v33 }
 0x786   : > { %v5784_v54 = vpop.eup %5783  ;;  %5793 = vpow2.f32 %v3334_v51  ;;  %v3328_v16 = vmul.f32 1.442695, %v3252_v55  ;;  %v3253_v22 = vsub.f32 %v7324_v28, %v3089_v63  ;;  %3448 = vadd.xlane.f32.xlu1 %v3447_v19 }
 0x787   : > { %v3104_v36 = vpop.xlane.xlu0 %3103  ;;  %5491 = vmatprep.mubr.msk.bf16.mxu0 %vm479_vm0, %v3626_v52  ;;  %v3462_v44 = vsel %vm479_vm0, %v5784_v54, 0.0 }
 0x788   : > { %v5786_v5 = vpop.eup %5785  ;;  %5795 = vpow2.f32 %v3328_v16  ;;  %v3330_v4 = vmul.f32 1.442695, %v3253_v22  ;;  %v3258_v13 = vsub.f32 %v7332_v6, %v3104_v36  ;;  %5492 = vmatmul.mubr.msk.bf16.gmra.mrb[64].mxu0 %vm479_vm0, %v3627_v8  ;;  %3454 = vadd.xlane.f32.xlu0 %v3453_v3 }
 0x789   : > { %v3107_v23 = vpop.xlane.xlu1 %3106  ;;  %v3629_v14 = vpack.c.bf16 %v5786_v5, %v5784_v54  ;;  %v3465_v61 = vsel %vm479_vm0, %v5786_v5, 0.0 }
 0x78a   : > { %v5788_v56 = vpop.eup %5787  ;;  %5797 = vpow2.f32 %v3330_v4  ;;  %v3340_v28 = vmul.f32 1.442695, %v3258_v13  ;;  %v3259_v29 = vsub.f32 %v7338_v15, %v3107_v23  ;;  %3463 = vadd.xlane.f32.xlu1 %v3462_v44 }
 0x78b   : > { %v3098_v43 = vpop.xlane.xlu0 %3097  ;;  %v3456_v8 = vsel %vm479_vm0, %v5788_v56, 0.0 }
 0x78c   : > { %v5790_v9 = vpop.eup %5789  ;;  %v3342_v27 = vmul.f32 1.442695, %v3259_v29  ;;  %v3256_v6 = vsub.f32 %v7334_v11, %v3098_v43  ;;  %3466 = vadd.xlane.f32.xlu0 %v3465_v61  ;;  %5799 = vpow2.f32 %v3340_v28  ;;  %v3909_v11 = vsel %vm479_vm0, %v7252_v30, 0 }
 0x78d   : > { %v3101_v26 = vpop.xlane.xlu1 %3100  ;;  %v3628_v33 = vpack.c.bf16 %v5790_v9, %v5788_v56 }
 0x78e   : > { %v5792_v32 = vpop.eup %5791  ;;  %5801 = vpow2.f32 %v3342_v27  ;;  %v3336_v25 = vmul.f32 1.442695, %v3256_v6  ;;  %v3257_v42 = vsub.f32 %v7340_v58, %v3101_v26  ;;  %3457 = vadd.xlane.f32.xlu1 %v3456_v8  ;;  %v3459_v58 = vsel %vm479_vm0, %v5790_v9, 0.0 }
 0x78f   : > { %v3116_v15 = vpop.xlane.xlu0 %3115  ;;  %5497 = vmatprep.mubr.msk.bf16.mxu1 %vm479_vm0, %v3628_v33  ;;  %v3474_v45 = vsel %vm479_vm0, %v5792_v32, 0.0 }
 0x790   : > { %v5794_v50 = vpop.eup %5793  ;;  %v3338_v51 = vmul.f32 1.442695, %v3257_v42  ;;  %v3262_v55 = vsub.f32 %v7348_v21, %v3116_v15  ;;  %5498 = vmatmul.mubr.msk.bf16.vlgmr.msra.gmra.mrb[68].mxu1 %vm479_vm0, %v3629_v14  ;;  %3475 = vadd.xlane.f32.xlu0 %v3474_v45  ;;  %5803 = vpow2.f32 %v3336_v25 }
 0x791   : > { %5516 = vmatpush3.bf16.xpose.msra.mxu1 %v3909_v11  ;;  %v3119_v63 = vpop.xlane.xlu1 %3118  ;;  %v3631_v19 = vpack.c.bf16 %v5794_v50, %v5792_v32  ;;  %v3477_v21 = vsel %vm479_vm0, %v5794_v50, 0.0  ;;  %v3989_v50 = vsel %vm479_vm0, %v7262_v31, 0 }
 0x792   : > { %v5796_v52 = vpop.eup %5795  ;;  %5805 = vpow2.f32 %v3338_v51  ;;  %v3348_v54 = vmul.f32 1.442695, %v3262_v55  ;;  %v3263_v16 = vsub.f32 %v7354_v53, %v3119_v63  ;;  %5604 = vmatprep.subr.msk.bf16.mxu1 %vm479_vm0, %v7260_v49  ;;  %3460 = vadd.xlane.f32.xlu1 %v3459_v58 }
 0x793   : > { %v3110_v30 = vpop.xlane.xlu0 %3109  ;;  %v3468_v4 = vsel %vm479_vm0, %v5796_v52, 0.0 }
 0x794   : > { %v5798_v22 = vpop.eup %5797  ;;  %v3350_v36 = vmul.f32 1.442695, %v3263_v16  ;;  %v3260_v3 = vsub.f32 %v7350_v17, %v3110_v30  ;;  %3478 = vadd.xlane.f32.xlu0 %v3477_v21  ;;  %5807 = vpow2.f32 %v3348_v54 }
 0x795   : > { %v3113_v5 = vpop.xlane.xlu1 %3112  ;;  %v3630_v13 = vpack.c.bf16 %v5798_v22, %v5796_v52 }
 0x796   : > { %5809 = vpow2.f32 %v3350_v36  ;;  %v3344_v23 = vmul.f32 1.442695, %v3260_v3  ;;  %v3261_v53 = vsub.f32 %v7356_v40, %v3113_v5  ;;  %3469 = vadd.xlane.f32.xlu1 %v3468_v4  ;;  %v7577_v44 = vpop.eup %5799  ;;  %v3471_v40 = vsel %vm479_vm0, %v5798_v22, 0.0 }
 0x797   : > { %v3128_v14 = vpop.xlane.xlu0 %3127  ;;  %5501 = vmatprep.mubr.msk.bf16.mxu1 %vm479_vm0, %v3630_v13 }
 0x798   : > { %v7580_v56 = vpop.eup %5801  ;;  %v3346_v28 = vmul.f32 1.442695, %v3261_v53  ;;  %v3266_v17 = vsub.f32 %v7364_v46, %v3128_v14  ;;  %5502 = vmatmul.mubr.msk.bf16.gmra.mrb[72].mxu1 %vm479_vm0, %v3631_v19  ;;  %5811 = vpow2.f32 %v3344_v23 }
 0x799   : > { %v3633_v29 = vpack.c.bf16 %v7580_v56, %v7577_v44  ;;  %v3131_v43 = vpop.xlane.xlu1 %3130 }
 0x79a   : > { %5813 = vpow2.f32 %v3346_v28  ;;  %v3356_v61 = vmul.f32 1.442695, %v3266_v17  ;;  %v3267_v9 = vsub.f32 %v7370_v39, %v3131_v43  ;;  %3472 = vadd.xlane.f32.xlu1 %v3471_v40  ;;  %v7588_v27 = vpop.eup %5803 }
 0x79b   : > { %v3122_v6 = vpop.xlane.xlu0 %3121 }
 0x79c   : > { %v7590_v26 = vpop.eup %5805  ;;  %v3358_v46 = vmul.f32 1.442695, %v3267_v9  ;;  %v3264_v8 = vsub.f32 %v7366_v10, %v3122_v6  ;;  %5815 = vpow2.f32 %v3356_v61  ;;  %v4069_v6 = vsel %vm479_vm0, %v7260_v49, 0 }
 0x79d   : > { %v3125_v33 = vpop.xlane.xlu1 %3124  ;;  %v3632_v32 = vpack.c.bf16 %v7590_v26, %v7588_v27 }
 0x79e   : > { %5817 = vpow2.f32 %v3358_v46  ;;  %v3352_v25 = vmul.f32 1.442695, %v3264_v8  ;;  %v3265_v42 = vsub.f32 %v7372_v59, %v3125_v33  ;;  %v7596_v15 = vpop.eup %5807 }
 0x79f   : > { %v3140_v39 = vpop.xlane.xlu0 %3139  ;;  %5507 = vmatprep.mubr.msk.bf16.mxu0 %vm479_vm0, %v3632_v32 }
 0x7a0   : > { %v7599_v45 = vpop.eup %5809  ;;  %v3354_v10 = vmul.f32 1.442695, %v3265_v42  ;;  %v3270_v11 = vsub.f32 %v7380_v20, %v3140_v39  ;;  %5508 = vmatmul.mubr.msk.bf16.vlgmr.msra.gmra.mrb[68].mxu0 %vm479_vm0, %v3633_v29  ;;  %5819 = vpow2.f32 %v3352_v25 }
 0x7a1   : > { %5526 = vmatpush3.bf16.xpose.msra.mxu0 %v3989_v50  ;;  %v3143_v51 = vpop.xlane.xlu1 %3142  ;;  %v3635_v59 = vpack.c.bf16 %v7599_v45, %v7596_v15 }
 0x7a2   : > { %5821 = vpow2.f32 %v3354_v10  ;;  %v3364_v55 = vmul.f32 1.442695, %v3270_v11  ;;  %v3271_v63 = vsub.f32 %v7386_v47, %v3143_v51  ;;  %5605 = vmatprep.subr.msk.bf16.mxu0 %vm479_vm0, %v7266_v18  ;;  %v7610_v58 = vpop.eup %5811 }
 0x7a3   : > { %v3134_v31 = vpop.xlane.xlu0 %3133 }
 0x7a4   : > { %v7612_v19 = vpop.eup %5813  ;;  %v3366_v20 = vmul.f32 1.442695, %v3271_v63  ;;  %v3268_v52 = vsub.f32 %v7382_v0, %v3134_v31  ;;  %5823 = vpow2.f32 %v3364_v55 }
 0x7a5   : > { %v3137_v54 = vpop.xlane.xlu1 %3136  ;;  %v3634_v16 = vpack.c.bf16 %v7612_v19, %v7610_v58 }
 0x7a6   : > { %5825 = vpow2.f32 %v3366_v20  ;;  %v3360_v30 = vmul.f32 1.442695, %v3268_v52  ;;  %v3269_v47 = vsub.f32 %v7388_v48, %v3137_v54  ;;  %v7618_v21 = vpop.eup %5815 }
 0x7a7   : > { %v3152_v22 = vpop.xlane.xlu0 %3151  ;;  %5511 = vmatprep.mubr.msk.bf16.mxu0 %vm479_vm0, %v3634_v16 }
 0x7a8   : > { %v7621_v36 = vpop.eup %5817  ;;  %v3362_v3 = vmul.f32 1.442695, %v3269_v47  ;;  %v3274_v5 = vsub.f32 %v7396_v1, %v3152_v22  ;;  %5512 = vmatmul.mubr.msk.bf16.gmra.mrb[72].mxu0 %vm479_vm0, %v3635_v59  ;;  %5827 = vpow2.f32 %v3360_v30 }
 0x7a9   : > { %v3637_v0 = vpack.c.bf16 %v7621_v36, %v7618_v21  ;;  %v3155_v4 = vpop.xlane.xlu1 %3154 }
 0x7aa   : > { %5829 = vpow2.f32 %v3362_v3  ;;  %v3372_v13 = vmul.f32 1.442695, %v3274_v5  ;;  %v3275_v48 = vsub.f32 %v7402_v57, %v3155_v4  ;;  %v7628_v23 = vpop.eup %5819 }
 0x7ab   : > { %v3146_v53 = vpop.xlane.xlu0 %3145 }
 0x7ac   : > { %v7630_v14 = vpop.eup %5821  ;;  %v3374_v28 = vmul.f32 1.442695, %v3275_v48  ;;  %v3272_v17 = vsub.f32 %v7398_v41, %v3146_v53  ;;  %5831 = vpow2.f32 %v3372_v13  ;;  %v4149_v48 = vsel %vm479_vm0, %v7266_v18, 0  ;;  %v8223_v53 = vld [vmem:[#allocation2_spill] sm:$0xff] }
 0x7ad   : > { %v3149_v1 = vpop.xlane.xlu1 %3148  ;;  %v3636_v29 = vpack.c.bf16 %v7630_v14, %v7628_v23 }
 0x7ae   : > { %5833 = vpow2.f32 %v3374_v28  ;;  %v3368_v43 = vmul.f32 1.442695, %v3272_v17  ;;  %v3273_v40 = vsub.f32 %v7404_v38, %v3149_v1  ;;  %v7636_v61 = vpop.eup %5823 }
 0x7af   : > { %v3164_v57 = vpop.xlane.xlu0 %3163  ;;  %5517 = vmatprep.mubr.msk.bf16.mxu1 %vm479_vm0, %v3636_v29  ;;  %v8224_v29 = vld [vmem:[#allocation4_spill] sm:$0xff] }
 0x7b0   : > { %v7639_v9 = vpop.eup %5825  ;;  %v3370_v41 = vmul.f32 1.442695, %v3273_v40  ;;  %v3278_v46 = vsub.f32 %v7412_v7, %v3164_v57  ;;  %5518 = vmatmul.mubr.msk.bf16.vlgmr.msra.gmra.mrb[76].mxu1 %vm479_vm0, %v3637_v0  ;;  %5835 = vpow2.f32 %v3368_v43 }
 0x7b1   : > { %5536 = vmatpush3.bf16.xpose.msra.mxu1 %v4069_v6  ;;  %v3167_v8 = vpop.xlane.xlu1 %3166  ;;  %v3639_v38 = vpack.c.bf16 %v7639_v9, %v7636_v61 }
 0x7b2   : > { %5837 = vpow2.f32 %v3370_v41  ;;  %v3380_v33 = vmul.f32 1.442695, %v3278_v46  ;;  %v3279_v32 = vsub.f32 %v7418_v37, %v3167_v8  ;;  %5606 = vmatprep.subr.msk.bf16.mxu1 %vm479_vm0, %v7264_v2  ;;  %v7650_v25 = vpop.eup %5827  ;;  %v8225_v41 = vld [vmem:[#allocation3_spill] sm:$0xff] }
 0x7b3   : > { %v3158_v49 = vpop.xlane.xlu0 %3157 }
 0x7b4   : > { %v7652_v42 = vpop.eup %5829  ;;  %v3382_v7 = vmul.f32 1.442695, %v3279_v32  ;;  %v3276_v39 = vsub.f32 %v7414_v24, %v3158_v49  ;;  %5839 = vpow2.f32 %v3380_v33  ;;  %v8226_v32 = vld [vmem:[#allocation5_spill] sm:$0xff] }
 0x7b5   : > { %v3161_v50 = vpop.xlane.xlu1 %3160  ;;  %v3638_v10 = vpack.c.bf16 %v7652_v42, %v7650_v25 }
 0x7b6   : > { %5841 = vpow2.f32 %v3382_v7  ;;  %v3376_v11 = vmul.f32 1.442695, %v3276_v39  ;;  %v3277_v37 = vsub.f32 %v7420_v62, %v3161_v50  ;;  %v7658_v51 = vpop.eup %5831 }
 0x7b7   : > { %v3176_v59 = vpop.xlane.xlu0 %3175  ;;  %5521 = vmatprep.mubr.msk.bf16.mxu1 %vm479_vm0, %v3638_v10 }
 0x7b8   : > { %v7661_v55 = vpop.eup %5833  ;;  %v3378_v63 = vmul.f32 1.442695, %v3277_v37  ;;  %v3282_v31 = vsub.f32 %v7428_v35, %v3176_v59  ;;  %5522 = vmatmul.mubr.msk.bf16.gmra.mrb[80].mxu1 %vm479_vm0, %v3639_v38  ;;  %5843 = vpow2.f32 %v3376_v11  ;;  %v8227_v11 = vld [vmem:[#allocation6_spill] sm:$0xff] }
 0x7b9   : > { %v3641_v24 = vpack.c.bf16 %v7661_v55, %v7658_v51  ;;  %v3179_v20 = vpop.xlane.xlu1 %3178 }
 0x7ba   : > { %5845 = vpow2.f32 %v3378_v63  ;;  %v3388_v52 = vmul.f32 1.442695, %v3282_v31  ;;  %v3283_v62 = vsub.f32 %v7434_v12, %v3179_v20  ;;  %v7668_v54 = vpop.eup %5835 }
 0x7bb   : > { %v3170_v16 = vpop.xlane.xlu0 %3169 }
 0x7bc   : > { %v7670_v30 = vpop.eup %5837  ;;  %v3390_v47 = vmul.f32 1.442695, %v3283_v62  ;;  %v3280_v22 = vsub.f32 %v7430_v34, %v3170_v16  ;;  %5847 = vpow2.f32 %v3388_v52 }
 0x7bd   : > { %v3173_v35 = vpop.xlane.xlu1 %3172  ;;  %v3640_v3 = vpack.c.bf16 %v7670_v30, %v7668_v54 }
 0x7be   : > { %5849 = vpow2.f32 %v3390_v47  ;;  %v3384_v5 = vmul.f32 1.442695, %v3280_v22  ;;  %v3281_v0 = vsub.f32 %v7436_v60, %v3173_v35  ;;  %v7676_v4 = vpop.eup %5839  ;;  %v8229_v22 = vld [vmem:[#allocation7_spill] sm:$0xff] }
 0x7bf   : > { %v3188_v12 = vpop.xlane.xlu0 %3187  ;;  %5527 = vmatprep.mubr.msk.bf16.mxu0 %vm479_vm0, %v3640_v3 }
 0x7c0   : > { %v7679_v13 = vpop.eup %5841  ;;  %v3386_v34 = vmul.f32 1.442695, %v3281_v0  ;;  %v3286_v28 = vsub.f32 %v8223_v53, %v3188_v12  ;;  %5528 = vmatmul.mubr.msk.bf16.vlgmr.msra.gmra.mrb[76].mxu0 %vm479_vm0, %v3641_v24  ;;  %5851 = vpow2.f32 %v3384_v5  ;;  %v8228_v24 = vld [vmem:[#allocation8_spill] sm:$0xff]  ;;  %v8230_v12 = vld [vmem:[#allocation9_spill] sm:$0xff] }
 0x7c1   : > { %5546 = vmatpush3.bf16.xpose.msra.mxu0 %v4149_v48  ;;  %v3191_v17 = vpop.xlane.xlu1 %3190  ;;  %v3643_v60 = vpack.c.bf16 %v7679_v13, %v7676_v4 }
 0x7c2   : > { %5853 = vpow2.f32 %v3386_v34  ;;  %v3396_v1 = vmul.f32 1.442695, %v3286_v28  ;;  %v3287_v43 = vsub.f32 %v8224_v29, %v3191_v17  ;;  %v7688_v40 = vpop.eup %5843  ;;  %v4229_v28 = vsel %vm479_vm0, %v7264_v2, 0 }
 0x7c3   : > { %v3182_v57 = vpop.xlane.xlu0 %3181 }
 0x7c4   : > { %v7690_v6 = vpop.eup %5845  ;;  %v3398_v18 = vmul.f32 1.442695, %v3287_v43  ;;  %v3284_v46 = vsub.f32 %v8225_v41, %v3182_v57  ;;  %5855 = vpow2.f32 %v3396_v1  ;;  %v8231_v1 = vld [vmem:[#allocation12_spill] sm:$0xff] }
 0x7c5   : > { %v3185_v8 = vpop.xlane.xlu1 %3184  ;;  %v3642_v38 = vpack.c.bf16 %v7690_v6, %v7688_v40 }
 0x7c6   : > { %5857 = vpow2.f32 %v3398_v18  ;;  %v3392_v33 = vmul.f32 1.442695, %v3284_v46  ;;  %v3285_v49 = vsub.f32 %v8226_v32, %v3185_v8  ;;  %v7696_v7 = vpop.eup %5847  ;;  %v8232_v46 = vld [vmem:[#allocation16_spill] sm:$0xff] }
 0x7c7   : > { %v3200_v39 = vpop.xlane.xlu0 %3199  ;;  %5531 = vmatprep.mubr.msk.bf16.mxu0 %vm479_vm0, %v3642_v38 }
 0x7c8   : > { %v7699_v50 = vpop.eup %5849  ;;  %v3394_v10 = vmul.f32 1.442695, %v3285_v49  ;;  %v3290_v37 = vsub.f32 %v8227_v11, %v3200_v39  ;;  %5532 = vmatmul.mubr.msk.bf16.gmra.mrb[80].mxu0 %vm479_vm0, %v3643_v60  ;;  %5859 = vpow2.f32 %v3392_v33 }
 0x7c9   : > { %v3645_v59 = vpack.c.bf16 %v7699_v50, %v7696_v7  ;;  %v3203_v63 = vpop.xlane.xlu1 %3202 }
 0x7ca   : > { %5861 = vpow2.f32 %v3394_v10  ;;  %v3404_v31 = vmul.f32 1.442695, %v3290_v37  ;;  %v3291_v20 = vsub.f32 %v8228_v24, %v3203_v63  ;;  %v7706_v52 = vpop.eup %5851  ;;  %v8233_v10 = vld [vmem:[#allocation18_spill] sm:$0xff] }
 0x7cb   : > { %v3194_v62 = vpop.xlane.xlu0 %3193 }
 0x7cc   : > { %v7708_v16 = vpop.eup %5853  ;;  %v3406_v47 = vmul.f32 1.442695, %v3291_v20  ;;  %v3288_v35 = vsub.f32 %v8229_v22, %v3194_v62  ;;  %5863 = vpow2.f32 %v3404_v31  ;;  %v8234_v31 = vld [vmem:[#allocation20_spill] sm:$0xff] }
 0x7cd   : > { %v3197_v3 = vpop.xlane.xlu1 %3196  ;;  %v3644_v5 = vpack.c.bf16 %v7708_v16, %v7706_v52 }
 0x7ce   : > { %5865 = vpow2.f32 %v3406_v47  ;;  %v3400_v0 = vmul.f32 1.442695, %v3288_v35  ;;  %v3289_v48 = vsub.f32 %v8230_v12, %v3197_v3  ;;  %v7714_v34 = vpop.eup %5855  ;;  %v8235_v35 = vld [vmem:[#allocation19_spill] sm:$0xff] }
 0x7cf   : > { %5537 = vmatprep.mubr.msk.bf16.mxu1 %vm479_vm0, %v3644_v5 }
 0x7d0   : > { %v7717_v53 = vpop.eup %5857  ;;  %v3402_v17 = vmul.f32 1.442695, %v3289_v48  ;;  %v3206_v60 = vpop.xlane.xlu0 %3205  ;;  %5538 = vmatmul.mubr.msk.bf16.vlgmr.msra.gmra.mrb[84].mxu1 %vm479_vm0, %v3645_v59  ;;  %5867 = vpow2.f32 %v3400_v0  ;;  %v8236_v48 = vld [vmem:[#allocation21_spill] sm:$0xff] }
 0x7d1   : > { %v3292_v29 = vsub.f32 %v8231_v1, %v3206_v60  ;;  %5556 = vmatpush3.bf16.xpose.msra.mxu1 %v4229_v28  ;;  %v3647_v43 = vpack.c.bf16 %v7717_v53, %v7714_v34 }
 0x7d2   : > { %5869 = vpow2.f32 %v3402_v17  ;;  %v3209_v57 = vpop.xlane.xlu1 %3208  ;;  %v7725_v18 = vpop.eup %5859 }
 0x7d3   : > { %v3408_v41 = vmul.f32 1.442695, %v3292_v29  ;;  %v3293_v8 = vsub.f32 %v8232_v46, %v3209_v57  ;;  %v8237_v29 = vld [vmem:[#allocation10_spill] sm:$0xff] }
 0x7d4   : > { %v7728_v38 = vpop.eup %5861 }
 0x7d5   : > { %v3410_v2 = vmul.f32 1.442695, %v3293_v8  ;;  %v3646_v33 = vpack.c.bf16 %v7728_v38, %v7725_v18  ;;  %5871 = vpow2.f32 %v3408_v41  ;;  %v8238_v8 = vld [vmem:[#allocation14_spill] sm:$0xff] }
 0x7d6   : > { %v7732_v32 = vpop.eup %5863 }
 0x7d7   : > { %5873 = vpow2.f32 %v3410_v2  ;;  %v3224_v49 = vpop.xlane.xlu0 %3223  ;;  %5541 = vmatprep.mubr.msk.bf16.mxu1 %vm479_vm0, %v3646_v33 }
 0x7d8   : > { %v7735_v39 = vpop.eup %5865  ;;  %v3298_v11 = vsub.f32 %v8233_v10, %v3224_v49  ;;  %5542 = vmatmul.mubr.msk.bf16.gmra.mrb[88].mxu1 %vm479_vm0, %v3647_v43 }
 0x7d9   : > { %v3649_v37 = vpack.c.bf16 %v7735_v39, %v7732_v32  ;;  %v3227_v59 = vpop.xlane.xlu1 %3226 }
 0x7da   : > { %v3420_v63 = vmul.f32 1.442695, %v3298_v11  ;;  %v3299_v24 = vsub.f32 %v8234_v31, %v3227_v59  ;;  %v7742_v20 = vpop.eup %5867  ;;  %v8239_v11 = vld [vmem:[#allocation13_spill] sm:$0xff] }
 0x7db   : > { %v3218_v62 = vpop.xlane.xlu0 %3217  ;;  %v8240_v31 = vld [vmem:[#allocation17_spill] sm:$0xff] }
 0x7dc   : > { %v7744_v47 = vpop.eup %5869  ;;  %v3422_v22 = vmul.f32 1.442695, %v3299_v24  ;;  %v3296_v3 = vsub.f32 %v8235_v35, %v3218_v62  ;;  %5875 = vpow2.f32 %v3420_v63 }
 0x7dd   : > { %v3221_v5 = vpop.xlane.xlu1 %3220  ;;  %v3648_v0 = vpack.c.bf16 %v7744_v47, %v7742_v20 }
 0x7de   : > { %5877 = vpow2.f32 %v3422_v22  ;;  %v3416_v12 = vmul.f32 1.442695, %v3296_v3  ;;  %v3297_v28 = vsub.f32 %v8236_v48, %v3221_v5  ;;  %v8241_v5 = vld [vmem:[#allocation11_spill] sm:$0xff] }
 0x7df   : > { %v3212_v17 = vpop.xlane.xlu0 %3211  ;;  %5547 = vmatprep.mubr.msk.bf16.mxu0 %vm479_vm0, %v3648_v0  ;;  %v7751_v60 = vpop.eup %5871 }
 0x7e0   : > { %v3418_v1 = vmul.f32 1.442695, %v3297_v28  ;;  %v3294_v43 = vsub.f32 %v8237_v29, %v3212_v17  ;;  %5548 = vmatmul.mubr.msk.bf16.vlgmr.msra.gmra.mrb[84].mxu0 %vm479_vm0, %v3649_v37  ;;  %5879 = vpow2.f32 %v3416_v12  ;;  %v8242_v17 = vld [vmem:[#allocation15_spill] sm:$0xff] }
 0x7e1   : > { %v7755_v57 = vpop.eup %5873  ;;  %v3215_v41 = vpop.xlane.xlu1 %3214 }
 0x7e2   : > { %5881 = vpow2.f32 %v3418_v1  ;;  %v3412_v46 = vmul.f32 1.442695, %v3294_v43  ;;  %v3295_v2 = vsub.f32 %v8238_v8, %v3215_v41  ;;  %v3650_v33 = vpack.c.bf16 %v7755_v57, %v7751_v60 }
 0x7e3   : > { %v3230_v49 = vpop.xlane.xlu0 %3229 }
 0x7e4   : > { %v3414_v10 = vmul.f32 1.442695, %v3295_v2  ;;  %v3300_v59 = vsub.f32 %v8239_v11, %v3230_v49  ;;  %5551 = vmatprep.mubr.msk.bf16.mxu0 %vm479_vm0, %v3650_v33  ;;  %5883 = vpow2.f32 %v3412_v46 }
 0x7e5   : > { %v3233_v63 = vpop.xlane.xlu1 %3232 }
 0x7e6   : > { %5885 = vpow2.f32 %v3414_v10  ;;  %v3424_v37 = vmul.f32 1.442695, %v3300_v59  ;;  %v3301_v24 = vsub.f32 %v8240_v31, %v3233_v63  ;;  %v7763_v62 = vpop.eup %5875 }
 0x7e7   : > { %v3236_v22 = vpop.xlane.xlu0 %3235 }
 0x7e8   : > { %v7765_v35 = vpop.eup %5877  ;;  %5887 = vpow2.f32 %v3424_v37  ;;  %v3426_v3 = vmul.f32 1.442695, %v3301_v24  ;;  %v3302_v0 = vsub.f32 %v8241_v5, %v3236_v22 }
 0x7e9   : > { %v3653_v12 = vpack.c.bf16 %v7765_v35, %v7763_v62  ;;  %v3239_v48 = vpop.xlane.xlu1 %3238 }
 0x7ea   : > { %5889 = vpow2.f32 %v3426_v3  ;;  %v3428_v28 = vmul.f32 1.442695, %v3302_v0  ;;  %v3303_v1 = vsub.f32 %v8242_v17, %v3239_v48  ;;  %v7771_v29 = vpop.eup %5879  ;;  %v3486_v3 = vsel %vm479_vm0, %v7577_v44, 0.0 }
 0x7eb   : > { %v3480_v0 = vsel %vm479_vm0, %v7588_v27, 0.0  ;;  %v3489_v48 = vsel %vm479_vm0, %v7580_v56, 0.0  ;;  %v3498_v44 = vsel %vm479_vm0, %v7596_v15, 0.0  ;;  %v3495_v27 = vsel %vm479_vm0, %v7612_v19, 0.0 }
 0x7ec   : > { %v7773_v43 = vpop.eup %5881  ;;  %5891 = vpow2.f32 %v3428_v28  ;;  %v3430_v41 = vmul.f32 1.442695, %v3303_v1  ;;  %v3492_v28 = vsel %vm479_vm0, %v7610_v58, 0.0  ;;  %v3504_v56 = vsel %vm479_vm0, %v7628_v23, 0.0 }
 0x7ed   : > { %v3652_v46 = vpack.c.bf16 %v7773_v43, %v7771_v29  ;;  %v3510_v58 = vsel %vm479_vm0, %v7618_v21, 0.0  ;;  %v3507_v15 = vsel %vm479_vm0, %v7630_v14, 0.0  ;;  %v3513_v19 = vsel %vm479_vm0, %v7621_v36, 0.0 }
 0x7ee   : > { %5893 = vpow2.f32 %v3430_v41  ;;  %v7777_v8 = vpop.eup %5883  ;;  %v3522_v23 = vsel %vm479_vm0, %v7636_v61, 0.0  ;;  %v3519_v21 = vsel %vm479_vm0, %v7652_v42, 0.0  ;;  %v3525_v14 = vsel %vm479_vm0, %v7639_v9, 0.0 }
 0x7ef   : > { %5557 = vmatprep.mubr.msk.bf16.mxu1 %vm479_vm0, %v3652_v46  ;;  %v3528_v36 = vsel %vm479_vm0, %v7668_v54, 0.0  ;;  %v3531_v61 = vsel %vm479_vm0, %v7670_v30, 0.0  ;;  %v3537_v42 = vsel %vm479_vm0, %v7661_v55, 0.0  ;;  %v3540_v9 = vsel %vm479_vm0, %v7688_v40, 0.0 }
 0x7f0   : > { %v7780_v2 = vpop.eup %5885  ;;  %5558 = vmatmul.mubr.msk.bf16.vlgmr.msra.gmra.mrb[92].mxu1 %vm479_vm0, %v3653_v12  ;;  %v3483_v12 = vsel %vm479_vm0, %v7590_v26, 0.0  ;;  %v3501_v26 = vsel %vm479_vm0, %v7599_v45, 0.0  ;;  %v3516_v45 = vsel %vm479_vm0, %v7650_v25, 0.0  ;;  %v3534_v25 = vsel %vm479_vm0, %v7658_v51, 0.0 }
 0x7f1   : > { %v3651_v33 = vpack.c.bf16 %v7780_v2, %v7777_v8  ;;  %v3546_v54 = vsel %vm479_vm0, %v7676_v4, 0.0  ;;  %v3543_v51 = vsel %vm479_vm0, %v7690_v6, 0.0  ;;  %v3549_v30 = vsel %vm479_vm0, %v7679_v13, 0.0 }
 0x7f2   : > { %v5888_v49 = vpop.eup %5887  ;;  %v3552_v55 = vsel %vm479_vm0, %v7706_v52, 0.0  ;;  %v3558_v40 = vsel %vm479_vm0, %v7696_v7, 0.0  ;;  %v3555_v4 = vsel %vm479_vm0, %v7708_v16, 0.0  ;;  %v3561_v6 = vsel %vm479_vm0, %v7699_v50, 0.0 }
 0x7f3   : > { %5552 = vmatmul.mubr.msk.bf16.gmra.mrb[88].mxu0 %vm479_vm0, %v3651_v33  ;;  %v3612_v10 = vsel %vm479_vm0, %v5888_v49, 0.0  ;;  %v3564_v13 = vsel %vm479_vm0, %v7725_v18, 0.0  ;;  %v3570_v52 = vsel %vm479_vm0, %v7714_v34, 0.0  ;;  %v3573_v7 = vsel %vm479_vm0, %v7717_v53, 0.0 }
 0x7f4   : > { %v5890_v11 = vpop.eup %5889  ;;  %3613 = vadd.xlane.f32.xlu1 %v3612_v10  ;;  %v3582_v16 = vsel %vm479_vm0, %v7732_v32, 0.0  ;;  %v3567_v50 = vsel %vm479_vm0, %v7728_v38, 0.0  ;;  %v3585_v46 = vsel %vm479_vm0, %v7735_v39, 0.0  ;;  %v3576_v34 = vsel %vm479_vm0, %v7742_v20, 0.0 }
 0x7f5   : > { %v3654_v59 = vpack.c.bf16 %v5890_v11, %v5888_v49  ;;  %v3615_v5 = vsel %vm479_vm0, %v5890_v11, 0.0  ;;  %v3594_v32 = vsel %vm479_vm0, %v7777_v8, 0.0  ;;  %v3579_v38 = vsel %vm479_vm0, %v7744_v47, 0.0 }
 0x7f6   : > { %v5892_v63 = vpop.eup %5891  ;;  %v3597_v49 = vsel %vm479_vm0, %v7780_v2, 0.0  ;;  %v3588_v20 = vsel %vm479_vm0, %v7751_v60, 0.0  ;;  %v3600_v47 = vsel %vm479_vm0, %v7771_v29, 0.0  ;;  %v3609_v60 = vsel %vm479_vm0, %v7765_v35, 0.0 }
 0x7f7   : > { %5561 = vmatprep.mubr.msk.bf16.mxu1 %vm479_vm0, %v3654_v59  ;;  %v3618_v37 = vsel %vm479_vm0, %v5892_v63, 0.0  ;;  %v3591_v59 = vsel %vm479_vm0, %v7755_v57, 0.0 }
 0x7f8   : > { %v5894_v31 = vpop.eup %5893  ;;  %3619 = vadd.xlane.f32.xlu0 %v3618_v37 }
 0x7f9   : > { %v3621_v24 = vsel %vm479_vm0, %v5894_v31, 0.0  ;;  %v3655_v22 = vpack.c.bf16 %v5894_v31, %v5892_v63 }
 0x7fa   : > { %3622 = vadd.xlane.f32.xlu1 %v3621_v24  ;;  %v3606_v24 = vsel %vm479_vm0, %v7763_v62, 0.0 }
 0x7fb   : > { %5562 = vmatmul.mubr.msk.bf16.gmra.mrb[96].mxu1 %vm479_vm0, %v3655_v22 }
 0x7fc   : > { %3487 = vadd.xlane.f32.xlu0 %v3486_v3  ;;  %v3603_v3 = vsel %vm479_vm0, %v7773_v43, 0.0 }
 0x7fd   : > { %v3440_v17 = vpop.xlane.xlu0 %3439 }
 0x7fe   : > { %3616 = vadd.xlane.f32.xlu1 %v3615_v5  ;;  %5895 = vrcp.f32 %v3440_v17 }
 0x800   : > { %3481 = vadd.xlane.f32.xlu0 %v3480_v0 }
 0x801   : > { %v3434_v1 = vpop.xlane.xlu0 %3433 }
 0x802   : > { %3484 = vadd.xlane.f32.xlu1 %v3483_v12  ;;  %5897 = vrcp.f32 %v3434_v1 }
 0x803   : > { %v3437_v18 = vpop.xlane.xlu1 %3436 }
 0x804   : > { %3490 = vadd.xlane.f32.xlu0 %v3489_v48  ;;  %5899 = vrcp.f32 %v3437_v18 }
 0x805   : > { %v3443_v41 = vpop.xlane.xlu0 %3442 }
 0x806   : > { %3493 = vadd.xlane.f32.xlu1 %v3492_v28  ;;  %5901 = vrcp.f32 %v3443_v41 }
 0x808   : > { %3499 = vadd.xlane.f32.xlu0 %v3498_v44  ;;  %v5896_v48 = vpop.eup %5895 }
 0x80a   : > { %3496 = vadd.xlane.f32.xlu1 %v3495_v27 }
 0x80c   : > { %3502 = vadd.xlane.f32.xlu0 %v3501_v26  ;;  %v5898_v28 = vpop.eup %5897 }
 0x80d   : > { %v3452_v33 = vpop.xlane.xlu0 %3451 }
 0x80e   : > { %3505 = vadd.xlane.f32.xlu1 %v3504_v56  ;;  %v5900_v44 = vpop.eup %5899 }
 0x810   : > { %3511 = vadd.xlane.f32.xlu0 %v3510_v58  ;;  %v5902_v26 = vpop.eup %5901 }
 0x811   : > { %v3446_v10 = vpop.xlane.xlu0 %3445 }
 0x812   : > { %3508 = vadd.xlane.f32.xlu1 %v3507_v15 }
 0x813   : > { %v3449_v53 = vpop.xlane.xlu1 %3448 }
 0x814   : > { %3514 = vadd.xlane.f32.xlu0 %v3513_v19 }
 0x815   : > { %v3455_v37 = vpop.xlane.xlu0 %3454 }
 0x816   : > { %3517 = vadd.xlane.f32.xlu1 %v3516_v45 }
 0x817   : > { %v3464_v39 = vpop.xlane.xlu1 %3463 }
 0x818   : > { %3523 = vadd.xlane.f32.xlu0 %v3522_v23  ;;  %5903 = vrcp.f32 %v3464_v39 }
 0x819   : > { %v3467_v22 = vpop.xlane.xlu0 %3466 }
 0x81a   : > { %3520 = vadd.xlane.f32.xlu1 %v3519_v21 }
 0x81b   : > { %v3458_v2 = vpop.xlane.xlu1 %3457 }
 0x81c   : > { %3526 = vadd.xlane.f32.xlu0 %v3525_v14  ;;  %5905 = vrcp.f32 %v3458_v2 }
 0x81d   : > { %v3476_v29 = vpop.xlane.xlu0 %3475  ;;  %5907 = vrcp.f32 %v3467_v22 }
 0x81e   : > { %3529 = vadd.xlane.f32.xlu1 %v3528_v36 }
 0x81f   : > { %v3461_v57 = vpop.xlane.xlu1 %3460 }
 0x820   : > { %3535 = vadd.xlane.f32.xlu0 %v3534_v25  ;;  %5909 = vrcp.f32 %v3461_v57 }
 0x821   : > { %5911 = vrcp.f32 %v3452_v33  ;;  %v3479_v43 = vpop.xlane.xlu0 %3478 }
 0x822   : > { %3532 = vadd.xlane.f32.xlu1 %v3531_v61  ;;  %5913 = vrcp.f32 %v3446_v10  ;;  %v5904_v56 = vpop.eup %5903 }
 0x823   : > { %v3470_v62 = vpop.xlane.xlu1 %3469  ;;  %5915 = vrcp.f32 %v3449_v53 }
 0x824   : > { %3538 = vadd.xlane.f32.xlu0 %v3537_v42  ;;  %5917 = vrcp.f32 %v3455_v37 }
 0x825   : > { %5919 = vrcp.f32 %v3476_v29 }
 0x826   : > { %3541 = vadd.xlane.f32.xlu1 %v3540_v9  ;;  %5921 = vrcp.f32 %v3470_v62  ;;  %v5906_v15 = vpop.eup %5905 }
 0x827   : > { %v3473_v27 = vpop.xlane.xlu1 %3472  ;;  %5923 = vrcp.f32 %v3479_v43  ;;  %v5908_v21 = vpop.eup %5907 }
 0x828   : > { %3547 = vadd.xlane.f32.xlu0 %v3546_v54  ;;  %5925 = vrcp.f32 %v3473_v27 }
 0x82a   : > { %3544 = vadd.xlane.f32.xlu1 %v3543_v51  ;;  %v5910_v61 = vpop.eup %5909 }
 0x82c   : > { %3550 = vadd.xlane.f32.xlu0 %v3549_v30  ;;  %v5912_v30 = vpop.eup %5911 }
 0x82d   : > { %v5914_v17 = vpop.eup %5913 }
 0x82e   : > { %3553 = vadd.xlane.f32.xlu1 %v3552_v55 }
 0x830   : > { %3559 = vadd.xlane.f32.xlu0 %v3558_v40 }
 0x832   : > { %3556 = vadd.xlane.f32.xlu1 %v3555_v4 }
 0x834   : > { %3562 = vadd.xlane.f32.xlu0 %v3561_v6 }
 0x836   : > { %3565 = vadd.xlane.f32.xlu1 %v3564_v13  ;;  %v5916_v13 = vpop.eup %5915 }
 0x837   : > { %v5918_v1 = vpop.eup %5917 }
 0x838   : > { %3571 = vadd.xlane.f32.xlu0 %v3570_v52 }
 0x83a   : > { %3574 = vadd.xlane.f32.xlu1 %v3573_v7  ;;  %v5920_v7 = vpop.eup %5919 }
 0x83c   : > { %3583 = vadd.xlane.f32.xlu0 %v3582_v16 }
 0x83e   : > { %3568 = vadd.xlane.f32.xlu1 %v3567_v50  ;;  %v5922_v50 = vpop.eup %5921 }
 0x840   : > { %3586 = vadd.xlane.f32.xlu0 %v3585_v46 }
 0x842   : > { %3577 = vadd.xlane.f32.xlu1 %v3576_v34  ;;  %v5924_v34 = vpop.eup %5923 }
 0x844   : > { %3595 = vadd.xlane.f32.xlu0 %v3594_v32 }
 0x846   : > { %3580 = vadd.xlane.f32.xlu1 %v3579_v38  ;;  %v5926_v38 = vpop.eup %5925 }
 0x848   : > { %3598 = vadd.xlane.f32.xlu0 %v3597_v49 }
 0x84a   : > { %3589 = vadd.xlane.f32.xlu1 %v3588_v20 }
 0x84b   : > { %v5489_v11 = vpop.f32.mrb[60].mxu0 }
 0x84c   : > { %v3705_v8 = vpop.f32.mrb[61].mxu0  ;;  %3592 = vadd.xlane.f32.xlu0 %v3591_v59  ;;  %v4362_v19 = vmul.f32 %v5896_v48, %v5489_v11 }
 0x84d   : > { %v5490_v63 = vpop.f32.mrb[62].mxu0  ;;  %v4360_v14 = vmul.f32 %v5898_v28, %v3705_v8 }
 0x84e   : > { %v3708_v31 = vpop.f32.mrb[63].mxu0  ;;  %3601 = vadd.xlane.f32.xlu1 %v3600_v47  ;;  %v4363_v42 = vmul.f32 %v5902_v26, %v5490_v63 }
 0x84f   : > { %v4361_v55 = vmul.f32 %v5900_v44, %v3708_v31 }
 0x850   : > { %3607 = vadd.xlane.f32.xlu0 %v3606_v24 }
 0x852   : > { %3610 = vadd.xlane.f32.xlu1 %v3609_v60 }
 0x856   : > { %3604 = vadd.xlane.f32.xlu1 %v3603_v3 }
 0x85b   : > { %v5493_v5 = vpop.f32.mrb[64].mxu0 }
 0x85c   : > { %v3721_v0 = vpop.f32.mrb[65].mxu0  ;;  %v4366_v41 = vmul.f32 %v5912_v30, %v5493_v5 }
 0x85d   : > { %v5494_v35 = vpop.f32.mrb[66].mxu0  ;;  %v4364_v33 = vmul.f32 %v5914_v17, %v3721_v0 }
 0x85e   : > { %v3724_v12 = vpop.f32.mrb[67].mxu0  ;;  %v4367_v49 = vmul.f32 %v5918_v1, %v5494_v35 }
 0x85f   : > { %v4365_v11 = vmul.f32 %v5916_v13, %v3724_v12 }
 0x863   : > { %v5499_v58 = vpop.f32.mrb[68].mxu1 }
 0x864   : > { %v4370_v45 = vmul.f32 %v5904_v56, %v5499_v58  ;;  %v3785_v23 = vpop.f32.mrb[69].mxu1 }
 0x865   : > { %v4368_v36 = vmul.f32 %v5906_v15, %v3785_v23  ;;  %v5500_v25 = vpop.f32.mrb[70].mxu1 }
 0x866   : > { %v5623_v9 = vpack.i.bf16 %v4370_v45, %v4362_v19  ;;  %v4371_v54 = vmul.f32 %v5908_v21, %v5500_v25  ;;  %v3788_v51 = vpop.f32.mrb[71].mxu1 }
 0x867   : > { %v5619_v40 = vpack.i.bf16 %v4368_v36, %v4360_v14  ;;  %v4369_v4 = vmul.f32 %v5910_v61, %v3788_v51 }
 0x868   : > { %v5625_v6 = vpack.i.bf16 %v4371_v54, %v4363_v42 }
 0x869   : > { %v5621_v52 = vpack.i.bf16 %v4369_v4, %v4361_v55 }
 0x86b   : > { %v5503_v16 = vpop.f32.mrb[72].mxu1 }
 0x86c   : > { %v4374_v18 = vmul.f32 %v5920_v7, %v5503_v16  ;;  %v3801_v46 = vpop.f32.mrb[73].mxu1 }
 0x86d   : > { %v4372_v53 = vmul.f32 %v5922_v50, %v3801_v46  ;;  %v5504_v32 = vpop.f32.mrb[74].mxu1 }
 0x86e   : > { %v5631_v10 = vpack.i.bf16 %v4374_v18, %v4366_v41  ;;  %v4375_v39 = vmul.f32 %v5924_v34, %v5504_v32  ;;  %v3804_v20 = vpop.f32.mrb[75].mxu1 }
 0x86f   : > { %v5627_v59 = vpack.i.bf16 %v4372_v53, %v4364_v33  ;;  %v4373_v8 = vmul.f32 %v5926_v38, %v3804_v20 }
 0x870   : > { %v5633_v63 = vpack.i.bf16 %v4375_v39, %v4367_v49 }
 0x871   : > { %v5629_v47 = vpack.i.bf16 %v4373_v8, %v4365_v11 }
 0x873   : > { %v7880_v37 = vpop.f32.mrb[68].mxu0 }
 0x874   : > { %v7882_v31 = vpop.f32.mrb[69].mxu0 }
 0x875   : > { %v7884_v2 = vpop.f32.mrb[70].mxu0 }
 0x876   : > { %v7886_v24 = vpop.f32.mrb[71].mxu0 }
 0x87b   : > { %v7888_v60 = vpop.f32.mrb[72].mxu0 }
 0x87c   : > { %v7890_v22 = vpop.f32.mrb[73].mxu0 }
 0x87d   : > { %v7892_v57 = vpop.f32.mrb[74].mxu0  ;;  %5620 = vxpose.xlu0.b32.start [1/8] (short) (narrow) %v5619_v40, 16 }
 0x87e   : > { %v7894_v3 = vpop.f32.mrb[75].mxu0 }
 0x881   : > { %5622 = vxpose.xlu0.b32.cont [2/8] (short) (narrow) %v5621_v52, 16  ;;  %v7896_v29 = vpop.xlane.xlu1 %3613 }
 0x883   : > { %v7898_v62 = vpop.f32.mrb[76].mxu1 }
 0x884   : > { %v3945_v5 = vpop.f32.mrb[77].mxu1 }
 0x885   : > { %v7900_v0 = vpop.xlane.xlu0 %3619  ;;  %v7902_v35 = vpop.f32.mrb[78].mxu1  ;;  %5624 = vxpose.xlu0.b32.cont [3/8] (short) (narrow) %v5623_v9, 16 }
 0x886   : > { %v7904_v12 = vpop.f32.mrb[79].mxu1 }
 0x887   : > { %v7906_v48 = vpop.xlane.xlu1 %3622 }
 0x889   : > { %v3488_v28 = vpop.xlane.xlu0 %3487  ;;  %5626 = vxpose.xlu0.b32.cont [4/8] (short) (narrow) %v5625_v6, 16 }
 0x88b   : > { %v7908_v43 = vpop.f32.mrb[80].mxu1  ;;  %v7910_v44 = vpop.xlane.xlu1 %3616 }
 0x88c   : > { %v7912_v27 = vpop.f32.mrb[81].mxu1 }
 0x88d   : > { %v3482_v26 = vpop.xlane.xlu0 %3481  ;;  %v7914_v56 = vpop.f32.mrb[82].mxu1  ;;  %5628 = vxpose.xlu0.b32.cont [5/8] (short) (narrow) %v5627_v59, 16 }
 0x88e   : > { %v7916_v58 = vpop.f32.mrb[83].mxu1  ;;  %5927 = vrcp.f32 %v3482_v26 }
 0x88f   : > { %v3485_v15 = vpop.xlane.xlu1 %3484  ;;  %5929 = vrcp.f32 %v3488_v28 }
 0x891   : > { %v3491_v19 = vpop.xlane.xlu0 %3490  ;;  %5630 = vxpose.xlu0.b32.cont [6/8] (short) (narrow) %v5629_v47, 16 }
 0x893   : > { %v7918_v45 = vpop.f32.mrb[76].mxu0  ;;  %v3494_v23 = vpop.xlane.xlu1 %3493 }
 0x894   : > { %v7920_v21 = vpop.f32.mrb[77].mxu0 }
 0x895   : > { %v7922_v14 = vpop.f32.mrb[78].mxu0  ;;  %v3500_v36 = vpop.xlane.xlu0 %3499  ;;  %5632 = vxpose.xlu0.b32.cont [7/8] (short) (narrow) %v5631_v10, 16 }
 0x896   : > { %v7924_v25 = vpop.f32.mrb[79].mxu0 }
 0x897   : > { %v3497_v61 = vpop.xlane.xlu1 %3496 }
 0x898   : > { %v5928_v52 = vpop.eup %5927 }
 0x899   : > { %v3503_v42 = vpop.xlane.xlu0 %3502  ;;  %5634 = vxpose.xlu0.b32.end [8/8] (short) (narrow) %v5633_v63, 16  ;;  %v5930_v7 = vpop.eup %5929  ;;  %v4376_v34 = vmul.f32 %v5928_v52, %v7882_v31 }
 0x89a   : > { %v4378_v49 = vmul.f32 %v5930_v7, %v7880_v37 }
 0x89b   : > { %v7926_v9 = vpop.f32.mrb[80].mxu0  ;;  %v3506_v54 = vpop.xlane.xlu1 %3505 }
 0x89c   : > { %5931 = vrcp.f32 %v3506_v54  ;;  %v7928_v51 = vpop.f32.mrb[81].mxu0 }
 0x89d   : > { %5933 = vrcp.f32 %v3485_v15  ;;  %v7930_v30 = vpop.f32.mrb[82].mxu0  ;;  %v3512_v55 = vpop.xlane.xlu0 %3511 }
 0x89e   : > { %5935 = vrcp.f32 %v3512_v55  ;;  %v7932_v40 = vpop.f32.mrb[83].mxu0 }
 0x89f   : > { %5937 = vrcp.f32 %v3491_v19  ;;  %v3509_v4 = vpop.xlane.xlu1 %3508 }
 0x8a0   : > { %5939 = vrcp.f32 %v3509_v4 }
 0x8a1   : > { %5941 = vrcp.f32 %v3494_v23  ;;  %v3515_v17 = vpop.xlane.xlu0 %3514 }
 0x8a2   : > { %5943 = vrcp.f32 %v3515_v17 }
 0x8a3   : > { %5945 = vrcp.f32 %v3500_v36  ;;  %v7934_v6 = vpop.f32.mrb[84].mxu1  ;;  %v3518_v13 = vpop.xlane.xlu1 %3517 }
 0x8a4   : > { %5947 = vrcp.f32 %v3518_v13  ;;  %v7936_v1 = vpop.f32.mrb[85].mxu1 }
 0x8a5   : > { %5949 = vrcp.f32 %v3497_v61  ;;  %v3524_v16 = vpop.xlane.xlu0 %3523  ;;  %v7938_v50 = vpop.f32.mrb[86].mxu1 }
 0x8a6   : > { %v5932_v41 = vpop.eup %5931  ;;  %5951 = vrcp.f32 %v3524_v16  ;;  %v7940_v18 = vpop.f32.mrb[87].mxu1 }
 0x8a7   : > { %v5934_v46 = vpop.eup %5933  ;;  %5953 = vrcp.f32 %v3503_v42  ;;  %v4384_v33 = vmul.f32 %v5932_v41, %v3945_v5  ;;  %v3521_v53 = vpop.xlane.xlu1 %3520 }
 0x8a8   : > { %v5936_v32 = vpop.eup %5935  ;;  %5955 = vrcp.f32 %v3521_v53  ;;  %v4377_v8 = vmul.f32 %v5934_v46, %v7886_v24 }
 0x8a9   : > { %v5938_v38 = vpop.eup %5937  ;;  %v4386_v10 = vmul.f32 %v5936_v32, %v7898_v62  ;;  %v3527_v39 = vpop.xlane.xlu0 %3526  ;;  %v5645_v20 = vpack.i.bf16 %v4384_v33, %v4376_v34 }
 0x8aa   : > { %v5940_v11 = vpop.eup %5939  ;;  %5957 = vrcp.f32 %v3527_v39  ;;  %v4379_v62 = vmul.f32 %v5938_v38, %v7884_v2 }
 0x8ab   : > { %v5942_v59 = vpop.eup %5941  ;;  %v4385_v63 = vmul.f32 %v5940_v11, %v7904_v12  ;;  %v7947_v47 = vpop.f32.mrb[88].mxu1  ;;  %5646 = vxpose.xlu1.b32.start [1/8] (short) (narrow) %v5645_v20, 16  ;;  %v5649_v5 = vpack.i.bf16 %v4386_v10, %v4378_v49  ;;  %5959 = vrcp.f32 %v7896_v29 }
 0x8ac   : > { %v3530_v31 = vpop.xlane.xlu1 %3529  ;;  %v5944_v28 = vpop.eup %5943  ;;  %v4380_v42 = vmul.f32 %v5942_v59, %v7890_v22  ;;  %5961 = vrcp.f32 %v7900_v0 }
 0x8ad   : > { %v7949_v26 = vpop.f32.mrb[89].mxu1  ;;  %v5946_v37 = vpop.eup %5945  ;;  %v4387_v15 = vmul.f32 %v5944_v28, %v7902_v35  ;;  %v5647_v36 = vpack.i.bf16 %v4385_v63, %v4377_v8  ;;  %5963 = vrcp.f32 %v7906_v48 }
 0x8ae   : > { %v3536_v19 = vpop.xlane.xlu0 %3535  ;;  %v7953_v23 = vpop.f32.mrb[90].mxu1  ;;  %v4382_v2 = vmul.f32 %v5946_v37, %v7888_v60  ;;  %5965 = vrcp.f32 %v3530_v31 }
 0x8af   : > { %v5948_v24 = vpop.eup %5947  ;;  %v7955_v61 = vpop.f32.mrb[91].mxu1  ;;  %5648 = vxpose.xlu1.b32.cont [2/8] (short) (narrow) %v5647_v36, 16  ;;  %v5651_v4 = vpack.i.bf16 %v4387_v15, %v4379_v62  ;;  %5967 = vrcp.f32 %v3536_v19 }
 0x8b0   : > { %v5950_v12 = vpop.eup %5949  ;;  %v4388_v54 = vmul.f32 %v5948_v24, %v7912_v27  ;;  %v3533_v55 = vpop.xlane.xlu1 %3532 }
 0x8b1   : > { %v5952_v17 = vpop.eup %5951  ;;  %v4381_v41 = vmul.f32 %v5950_v12, %v7894_v3 }
 0x8b2   : > { %v5954_v13 = vpop.eup %5953  ;;  %v4390_v35 = vmul.f32 %v5952_v17, %v7908_v43  ;;  %v3539_v52 = vpop.xlane.xlu0 %3538  ;;  %v5653_v7 = vpack.i.bf16 %v4388_v54, %v4380_v42 }
 0x8b3   : > { %v5956_v16 = vpop.eup %5955  ;;  %5650 = vxpose.xlu1.b32.cont [3/8] (short) (narrow) %v5649_v5, 16  ;;  %v7963_v34 = vpop.f32.mrb[84].mxu0  ;;  %v4383_v32 = vmul.f32 %v5954_v13, %v7892_v57 }
 0x8b4   : > { %v4389_v46 = vmul.f32 %v5956_v16, %v7916_v58  ;;  %v3542_v22 = vpop.xlane.xlu1 %3541  ;;  %v5657_v27 = vpack.i.bf16 %v4390_v35, %v4382_v2  ;;  %v5958_v33 = vpop.eup %5957 }
 0x8b5   : > { %v7965_v53 = vpop.f32.mrb[85].mxu0  ;;  %v4391_v60 = vmul.f32 %v5958_v33, %v7914_v56  ;;  %v7976_v29 = vpop.eup %5959 }
 0x8b6   : > { %v3548_v43 = vpop.xlane.xlu0 %3547  ;;  %v7969_v38 = vpop.f32.mrb[86].mxu0  ;;  %v5655_v49 = vpack.i.bf16 %v4389_v46, %v4381_v41 }
 0x8b7   : > { %v7971_v10 = vpop.f32.mrb[87].mxu0  ;;  %5652 = vxpose.xlu1.b32.cont [4/8] (short) (narrow) %v5651_v4, 16  ;;  %v5659_v58 = vpack.i.bf16 %v4391_v60, %v4383_v32  ;;  %v5962_v0 = vpop.eup %5961 }
 0x8b8   : > { %v3545_v3 = vpop.xlane.xlu1 %3544  ;;  %v5964_v48 = vpop.eup %5963 }
 0x8b9   : > { %v5966_v63 = vpop.eup %5965 }
 0x8ba   : > { %v3551_v39 = vpop.xlane.xlu0 %3550  ;;  %v5968_v5 = vpop.eup %5967  ;;  %v4392_v42 = vmul.f32 %v5966_v63, %v7920_v21 }
 0x8bb   : > { %5654 = vxpose.xlu1.b32.cont [5/8] (short) (narrow) %v5653_v7, 16 }
 0x8bc   : > { %v3554_v57 = vpop.xlane.xlu1 %3553 }
 0x8bd   : > { %5969 = vrcp.f32 %v3554_v57 }
 0x8be   : > { %5971 = vrcp.f32 %v3533_v55  ;;  %v3560_v56 = vpop.xlane.xlu0 %3559 }
 0x8bf   : > { %5973 = vrcp.f32 %v3560_v56  ;;  %5656 = vxpose.xlu1.b32.cont [6/8] (short) (narrow) %v5655_v49, 16 }
 0x8c0   : > { %5975 = vrcp.f32 %v3539_v52  ;;  %v3557_v20 = vpop.xlane.xlu1 %3556  ;;  %v4394_v52 = vmul.f32 %v5968_v5, %v7918_v45 }
 0x8c1   : > { %5977 = vrcp.f32 %v3557_v20 }
 0x8c2   : > { %5979 = vrcp.f32 %v3542_v22  ;;  %v3563_v11 = vpop.xlane.xlu0 %3562 }
 0x8c3   : > { %5981 = vrcp.f32 %v3563_v11  ;;  %v7978_v59 = vpop.f32.mrb[92].mxu1  ;;  %5658 = vxpose.xlu1.b32.cont [7/8] (short) (narrow) %v5657_v27, 16 }
 0x8c4   : > { %5983 = vrcp.f32 %v3548_v43  ;;  %v3566_v8 = vpop.xlane.xlu1 %3565  ;;  %v7980_v31 = vpop.f32.mrb[93].mxu1 }
 0x8c5   : > { %5985 = vrcp.f32 %v3566_v8  ;;  %v7982_v37 = vpop.f32.mrb[94].mxu1 }
 0x8c6   : > { %5987 = vrcp.f32 %v3551_v39  ;;  %v3572_v28 = vpop.xlane.xlu0 %3571  ;;  %v7984_v15 = vpop.f32.mrb[88].mxu0 }
 0x8c7   : > { %v5970_v62 = vpop.eup %5969  ;;  %5989 = vrcp.f32 %v3572_v28  ;;  %v7986_v19 = vpop.f32.mrb[95].mxu1  ;;  %5660 = vxpose.xlu1.b32.end [8/8] (short) (narrow) %v5659_v58, 16 }
 0x8c8   : > { %v5972_v36 = vpop.eup %5971  ;;  %5991 = vrcp.f32 %v7910_v44  ;;  %v3575_v24 = vpop.xlane.xlu1 %3574  ;;  %v4400_v54 = vmul.f32 %v5970_v62, %v7936_v1 }
 0x8c9   : > { %v7989_v12 = vpop.f32.mrb[89].mxu0  ;;  %v5974_v55 = vpop.eup %5973  ;;  %5993 = vrcp.f32 %v3575_v24  ;;  %v4393_v1 = vmul.f32 %v5972_v36, %v7924_v25 }
 0x8ca   : > { %v7993_v4 = vpop.f32.mrb[90].mxu0  ;;  %v5976_v17 = vpop.eup %5975  ;;  %v5671_v35 = vpack.i.bf16 %v4400_v54, %v4392_v42  ;;  %v4402_v44 = vmul.f32 %v5974_v55, %v7934_v6  ;;  %5995 = vrcp.f32 %v3545_v3 }
 0x8cb   : > { %v3584_v13 = vpop.xlane.xlu0 %3583  ;;  %v7995_v2 = vpop.f32.mrb[91].mxu0  ;;  %v4395_v60 = vmul.f32 %v5976_v17, %v7922_v14 }
 0x8cc   : > { %v5978_v7 = vpop.eup %5977  ;;  %5672 = vxpose.xlu0.b32.start [1/8] (short) (narrow) %v5671_v35, 16  ;;  %v3569_v21 = vpop.xlane.xlu1 %3568  ;;  %v5675_v46 = vpack.i.bf16 %v4402_v44, %v4394_v52 }
 0x8cd   : > { %v5980_v16 = vpop.eup %5979  ;;  %v4401_v41 = vmul.f32 %v5978_v7, %v7940_v18  ;;  %5997 = vrcp.f32 %v3569_v21 }
 0x8ce   : > { %v5982_v22 = vpop.eup %5981  ;;  %v5563_v43 = vpop.f32.mrb[96].mxu1  ;;  %v4396_v18 = vmul.f32 %v5980_v16, %v7928_v51 }
 0x8cf   : > { %v5984_v27 = vpop.eup %5983  ;;  %v3587_v33 = vpop.xlane.xlu0 %3586  ;;  %v5673_v32 = vpack.i.bf16 %v4401_v41, %v4393_v1  ;;  %v4403_v45 = vmul.f32 %v5982_v22, %v7938_v50  ;;  %v8003_v3 = vmul.f32 %v5962_v0, %v5563_v43 }
 0x8d0   : > { %v5986_v6 = vpop.eup %5985  ;;  %v4281_v58 = vpop.f32.mrb[97].mxu1  ;;  %v4398_v5 = vmul.f32 %v5984_v27, %v7926_v9 }
 0x8d1   : > { %v5988_v49 = vpop.eup %5987  ;;  %5674 = vxpose.xlu0.b32.cont [2/8] (short) (narrow) %v5673_v32, 16  ;;  %v3578_v25 = vpop.xlane.xlu1 %3577  ;;  %v5677_v39 = vpack.i.bf16 %v4403_v45, %v4395_v60  ;;  %v4404_v57 = vmul.f32 %v5986_v6, %v7949_v26  ;;  %v8008_v20 = vmul.f32 %v7976_v29, %v4281_v58 }
 0x8d2   : > { %v5990_v56 = vpop.eup %5989  ;;  %v5564_v14 = vpop.f32.mrb[98].mxu1  ;;  %v4399_v29 = vmul.f32 %v5988_v49, %v7930_v30 }
 0x8d3   : > { %v5992_v11 = vpop.eup %5991  ;;  %v8010_v50 = vmul.f32 %v5964_v48, %v5564_v14  ;;  %v3596_v8 = vpop.xlane.xlu0 %3595  ;;  %v5679_v0 = vpack.i.bf16 %v4404_v57, %v4396_v18  ;;  %v4406_v28 = vmul.f32 %v5990_v56, %v7947_v47 }
 0x8d4   : > { %v4284_v63 = vpop.f32.mrb[99].mxu1  ;;  %v5994_v62 = vpop.eup %5993  ;;  %5999 = vrcp.f32 %v3596_v8 }
 0x8d5   : > { %v8014_v51 = vmul.f32 %v5992_v11, %v4284_v63  ;;  %5676 = vxpose.xlu0.b32.cont [3/8] (short) (narrow) %v5675_v46, 16  ;;  %v3581_v26 = vpop.xlane.xlu1 %3580  ;;  %v5683_v36 = vpack.i.bf16 %v4406_v28, %v4398_v5  ;;  %v4407_v24 = vmul.f32 %v5994_v62, %v7953_v23  ;;  %v5996_v48 = vpop.eup %5995  ;;  %v4709_v5 = vld [vmem:[%s8175_s9 + $0x28] sm:$0xff]  ;;  %v4711_v28 = vld [vmem:[%s8175_s9 + $0x38] sm:$0xff] }
 0x8d6   : > { %v4397_v47 = vmul.f32 %v5996_v48, %v7932_v40  ;;  %v4713_v62 = vld [vmem:[%s8175_s9 + $0x48] sm:$0xff] }
 0x8d7   : > { %v3599_v42 = vpop.xlane.xlu0 %3598  ;;  %v5685_v54 = vpack.i.bf16 %v4407_v24, %v4399_v29  ;;  %v5998_v55 = vpop.eup %5997  ;;  %v4719_v29 = vld [vmem:[%s8175_s9 + $0x78] sm:$0xff]  ;;  %v4706_v24 = vld [vmem:[%s8175_s9 + $0x10] sm:$0xff] }
 0x8d8   : > { %6001 = vrcp.f32 %v3599_v42  ;;  %v4405_v17 = vmul.f32 %v5998_v55, %v7955_v61  ;;  %v4708_v42 = vld [vmem:[%s8175_s9 + $0x20] sm:$0xff] }
 0x8d9   : > { %5678 = vxpose.xlu0.b32.cont [4/8] (short) (narrow) %v5677_v39, 16  ;;  %v3590_v9 = vpop.xlane.xlu1 %3589 }
 0x8da   : > { %6003 = vrcp.f32 %v3590_v9  ;;  %v5681_v52 = vpack.i.bf16 %v4405_v17, %v4397_v47 }
 0x8db   : > { %6005 = vrcp.f32 %v3578_v25  ;;  %v3593_v35 = vpop.xlane.xlu0 %3592 }
 0x8dc   : > { %6007 = vrcp.f32 %v3593_v35  ;;  %v4710_v35 = vld [vmem:[%s8175_s9 + $0x30] sm:$0xff] }
 0x8dd   : > { %6009 = vrcp.f32 %v3584_v13  ;;  %5680 = vxpose.xlu0.b32.cont [5/8] (short) (narrow) %v5679_v0, 16  ;;  %v3602_v30 = vpop.xlane.xlu1 %3601  ;;  %v4707_v0 = vld [vmem:[%s8175_s9 + $0x18] sm:$0xff] }
 0x8de   : > { %v6000_v23 = vpop.eup %5999  ;;  %6011 = vrcp.f32 %v3602_v30 }
 0x8df   : > { %6013 = vrcp.f32 %v3587_v33  ;;  %v3608_v44 = vpop.xlane.xlu0 %3607  ;;  %v4414_v7 = vmul.f32 %v6000_v23, %v7984_v15  ;;  %v4712_v23 = vld [vmem:[%s8175_s9 + $0x40] sm:$0xff] }
 0x8e0   : > { %6015 = vrcp.f32 %v3608_v44  ;;  %v4714_v44 = vld [vmem:[%s8175_s9 + $0x50] sm:$0xff] }
 0x8e1   : > { %5682 = vxpose.xlu0.b32.cont [6/8] (short) (narrow) %v5681_v52, 16  ;;  %v3611_v16 = vpop.xlane.xlu1 %3610  ;;  %v5709_v40 = vpack.i.bf16 %v8003_v3, %v4414_v7  ;;  %v4716_v7 = vld [vmem:[%s8175_s9 + $0x60] sm:$0xff] }
 0x8e2   : > { %v6002_v61 = vpop.eup %6001  ;;  %6017 = vrcp.f32 %v3611_v16  ;;  %v4718_v16 = vld [vmem:[%s8175_s9 + $0x70] sm:$0xff] }
 0x8e3   : > { %v4415_v21 = vmul.f32 %v6002_v61, %v7993_v4  ;;  %6019 = vrcp.f32 %v3581_v26  ;;  %v4717_v26 = vld [vmem:[%s8175_s9 + $0x68] sm:$0xff] }
 0x8e4   : > { %v6004_v1 = vpop.eup %6003 }
 0x8e5   : > { %v6006_v13 = vpop.eup %6005  ;;  %5684 = vxpose.xlu0.b32.cont [7/8] (short) (narrow) %v5683_v36, 16  ;;  %v3605_v41 = vpop.xlane.xlu1 %3604  ;;  %v4412_v46 = vmul.f32 %v6004_v1, %v7989_v12  ;;  %v5711_v22 = vpack.i.bf16 %v8010_v50, %v4415_v21  ;;  %v4705_v36 = vld [vmem:[%s8175_s9 + $0x8] sm:$0xff] }
 0x8e6   : > { %v6008_v27 = vpop.eup %6007  ;;  %6021 = vrcp.f32 %v3605_v41  ;;  %v4408_v4 = vmul.f32 %v6006_v13, %v7965_v53 }
 0x8e7   : > { %v6010_v15 = vpop.eup %6009  ;;  %v5705_v33 = vpack.i.bf16 %v8008_v20, %v4412_v46  ;;  %v4413_v32 = vmul.f32 %v6008_v27, %v7995_v2 }
 0x8e8   : > { %v6012_v60 = vpop.eup %6011  ;;  %v4410_v3 = vmul.f32 %v6010_v15, %v7963_v34 }
 0x8e9   : > { %v6014_v45 = vpop.eup %6013  ;;  %5686 = vxpose.xlu0.b32.end [8/8] (short) (narrow) %v5685_v54, 16  ;;  %v4416_v6 = vmul.f32 %v6012_v60, %v7980_v31  ;;  %v5707_v43 = vpack.i.bf16 %v8014_v51, %v4413_v32  ;;  %v4715_v51 = vld [vmem:[%s8175_s9 + $0x58] sm:$0xff] }
 0x8ea   : > { %v6016_v49 = vpop.eup %6015  ;;  %v4411_v2 = vmul.f32 %v6014_v45, %v7969_v38 }
 0x8eb   : > { %v5697_v12 = vpack.i.bf16 %v4416_v6, %v4408_v4  ;;  %v4418_v58 = vmul.f32 %v6016_v49, %v7978_v59  ;;  %v5755_v59 = vld [vmem:[%s8174_s8] sm:$0xff]   ;;  %v5757_v49 = vld [vmem:[%s8174_s8 + $0x10] sm:$0xff]  }
 0x8ec   : > { %v6018_v25 = vpop.eup %6017  ;;  %5581 = vmatprep.mubr.bf16.mxu0 %v5755_v59 }
 0x8ed   : > { %5698 = vxpose.xlu1.b32.start [1/8] (short) (narrow) %v5697_v12, 16  ;;  %v5701_v39 = vpack.i.bf16 %v4418_v58, %v4410_v3  ;;  %v4419_v18 = vmul.f32 %v6018_v25, %v7982_v37  ;;  %v6020_v57 = vpop.eup %6019  ;;  %v5758_v12 = vld [vmem:[%s8174_s8 + $0x18] sm:$0xff]   ;;  %v5759_v3 = vld [vmem:[%s8174_s8 + $0x20] sm:$0xff]   ;;  %v5760_v58 = vld [vmem:[%s8174_s8 + $0x28] sm:$0xff]  }
 0x8ee   : > { %v4409_v31 = vmul.f32 %v6020_v57, %v7971_v10  ;;  %v5761_v25 = vld [vmem:[%s8174_s8 + $0x30] sm:$0xff]  }
 0x8ef   : > { %v5703_v56 = vpack.i.bf16 %v4419_v18, %v4411_v2 }
 0x8f0   : > { %v6022_v53 = vpop.eup %6021 }
 0x8f1   : > { %v4417_v20 = vmul.f32 %v6022_v53, %v7986_v19  ;;  %v4704_v19 = vld [vmem:[%s8175_s9] sm:$0xff] }
 0x8f3   : > { %v5699_v14 = vpack.i.bf16 %v4417_v20, %v4409_v31 }
 0x8f5   : > { %5700 = vxpose.xlu1.b32.cont [2/8] (short) (narrow) %v5699_v14, 16 }
 0x8f9   : > { %5702 = vxpose.xlu1.b32.cont [3/8] (short) (narrow) %v5701_v39, 16  ;;  %v5762_v39 = vld [vmem:[%s8174_s8 + $0x38] sm:$0xff]  }
 0x8fd   : > { %5704 = vxpose.xlu1.b32.cont [4/8] (short) (narrow) %v5703_v56, 16  ;;  %v5635_v34 = vpop.trf.xlu0 }
 0x8fe   : > { %v5639_v38 = vunpack.i.h.bf16 %v5635_v34  ;;  %v5636_v37 = vunpack.i.l.bf16 %v5635_v34 }
 0x901   : > { %5706 = vxpose.xlu1.b32.cont [5/8] (short) (narrow) %v5705_v33, 16  ;;  %v5640_v11 = vpop.trf.xlu0 }
 0x902   : > { %v5644_v50 = vunpack.i.h.bf16 %v5640_v11  ;;  %v5641_v8 = vunpack.i.l.bf16 %v5640_v11 }
 0x904   : > { %v4696_v10 = vpack.c.bf16 %v5641_v8, %v5636_v37  ;;  %v4697_v63 = vpack.c.bf16 %v5644_v50, %v5639_v38  ;;  %v6023_v50 = vld [vmem:[%s6120_s18 + $0x10] sm:$0xff] }
 0x905   : > { %5708 = vxpose.xlu1.b32.cont [6/8] (short) (narrow) %v5707_v43, 16  ;;  %v5756_v43 = vld [vmem:[%s8174_s8 + $0x8] sm:$0xff]  }
 0x906   : > { %5565 = vmatprep.subr.bf16.mxu0 %v4696_v10 }
 0x907   : > { %5566 = vmatpush3.bf16.msra.mxu0 %v4696_v10 }
 0x908   : > { %5567 = vmatprep.subr.bf16.mxu0 %v4697_v63 }
 0x909   : > { %5710 = vxpose.xlu1.b32.cont [7/8] (short) (narrow) %v5709_v40, 16 }
 0x90b   : > { %5568 = vmatpush3.bf16.msra.mxu0 %v4697_v63 }
 0x90d   : > { %5712 = vxpose.xlu1.b32.end [8/8] (short) (narrow) %v5711_v22, 16 }
 0x912   : > { %4722 = vperm.xlu0 %5617, %v4704_v19   ;;  %v6024_v19 = vld [vmem:[%s6120_s18] sm:$0xff] }
 0x916   : > { %4737 = vperm.xlu0 %5617, %v4707_v0  }
 0x91a   : > { %4747 = vperm.xlu0 %5617, %v4709_v5  }
 0x91e   : > { %4757 = vperm.xlu0 %5617, %v4711_v28   ;;  %v6025_v28 = vld [vmem:[%s6120_s18 + $0x18] sm:$0xff] }
 0x922   : > { %4767 = vperm.xlu0 %5617, %v4713_v62  }
 0x926   : > { %4777 = vperm.xlu0 %5617, %v4715_v51  }
 0x92a   : > { %4787 = vperm.xlu0 %5617, %v4717_v26   ;;  %v6026_v26 = vld [vmem:[%s6120_s18 + $0x8] sm:$0xff] }
 0x92b   : > { %4727 = vperm.xlu1 %5618, %v4705_v36   ;;  %v5661_v48 = vpop.trf.xlu1 }
 0x92c   : > { %v5665_v54 = vunpack.i.h.bf16 %v5661_v48  ;;  %v5662_v55 = vunpack.i.l.bf16 %v5661_v48 }
 0x92e   : > { %4797 = vperm.xlu0 %5617, %v4719_v29  }
 0x92f   : > { %4732 = vperm.xlu1 %5618, %v4706_v24   ;;  %v5666_v9 = vpop.trf.xlu1 }
 0x930   : > { %v5670_v47 = vunpack.i.h.bf16 %v5666_v9  ;;  %v5667_v17 = vunpack.i.l.bf16 %v5666_v9  ;;  %v6027_v9 = vld [vmem:[%s6120_s18 + $0x30] sm:$0xff] }
 0x932   : > { %v4698_v52 = vpack.c.bf16 %v5667_v17, %v5662_v55  ;;  %v4699_v30 = vpack.c.bf16 %v5670_v47, %v5665_v54 }
 0x933   : > { %4742 = vperm.xlu1 %5618, %v4708_v42  }
 0x934   : > { %5569 = vmatprep.subr.bf16.mxu0 %v4698_v52 }
 0x935   : > { %5570 = vmatpush3.bf16.msra.mxu0 %v4698_v52 }
 0x936   : > { %5571 = vmatprep.subr.bf16.mxu0 %v4699_v30 }
 0x937   : > { %4752 = vperm.xlu1 %5618, %v4710_v35  }
 0x939   : > { %5572 = vmatpush3.bf16.msra.mxu0 %v4699_v30  ;;  %v6028_v30 = vld [vmem:[%s6120_s18 + $0x20] sm:$0xff] }
 0x93b   : > { %4762 = vperm.xlu1 %5618, %v4712_v23  }
 0x93f   : > { %4772 = vperm.xlu1 %5618, %v4714_v44  }
 0x943   : > { %4782 = vperm.xlu1 %5618, %v4716_v7   ;;  %v6029_v7 = vld [vmem:[%s6120_s18 + $0x38] sm:$0xff] }
 0x947   : > { %4792 = vperm.xlu1 %5618, %v4718_v16  }
 0x94d   : > { %v5687_v40 = vpop.trf.xlu0 }
 0x94e   : > { %v5691_v61 = vunpack.i.h.bf16 %v5687_v40  ;;  %v5688_v21 = vunpack.i.l.bf16 %v5687_v40 }
 0x951   : > { %v5692_v1 = vpop.trf.xlu0 }
 0x952   : > { %v5696_v13 = vunpack.i.h.bf16 %v5692_v1  ;;  %v5693_v41 = vunpack.i.l.bf16 %v5692_v1 }
 0x954   : > { %v4700_v46 = vpack.c.bf16 %v5693_v41, %v5688_v21  ;;  %v4701_v22 = vpack.c.bf16 %v5696_v13, %v5691_v61  ;;  %v6030_v61 = vld [vmem:[%s6120_s18 + $0x28] sm:$0xff] }
 0x956   : > { %5573 = vmatprep.subr.bf16.mxu0 %v4700_v46 }
 0x957   : > { %5574 = vmatpush3.bf16.msra.mxu0 %v4700_v46 }
 0x958   : > { %5575 = vmatprep.subr.bf16.mxu0 %v4701_v22 }
 0x95b   : > { %5576 = vmatpush3.bf16.msra.mxu0 %v4701_v22 }
 0x971   : > { %v5713_v27 = vpop.trf.xlu1 }
 0x972   : > { %v5714_v15 = vunpack.i.l.bf16 %v5713_v27  ;;  %v5717_v45 = vunpack.i.h.bf16 %v5713_v27 }
 0x975   : > { %v5718_v33 = vpop.trf.xlu1 }
 0x976   : > { %v5722_v32 = vunpack.i.h.bf16 %v5718_v33  ;;  %v5719_v60 = vunpack.i.l.bf16 %v5718_v33 }
 0x978   : > { %v4702_v4 = vpack.c.bf16 %v5719_v60, %v5714_v15  ;;  %v4703_v6 = vpack.c.bf16 %v5722_v32, %v5717_v45  ;;  %v6031_v15 = vld [vmem:[%s6120_s18 + $0x50] sm:$0xff] }
 0x97a   : > { %5577 = vmatprep.subr.bf16.mxu0 %v4702_v4 }
 0x97b   : > { %5578 = vmatpush3.bf16.msra.mxu0 %v4702_v4  ;;  %v6032_v4 = vld [vmem:[%s6120_s18 + $0x40] sm:$0xff] }
 0x97c   : > { %5579 = vmatprep.subr.bf16.mxu0 %v4703_v6 }
 0x97f   : > { %5580 = vmatpush3.bf16.msra.mxu0 %v4703_v6 }
 0x982   : > { %5582 = vmatmul.mubr.bf16.vlgmr.msra.gmra.mrb[92].mxu0 %v5756_v43 }
 0x983   : > { %5585 = vmatprep.mubr.bf16.mxu0 %v5757_v49  ;;  %v6033_v49 = vld [vmem:[%s6120_s18 + $0x58] sm:$0xff] }
 0x98a   : > { %5586 = vmatmul.mubr.bf16.gmra.mrb[96].mxu0 %v5758_v12 }
 0x98b   : > { %5589 = vmatprep.mubr.bf16.mxu0 %v5759_v3  ;;  %v6034_v3 = vld [vmem:[%s6120_s18 + $0x48] sm:$0xff] }
 0x991   : > { %v4723_v18 = vpop.permute.xlu0 %4722 }
 0x992   : > { %5590 = vmatmul.mubr.bf16.gmra.mrb[100].mxu0 %v5760_v58 }
 0x993   : > { %5593 = vmatprep.mubr.bf16.mxu0 %v5761_v25 }
 0x995   : > { %v4738_v56 = vpop.permute.xlu0 %4737 }
 0x999   : > { %v4748_v31 = vpop.permute.xlu0 %4747 }
 0x99a   : > { %5594 = vmatmul.mubr.bf16.gmra.mrb[104].mxu0 %v5762_v39 }
 0x99d   : > { %v4758_v38 = vpop.permute.xlu0 %4757 }
 0x9a1   : > { %v4768_v29 = vpop.permute.xlu0 %4767 }
 0x9a5   : > { %v4778_v40 = vpop.permute.xlu0 %4777 }
 0x9a9   : > { %v4788_v45 = vpop.permute.xlu0 %4787 }
 0x9aa   : > { %v4728_v2 = vpop.permute.xlu1 %4727 }
 0x9ae   : > { %v4733_v57 = vpop.permute.xlu1 %4732 }
 0x9b2   : > { %v4743_v53 = vpop.permute.xlu1 %4742 }
 0x9b6   : > { %v4753_v20 = vpop.permute.xlu1 %4752 }
 0x9ba   : > { %v4763_v51 = vpop.permute.xlu1 %4762 }
 0x9be   : > { %v4773_v52 = vpop.permute.xlu1 %4772 }
 0x9c2   : > { %v4783_v46 = vpop.permute.xlu1 %4782 }
 0x9c6   : > { %v4793_v25 = vpop.permute.xlu1 %4792 }
 0xa55   : > { %v5583_v14 = vpop.f32.mrb[92].mxu0 }
 0xa56   : > { %v4891_v34 = vadd.f32 %v5583_v14, %v4733_v57  ;;  %v4882_v59 = vpop.f32.mrb[93].mxu0  ;;  %v4798_v57 = vpop.permute.xlu0 %4797 }
 0xa57   : > { %v4883_v37 = vadd.f32 %v4882_v59, %v4723_v18  ;;  %v5584_v11 = vpop.f32.mrb[94].mxu0  ;;  %v6036_v59 = vld [vmem:[%s6120_s18 + $0x60] sm:$0xff] }
 0xa58   : > { %v4947_v8 = vadd.f32 %v6023_v50, %v4891_v34  ;;  %v4894_v10 = vadd.f32 %v5584_v11, %v4738_v56  ;;  %v4885_v63 = vpop.f32.mrb[95].mxu0  ;;  %v6037_v11 = vld [vmem:[%s6120_s18 + $0x78] sm:$0xff] }
 0xa59   : > { %v4945_v0 = vadd.f32 %v6024_v19, %v4883_v37  ;;  %v4886_v5 = vadd.f32 %v4885_v63, %v4728_v2 }
 0xa5a   : > { %4963 = vst.msk [vmem:[%s8113_s21 + $0x10] sm:$0xff] %vm479_vm0, %v4947_v8  ;;  %v4948_v62 = vadd.f32 %v6025_v28, %v4894_v10  ;;  %v6038_v8 = vld [vmem:[%s6120_s18 + $0x68] sm:$0xff] }
 0xa5b   : > { %4961 = vst.msk [vmem:[%s8113_s21] sm:$0xff] %vm479_vm0, %v4945_v0  ;;  %v4946_v36 = vadd.f32 %v6026_v26, %v4886_v5 }
 0xa5c   : > { %4964 = vst.msk [vmem:[%s8113_s21 + $0x18] sm:$0xff] %vm479_vm0, %v4948_v62 }
 0xa5d   : > { %4962 = vst.msk [vmem:[%s8113_s21 + $0x8] sm:$0xff] %vm479_vm0, %v4946_v36  ;;  %v5587_v24 = vpop.f32.mrb[96].mxu0 }
 0xa5e   : > { %v4907_v48 = vadd.f32 %v5587_v24, %v4753_v20  ;;  %v4898_v42 = vpop.f32.mrb[97].mxu0 }
 0xa5f   : > { %v4899_v54 = vadd.f32 %v4898_v42, %v4743_v53  ;;  %v5588_v55 = vpop.f32.mrb[98].mxu0 }
 0xa60   : > { %v4951_v47 = vadd.f32 %v6027_v9, %v4907_v48  ;;  %v4910_v17 = vadd.f32 %v5588_v55, %v4758_v38  ;;  %v4901_v35 = vpop.f32.mrb[99].mxu0 }
 0xa61   : > { %v4949_v23 = vadd.f32 %v6028_v30, %v4899_v54  ;;  %v4902_v44 = vadd.f32 %v4901_v35, %v4748_v31  ;;  %v6035_v31 = vld [vmem:[%s6120_s18 + $0x70] sm:$0xff] }
 0xa62   : > { %4967 = vst.msk [vmem:[%s8113_s21 + $0x30] sm:$0xff] %vm479_vm0, %v4951_v47  ;;  %v4952_v16 = vadd.f32 %v6029_v7, %v4910_v17 }
 0xa63   : > { %4965 = vst.msk [vmem:[%s8113_s21 + $0x20] sm:$0xff] %vm479_vm0, %v4949_v23  ;;  %v4950_v21 = vadd.f32 %v6030_v61, %v4902_v44 }
 0xa64   : > { %4968 = vst.msk [vmem:[%s8113_s21 + $0x38] sm:$0xff] %vm479_vm0, %v4952_v16 }
 0xa65   : > { %4966 = vst.msk [vmem:[%s8113_s21 + $0x28] sm:$0xff] %vm479_vm0, %v4950_v21  ;;  %v5591_v1 = vpop.f32.mrb[100].mxu0 }
 0xa66   : > { %v4923_v13 = vadd.f32 %v5591_v1, %v4773_v52  ;;  %v4914_v41 = vpop.f32.mrb[101].mxu0 }
 0xa67   : > { %v4915_v22 = vadd.f32 %v4914_v41, %v4763_v51  ;;  %v5592_v27 = vpop.f32.mrb[102].mxu0 }
 0xa68   : > { %v4955_v33 = vadd.f32 %v6031_v15, %v4923_v13  ;;  %v4926_v32 = vadd.f32 %v5592_v27, %v4778_v40  ;;  %v4917_v60 = vpop.f32.mrb[103].mxu0 }
 0xa69   : > { %v4953_v6 = vadd.f32 %v6032_v4, %v4915_v22  ;;  %v4918_v43 = vadd.f32 %v4917_v60, %v4768_v29 }
 0xa6a   : > { %4971 = vst.msk [vmem:[%s8113_s21 + $0x50] sm:$0xff] %vm479_vm0, %v4955_v33  ;;  %v4956_v12 = vadd.f32 %v6033_v49, %v4926_v32 }
 0xa6b   : > { %4969 = vst.msk [vmem:[%s8113_s21 + $0x40] sm:$0xff] %vm479_vm0, %v4953_v6  ;;  %v4954_v58 = vadd.f32 %v6034_v3, %v4918_v43 }
 0xa6c   : > { %4972 = vst.msk [vmem:[%s8113_s21 + $0x58] sm:$0xff] %vm479_vm0, %v4956_v12 }
 0xa6d   : > { %4970 = vst.msk [vmem:[%s8113_s21 + $0x48] sm:$0xff] %vm479_vm0, %v4954_v58  ;;  %v5595_v39 = vpop.f32.mrb[104].mxu0 }
 0xa6e   : > { %v4939_v2 = vadd.f32 %v5595_v39, %v4793_v25  ;;  %v4930_v18 = vpop.f32.mrb[105].mxu0 }
 0xa6f   : > { %v4931_v56 = vadd.f32 %v4930_v18, %v4783_v46  ;;  %v5596_v53 = vpop.f32.mrb[106].mxu0 }
 0xa70   : > { %v4959_v20 = vadd.f32 %v6035_v31, %v4939_v2  ;;  %v4942_v14 = vadd.f32 %v5596_v53, %v4798_v57  ;;  %v4933_v34 = vpop.f32.mrb[107].mxu0 }
 0xa71   : > { %v4957_v38 = vadd.f32 %v6036_v59, %v4931_v56  ;;  %v4934_v37 = vadd.f32 %v4933_v34, %v4788_v45 }
 0xa72   : > { %4975 = vst.msk [vmem:[%s8113_s21 + $0x70] sm:$0xff] %vm479_vm0, %v4959_v20  ;;  %v4960_v50 = vadd.f32 %v6037_v11, %v4942_v14 }
 0xa73   : > { %4973 = vst.msk [vmem:[%s8113_s21 + $0x60] sm:$0xff] %vm479_vm0, %v4957_v38  ;;  %v4958_v10 = vadd.f32 %v6038_v8, %v4934_v37 }
 0xa74   : > { %4976 = vst.msk [vmem:[%s8113_s21 + $0x78] sm:$0xff] %vm479_vm0, %v4960_v50 }
 0xa75   : > { %4974 = vst.msk [vmem:[%s8113_s21 + $0x68] sm:$0xff] %vm479_vm0, %v4958_v10 }
 0xa76 PF: > { %s20_s13 = sadd.s32 1, %s6045_s13  }
 0xa77   : > { %p17_p4 = scmp.ge.s32.totalorder %s20_s13, 4  }
 0xa79   :  { %19 = sbr.rel (!%p17_p4) target bundleno = 1 (0x1), region = 90 }

</bundles_post_ra>
